<compile_context>
chip_gen: v7x
topology: tpu7x:2x2x1
jax: 0.10.0
libtpu: 0.0.40
codegen_flags: <defaults>
</compile_context>

<pallas_src>
import jax
import jax.numpy as jnp
from jax.experimental import pallas as pl
from jax.experimental.pallas import tpu as pltpu


# ----------------------------------------------------------------------------
# Config
# ----------------------------------------------------------------------------
IMG = 16
PATCH = 4
IN_CHANS = 3
EMBED = 32
DEPTH = 2
HEADS = 4
HEAD_DIM = EMBED // HEADS              # 8
MLP_HIDDEN = 4 * EMBED                 # 128
HEAD_MID = 256
HALF_MID = HEAD_MID // 2               # 128
TARGET_SIZE = 7
NUM_PATCHES = (IMG // PATCH) ** 2      # 16
TOKENS = NUM_PATCHES + 1               # 17
PATCH_DIM = IN_CHANS * PATCH * PATCH   # 48
LN_EPS = 1e-6
ATTN_SCALE = float(HEAD_DIM) ** -0.5
LANE = 128
NEG_INF = -1e30

# tanh-GELU (native EUP transcendental) vs timm's exact erf GELU (long VALU polynomial).
# TODO(synk): set to False if bit-level parity with timm's exact-erf GELU is required.
GELU_APPROXIMATE = True

# ---- vector slab row layout (width LANE) ----
ROW_LN1_G, ROW_LN1_B, ROW_LN2_G, ROW_LN2_B, ROW_PROJ_B, ROW_FC2_B, ROW_FC1_B = range(7)
ROWS_PER_DEPTH = 8
ROW_LNF_G = DEPTH * ROWS_PER_DEPTH            # 16
ROW_LNF_B = ROW_LNF_G + 1                     # 17
ROW_HEAD1_B0 = ROW_LNF_B + 1                  # 18  head1_b[:128]
ROW_HEAD1_B1 = ROW_HEAD1_B0 + 1               # 19  head1_b[128:]
ROW_HEAD2_B = ROW_HEAD1_B1 + 1                # 20  head2_b (7 lanes, zero-padded)
ROW_QKV_B0 = 24                               # per-(depth, q/k/v, head) biases, 8 lanes each
VEC_ROWS = ROW_QKV_B0 + DEPTH * 3 * HEADS     # 48

# ---- misc matrix slab row layout (width LANE) ----
MW_PATCH = 0                                  # patch_w: 48 rows, cols 0:EMBED
MW_H1A = MW_PATCH + PATCH_DIM                 # head1_w[:, :128]: 32 rows
MW_H1B = MW_H1A + EMBED                       # head1_w[:, 128:]: 32 rows
MW_H2A = MW_H1B + EMBED                       # head2_w[:128, :] padded to 128 cols: 128 rows
MW_H2B = MW_H2A + HALF_MID                    # head2_w[128:, :] padded to 128 cols: 128 rows
MW_ROWS = MW_H2B + HALF_MID                   # 368

# ---- per-depth block matrix slab row layout (DEPTH, BW_ROWS, LANE) ----
BW_PROJ = 0                                   # proj_w: 32 rows (head-major), cols 0:EMBED
BW_FC1 = BW_PROJ + EMBED                      # fc1_w: 32 rows, cols 0:MLP_HIDDEN
BW_FC2 = BW_FC1 + EMBED                       # fc2_w: 128 rows, cols 0:EMBED
BW_ROWS = BW_FC2 + MLP_HIDDEN                 # 192


def _cdiv(a, b):
    return -(-a // b)


# ----------------------------------------------------------------------------
# Fused Pallas kernel: one grid step = full forward for T packed samples
# ----------------------------------------------------------------------------
def _layer_norm(x, g, b):
    mu = jnp.mean(x, axis=-1, keepdims=True)
    xc = x - mu
    var = jnp.mean(xc * xc, axis=-1, keepdims=True)
    return xc * jax.lax.rsqrt(var + LN_EPS) * g + b


def _vit_fused_kernel(patches_ref, add_ref, mask_ref,
                      misc_w_ref, vec_ref, qkv_w_ref, blk_w_ref,
                      out_ref):
    f32 = jnp.float32

    def vrow(r, width=EMBED):
        return vec_ref[r:r + 1, 0:width]          # (1, width) broadcast row

    # Patch embedding for all packed samples' token slots.  cls rows of `patches` are zero;
    # `add_ref` carries (cls_token + pos[0] | patch_bias + pos[1:]) tiled per packed sample.
    patch_w = misc_w_ref[MW_PATCH:MW_PATCH + PATCH_DIM, 0:EMBED]
    x = jnp.dot(patches_ref[0], patch_w, preferred_element_type=f32) + add_ref[...]   # (M, E)

    mask = mask_ref[...]                           # block-diagonal additive mask (0 / -1e30)

    # Transformer blocks (pre-norm MHSA + MLP, residuals) — statically unrolled.
    for d in range(DEPTH):
        base = d * ROWS_PER_DEPTH

        # ----- multi-head self-attention -----
        h = _layer_norm(x, vrow(base + ROW_LN1_G), vrow(base + ROW_LN1_B))
        attn = None
        for hh in range(HEADS):
            iq = (d * 3 + 0) * HEADS + hh
            ik = (d * 3 + 1) * HEADS + hh
            iv = (d * 3 + 2) * HEADS + hh
            q = jnp.dot(h, qkv_w_ref[iq], preferred_element_type=f32) + vrow(ROW_QKV_B0 + iq, HEAD_DIM)
            k = jnp.dot(h, qkv_w_ref[ik], preferred_element_type=f32) + vrow(ROW_QKV_B0 + ik, HEAD_DIM)
            v = jnp.dot(h, qkv_w_ref[iv], preferred_element_type=f32) + vrow(ROW_QKV_B0 + iv, HEAD_DIM)
            # scores: contract last dims (no explicit transpose); keep packed samples independent
            s = jax.lax.dot_general(q, k, (((1,), (1,)), ((), ())),
                                    preferred_element_type=f32) * ATTN_SCALE          # (M, M)
            s = s + mask
            s = s - jnp.max(s, axis=-1, keepdims=True)
            p = jnp.exp(s)
            p = p * pl.reciprocal(jnp.sum(p, axis=-1, keepdims=True), approx=True)
            pv = jnp.dot(p, v, preferred_element_type=f32)                             # (M, hd)
            # fold the output projection into the head loop: sublane-aligned proj_w row slice
            proj_h = blk_w_ref[d, BW_PROJ + hh * HEAD_DIM:BW_PROJ + (hh + 1) * HEAD_DIM, 0:EMBED]
            contrib = jnp.dot(pv, proj_h, preferred_element_type=f32)                  # (M, E)
            attn = contrib if attn is None else attn + contrib
        x = x + attn + vrow(base + ROW_PROJ_B)

        # ----- MLP -----
        h = _layer_norm(x, vrow(base + ROW_LN2_G), vrow(base + ROW_LN2_B))
        h = (jnp.dot(h, blk_w_ref[d, BW_FC1:BW_FC1 + EMBED, :], preferred_element_type=f32)
             + vrow(base + ROW_FC1_B, MLP_HIDDEN))
        h = jax.nn.gelu(h, approximate=GELU_APPROXIMATE)
        x = x + (jnp.dot(h, blk_w_ref[d, BW_FC2:BW_FC2 + MLP_HIDDEN, 0:EMBED],
                         preferred_element_type=f32)
                 + vrow(base + ROW_FC2_B))

    # Final LayerNorm.
    x = _layer_norm(x, vrow(ROW_LNF_G), vrow(ROW_LNF_B))

    # Custom head: Linear(32,256) -> ReLU -> Dropout(=id) -> Linear(256,7).
    # Computed on ALL token rows (MXU is idle; avoids sublane-unaligned cls gathers) —
    # the host keeps only the cls rows and the first 7 lanes.
    h1a = (jnp.dot(x, misc_w_ref[MW_H1A:MW_H1A + EMBED, :], preferred_element_type=f32)
           + vrow(ROW_HEAD1_B0, LANE))
    h1b = (jnp.dot(x, misc_w_ref[MW_H1B:MW_H1B + EMBED, :], preferred_element_type=f32)
           + vrow(ROW_HEAD1_B1, LANE))
    h1a = jnp.maximum(h1a, 0.0)
    h1b = jnp.maximum(h1b, 0.0)
    # TODO(synk): training-mode Dropout(0.5) (stochastic masking via pltpu.prng_random_bits)
    # is not implemented; at inference it is the identity.
    logits = (jnp.dot(h1a, misc_w_ref[MW_H2A:MW_H2A + HALF_MID, :], preferred_element_type=f32)
              + jnp.dot(h1b, misc_w_ref[MW_H2B:MW_H2B + HALF_MID, :], preferred_element_type=f32)
              + vrow(ROW_HEAD2_B, LANE))                                                # (M, 128)
    out_ref[0] = logits.astype(out_ref.dtype)


# ----------------------------------------------------------------------------
# Parameters
# ----------------------------------------------------------------------------
def init_params(key):
    def normal(k, shape, std=0.02):
        return (std * jax.random.normal(k, shape)).astype(jnp.float32)

    keys = iter(jax.random.split(key, 64))
    return {
        "patch_w": normal(next(keys), (PATCH_DIM, EMBED)),
        "patch_b": jnp.zeros((1, EMBED), jnp.float32),
        "cls_token": normal(next(keys), (1, EMBED)),
        "pos_embed": normal(next(keys), (TOKENS, EMBED)),
        "lnf_g": jnp.ones((1, EMBED), jnp.float32),
        "lnf_b": jnp.zeros((1, EMBED), jnp.float32),
        "head1_w": normal(next(keys), (EMBED, HEAD_MID)),
        "head1_b": jnp.zeros((1, HEAD_MID), jnp.float32),
        "head2_w": normal(next(keys), (HEAD_MID, TARGET_SIZE)),
        "head2_b": jnp.zeros((1, TARGET_SIZE), jnp.float32),
        "ln1_g": jnp.ones((DEPTH, 1, EMBED), jnp.float32),
        "ln1_b": jnp.zeros((DEPTH, 1, EMBED), jnp.float32),
        "qkv_w": normal(next(keys), (DEPTH, EMBED, 3 * EMBED)),
        "qkv_b": jnp.zeros((DEPTH, 1, 3 * EMBED), jnp.float32),
        "proj_w": normal(next(keys), (DEPTH, EMBED, EMBED)),
        "proj_b": jnp.zeros((DEPTH, 1, EMBED), jnp.float32),
        "ln2_g": jnp.ones((DEPTH, 1, EMBED), jnp.float32),
        "ln2_b": jnp.zeros((DEPTH, 1, EMBED), jnp.float32),
        "fc1_w": normal(next(keys), (DEPTH, EMBED, MLP_HIDDEN)),
        "fc1_b": jnp.zeros((DEPTH, 1, MLP_HIDDEN), jnp.float32),
        "fc2_w": normal(next(keys), (DEPTH, MLP_HIDDEN, EMBED)),
        "fc2_b": jnp.zeros((DEPTH, 1, EMBED), jnp.float32),
    }


def patchify(x):
    """NCHW -> (B, num_patches, C*ph*pw), matching Conv2d(kernel=stride=patch) + flatten/transpose."""
    B, C, H, W = x.shape
    gh, gw = H // PATCH, W // PATCH
    x = x.reshape(B, C, gh, PATCH, gw, PATCH)
    x = x.transpose(0, 2, 4, 1, 3, 5)            # (B, gh, gw, C, ph, pw)
    return x.reshape(B, gh * gw, C * PATCH * PATCH)


# ----------------------------------------------------------------------------
# Host-side weight slab packing (pure parameter preprocessing, done once)
# ----------------------------------------------------------------------------
def _build_weight_slabs(params):
    f32 = jnp.float32

    def padc(a, cols=LANE):
        return jnp.pad(a, ((0, 0), (0, cols - a.shape[1])))

    misc_w = jnp.concatenate([
        padc(params["patch_w"]),                        # rows   0: 48
        params["head1_w"][:, :LANE],                    # rows  48: 80
        params["head1_w"][:, LANE:],                    # rows  80:112
        padc(params["head2_w"][:HALF_MID]),             # rows 112:240
        padc(params["head2_w"][HALF_MID:]),             # rows 240:368
    ], axis=0).astype(f32)

    vec = jnp.zeros((VEC_ROWS, LANE), f32)

    def setrow(v, r, arr):
        arr = jnp.reshape(arr, (-1,)).astype(f32)
        return v.at[r, :arr.shape[0]].set(arr)

    for d in range(DEPTH):
        base = d * ROWS_PER_DEPTH
        vec = setrow(vec, base + ROW_LN1_G, params["ln1_g"][d])
        vec = setrow(vec, base + ROW_LN1_B, params["ln1_b"][d])
        vec = setrow(vec, base + ROW_LN2_G, params["ln2_g"][d])
        vec = setrow(vec, base + ROW_LN2_B, params["ln2_b"][d])
        vec = setrow(vec, base + ROW_PROJ_B, params["proj_b"][d])
        vec = setrow(vec, base + ROW_FC2_B, params["fc2_b"][d])
        vec = setrow(vec, base + ROW_FC1_B, params["fc1_b"][d])
    vec = setrow(vec, ROW_LNF_G, params["lnf_g"])
    vec = setrow(vec, ROW_LNF_B, params["lnf_b"])
    vec = setrow(vec, ROW_HEAD1_B0, params["head1_b"][0, :LANE])
    vec = setrow(vec, ROW_HEAD1_B1, params["head1_b"][0, LANE:])
    vec = setrow(vec, ROW_HEAD2_B, params["head2_b"])

    # Per-head QKV weights/biases (timm qkv column layout: [q|k|v], head-major within each).
    qkv_wh = []
    for d in range(DEPTH):
        for t in range(3):
            for hh in range(HEADS):
                lo = t * EMBED + hh * HEAD_DIM
                qkv_wh.append(params["qkv_w"][d, :, lo:lo + HEAD_DIM])
                vec = setrow(vec, ROW_QKV_B0 + (d * 3 + t) * HEADS + hh,
                             params["qkv_b"][d, 0, lo:lo + HEAD_DIM])
    qkv_wh = jnp.stack(qkv_wh, axis=0).astype(f32)      # (DEPTH*3*HEADS, EMBED, HEAD_DIM)

    blk_w = jnp.zeros((DEPTH, BW_ROWS, LANE), f32)
    for d in range(DEPTH):
        blk_w = blk_w.at[d, BW_PROJ:BW_PROJ + EMBED, :EMBED].set(params["proj_w"][d])
        blk_w = blk_w.at[d, BW_FC1:BW_FC1 + EMBED, :MLP_HIDDEN].set(params["fc1_w"][d])
        blk_w = blk_w.at[d, BW_FC2:BW_FC2 + MLP_HIDDEN, :EMBED].set(params["fc2_w"][d])

    add_mat = jnp.concatenate(
        [params["cls_token"] + params["pos_embed"][0:1],
         params["patch_b"] + params["pos_embed"][1:]], axis=0).astype(f32)   # (TOKENS, EMBED)

    return misc_w, vec, qkv_wh, blk_w, add_mat


# ----------------------------------------------------------------------------
# Forward
# ----------------------------------------------------------------------------
def vit_forward(x, params, *, max_pack=8):
    """max_pack = samples packed per grid step (raise to ~15 on v6e/v7x's 256-row MXU)."""
    B = x.shape[0]
    x = x.astype(jnp.float32)

    # Batch packing: T samples per grid step -> M = T*TOKENS matmul rows.  Keep >= 2 grid steps
    # whenever B >= 2 so the "parallel" axis feeds both v7x TensorCores.
    steps = max(2, _cdiv(B, max_pack)) if B >= 2 else 1
    T = _cdiv(B, steps)
    steps = _cdiv(B, T)
    Bpad = steps * T
    M = T * TOKENS

    misc_w, vec, qkv_wh, blk_w, add_mat = _build_weight_slabs(params)
    add_full = jnp.tile(add_mat, (T, 1))                                    # (M, EMBED)

    # Block-diagonal additive mask keeping packed samples independent in attention.
    sid = jnp.repeat(jnp.arange(T, dtype=jnp.int32), TOKENS)
    mask = jnp.where(sid[:, None] == sid[None, :], 0.0, NEG_INF).astype(jnp.float32)  # (M, M)

    if Bpad != B:
        x = jnp.concatenate([x, jnp.zeros((Bpad - B,) + x.shape[1:], jnp.float32)], axis=0)
    patches = patchify(x)                                                   # (Bpad, P, PATCH_DIM)
    patches_tok = jnp.concatenate(
        [jnp.zeros((Bpad, 1, PATCH_DIM), jnp.float32), patches], axis=1)    # (Bpad, TOKENS, PD)
    patches_tok = patches_tok.reshape(steps, M, PATCH_DIM)

    def full_spec(a):
        return pl.BlockSpec(a.shape, lambda s, _nd=a.ndim: (0,) * _nd)

    out = pl.pallas_call(
        _vit_fused_kernel,
        grid=(steps,),
        in_specs=[
            pl.BlockSpec((1, M, PATCH_DIM), lambda s: (s, 0, 0)),
            full_spec(add_full),
            full_spec(mask),
            full_spec(misc_w),
            full_spec(vec),
            full_spec(qkv_wh),
            full_spec(blk_w),
        ],
        out_specs=pl.BlockSpec((1, M, LANE), lambda s: (s, 0, 0)),
        out_shape=jax.ShapeDtypeStruct((steps, M, LANE), jnp.float32),
        compiler_params=pltpu.CompilerParams(dimension_semantics=("parallel",)),
    )(patches_tok, add_full, mask, misc_w, vec, qkv_wh, blk_w)

    # Host-side extraction: cls-token rows, first TARGET_SIZE lanes, drop batch padding.
    logits = out.reshape(steps, T, TOKENS, LANE)[:, :, 0, :TARGET_SIZE]
    return logits.reshape(Bpad, TARGET_SIZE)[:B]


# ----------------------------------------------------------------------------
# Entry point
# ----------------------------------------------------------------------------
if __name__ == "__main__":
    key = jax.random.PRNGKey(0)
    pkey, xkey = jax.random.split(key)
    params = init_params(pkey)
    x = jax.random.normal(xkey, (2, IN_CHANS, IMG, IMG), dtype=jnp.float32)   # NCHW input

    fwd = jax.jit(lambda xx: vit_forward(xx, params))
    out = jax.block_until_ready(fwd(x))
    assert out.shape == (2, TARGET_SIZE), out.shape
    assert bool(jnp.all(jnp.isfinite(out)))
    print("KERNEL_OK")
</pallas_src>

<mosaic_0001>
module attributes {stable_mosaic.version = 11 : i64} {
  func.func @_vit_fused_kernel(%arg0: i32, %arg1: memref<1x17x48xf32, #tpu.memory_space<vmem>>, %arg2: memref<17x32xf32, #tpu.memory_space<vmem>>, %arg3: memref<17x17xf32, #tpu.memory_space<vmem>>, %arg4: memref<368x128xf32, #tpu.memory_space<vmem>>, %arg5: memref<48x128xf32, #tpu.memory_space<vmem>>, %arg6: memref<24x32x8xf32, #tpu.memory_space<vmem>>, %arg7: memref<2x192x128xf32, #tpu.memory_space<vmem>>, %arg8: memref<1x17x128xf32, #tpu.memory_space<vmem>>) attributes {dimension_semantics = [#tpu.dimension_semantics<parallel>], iteration_bounds = array<i64: 2>, scalar_prefetch = 0 : i64, scratch_operands = 0 : i64, tpu.core_type = #tpu.core_type<tc>, window_params = [{transform_indices = @transform_0, window_bounds = array<i64: 1, 17, 48>}, {pipeline_mode = #tpu.pipeline_mode<synchronous>, transform_indices = @transform_1, window_bounds = array<i64: 17, 32>}, {pipeline_mode = #tpu.pipeline_mode<synchronous>, transform_indices = @transform_2, window_bounds = array<i64: 17, 17>}, {pipeline_mode = #tpu.pipeline_mode<synchronous>, transform_indices = @transform_3, window_bounds = array<i64: 368, 128>}, {pipeline_mode = #tpu.pipeline_mode<synchronous>, transform_indices = @transform_4, window_bounds = array<i64: 48, 128>}, {pipeline_mode = #tpu.pipeline_mode<synchronous>, transform_indices = @transform_5, window_bounds = array<i64: 24, 32, 8>}, {pipeline_mode = #tpu.pipeline_mode<synchronous>, transform_indices = @transform_6, window_bounds = array<i64: 2, 192, 128>}, {transform_indices = @transform_7, window_bounds = array<i64: 1, 17, 128>}]} {
    %c0 = arith.constant 0 : index
    %c0_0 = arith.constant 0 : index
    %0 = vector.load %arg4[%c0, %c0_0] : memref<368x128xf32, #tpu.memory_space<vmem>>, vector<48x32xf32>
    %c0_1 = arith.constant 0 : index
    %c0_2 = arith.constant 0 : index
    %c0_3 = arith.constant 0 : index
    %1 = vector.load %arg1[%c0_1, %c0_2, %c0_3] : memref<1x17x48xf32, #tpu.memory_space<vmem>>, vector<1x17x48xf32>
    %2 = vector.shape_cast %1 : vector<1x17x48xf32> to vector<17x48xf32>
    %cst = arith.constant dense<0.000000e+00> : vector<17x32xf32>
    %3 = tpu.matmul %2, %0, %cst {dimension_numbers = #tpu.dot_dimension_numbers<[1], [0], [0], [1], [0, 0, 1, 1], [], []>} : vector<17x48xf32>, vector<48x32xf32>, vector<17x32xf32> -> vector<17x32xf32>
    %c0_4 = arith.constant 0 : index
    %c0_5 = arith.constant 0 : index
    %4 = vector.load %arg2[%c0_4, %c0_5] : memref<17x32xf32, #tpu.memory_space<vmem>>, vector<17x32xf32>
    %5 = arith.addf %3, %4 : vector<17x32xf32>
    %c0_6 = arith.constant 0 : index
    %c0_7 = arith.constant 0 : index
    %6 = vector.load %arg3[%c0_6, %c0_7] : memref<17x17xf32, #tpu.memory_space<vmem>>, vector<17x17xf32>
    %c0_8 = arith.constant 0 : index
    %c0_9 = arith.constant 0 : index
    %7 = vector.load %arg5[%c0_8, %c0_9] : memref<48x128xf32, #tpu.memory_space<vmem>>, vector<1x32xf32>
    %c1 = arith.constant 1 : index
    %c0_10 = arith.constant 0 : index
    %8 = vector.load %arg5[%c1, %c0_10] : memref<48x128xf32, #tpu.memory_space<vmem>>, vector<1x32xf32>
    %cst_11 = arith.constant dense<0.000000e+00> : vector<17xf32>
    %9 = vector.multi_reduction <add>, %5, %cst_11 [1] : vector<17x32xf32> to vector<17xf32>
    %10 = vector.shape_cast %9 : vector<17xf32> to vector<17x1xf32>
    %cst_12 = arith.constant 3.200000e+01 : f32
    %11 = vector.broadcast %cst_12 : f32 to vector<17x1xf32>
    %12 = arith.divf %10, %11 : vector<17x1xf32>
    %13 = vector.broadcast %12 : vector<17x1xf32> to vector<17x32xf32>
    %14 = arith.subf %5, %13 : vector<17x32xf32>
    %15 = arith.mulf %14, %14 : vector<17x32xf32>
    %cst_13 = arith.constant dense<0.000000e+00> : vector<17xf32>
    %16 = vector.multi_reduction <add>, %15, %cst_13 [1] : vector<17x32xf32> to vector<17xf32>
    %17 = vector.shape_cast %16 : vector<17xf32> to vector<17x1xf32>
    %cst_14 = arith.constant 3.200000e+01 : f32
    %18 = vector.broadcast %cst_14 : f32 to vector<17x1xf32>
    %19 = arith.divf %17, %18 : vector<17x1xf32>
    %cst_15 = arith.constant 9.99999997E-7 : f32
    %20 = vector.broadcast %cst_15 : f32 to vector<17x1xf32>
    %21 = arith.addf %19, %20 : vector<17x1xf32>
    %22 = math.rsqrt %21 : vector<17x1xf32>
    %23 = vector.broadcast %22 : vector<17x1xf32> to vector<17x32xf32>
    %24 = arith.mulf %14, %23 : vector<17x32xf32>
    %25 = vector.broadcast %7 : vector<1x32xf32> to vector<17x32xf32>
    %26 = arith.mulf %24, %25 : vector<17x32xf32>
    %27 = vector.broadcast %8 : vector<1x32xf32> to vector<17x32xf32>
    %28 = arith.addf %26, %27 : vector<17x32xf32>
    %c0_16 = arith.constant 0 : index
    %c0_17 = arith.constant 0 : index
    %c0_18 = arith.constant 0 : index
    %29 = vector.load %arg6[%c0_16, %c0_17, %c0_18] : memref<24x32x8xf32, #tpu.memory_space<vmem>>, vector<1x32x8xf32>
    %30 = vector.shape_cast %29 : vector<1x32x8xf32> to vector<32x8xf32>
    %cst_19 = arith.constant dense<0.000000e+00> : vector<17x8xf32>
    %31 = tpu.matmul %28, %30, %cst_19 {dimension_numbers = #tpu.dot_dimension_numbers<[1], [0], [0], [1], [0, 0, 1, 1], [], []>} : vector<17x32xf32>, vector<32x8xf32>, vector<17x8xf32> -> vector<17x8xf32>
    %c24 = arith.constant 24 : index
    %c0_20 = arith.constant 0 : index
    %32 = vector.load %arg5[%c24, %c0_20] : memref<48x128xf32, #tpu.memory_space<vmem>>, vector<1x8xf32>
    %33 = vector.broadcast %32 : vector<1x8xf32> to vector<17x8xf32>
    %34 = arith.addf %31, %33 : vector<17x8xf32>
    %c4 = arith.constant 4 : index
    %c0_21 = arith.constant 0 : index
    %c0_22 = arith.constant 0 : index
    %35 = vector.load %arg6[%c4, %c0_21, %c0_22] : memref<24x32x8xf32, #tpu.memory_space<vmem>>, vector<1x32x8xf32>
    %36 = vector.shape_cast %35 : vector<1x32x8xf32> to vector<32x8xf32>
    %cst_23 = arith.constant dense<0.000000e+00> : vector<17x8xf32>
    %37 = tpu.matmul %28, %36, %cst_23 {dimension_numbers = #tpu.dot_dimension_numbers<[1], [0], [0], [1], [0, 0, 1, 1], [], []>} : vector<17x32xf32>, vector<32x8xf32>, vector<17x8xf32> -> vector<17x8xf32>
    %c28 = arith.constant 28 : index
    %c0_24 = arith.constant 0 : index
    %38 = vector.load %arg5[%c28, %c0_24] : memref<48x128xf32, #tpu.memory_space<vmem>>, vector<1x8xf32>
    %39 = vector.broadcast %38 : vector<1x8xf32> to vector<17x8xf32>
    %40 = arith.addf %37, %39 : vector<17x8xf32>
    %c8 = arith.constant 8 : index
    %c0_25 = arith.constant 0 : index
    %c0_26 = arith.constant 0 : index
    %41 = vector.load %arg6[%c8, %c0_25, %c0_26] : memref<24x32x8xf32, #tpu.memory_space<vmem>>, vector<1x32x8xf32>
    %42 = vector.shape_cast %41 : vector<1x32x8xf32> to vector<32x8xf32>
    %cst_27 = arith.constant dense<0.000000e+00> : vector<17x8xf32>
    %43 = tpu.matmul %28, %42, %cst_27 {dimension_numbers = #tpu.dot_dimension_numbers<[1], [0], [0], [1], [0, 0, 1, 1], [], []>} : vector<17x32xf32>, vector<32x8xf32>, vector<17x8xf32> -> vector<17x8xf32>
    %c32 = arith.constant 32 : index
    %c0_28 = arith.constant 0 : index
    %44 = vector.load %arg5[%c32, %c0_28] : memref<48x128xf32, #tpu.memory_space<vmem>>, vector<1x8xf32>
    %45 = vector.broadcast %44 : vector<1x8xf32> to vector<17x8xf32>
    %46 = arith.addf %43, %45 : vector<17x8xf32>
    %cst_29 = arith.constant dense<0.000000e+00> : vector<17x17xf32>
    %47 = tpu.matmul %34, %40, %cst_29 {dimension_numbers = #tpu.dot_dimension_numbers<[1], [1], [0], [0], [0, 0, 1, 0], [], []>} : vector<17x8xf32>, vector<17x8xf32>, vector<17x17xf32> -> vector<17x17xf32>
    %cst_30 = arith.constant 0.353553385 : f32
    %48 = vector.broadcast %cst_30 : f32 to vector<17x17xf32>
    %49 = arith.mulf %47, %48 : vector<17x17xf32>
    %50 = arith.addf %49, %6 : vector<17x17xf32>
    %cst_31 = arith.constant dense<0xFF800000> : vector<17xf32>
    %51 = vector.multi_reduction <maximumf>, %50, %cst_31 [1] : vector<17x17xf32> to vector<17xf32>
    %52 = vector.shape_cast %51 : vector<17xf32> to vector<17x1xf32>
    %53 = vector.broadcast %52 : vector<17x1xf32> to vector<17x17xf32>
    %54 = arith.subf %50, %53 : vector<17x17xf32>
    %55 = math.exp %54 : vector<17x17xf32>
    %cst_32 = arith.constant dense<0.000000e+00> : vector<17xf32>
    %56 = vector.multi_reduction <add>, %55, %cst_32 [1] : vector<17x17xf32> to vector<17xf32>
    %57 = vector.shape_cast %56 : vector<17xf32> to vector<17x1xf32>
    %58 = tpu.reciprocal %57 {approx = true} : vector<17x1xf32> -> vector<17x1xf32>
    %59 = vector.broadcast %58 : vector<17x1xf32> to vector<17x17xf32>
    %60 = arith.mulf %55, %59 : vector<17x17xf32>
    %cst_33 = arith.constant dense<0.000000e+00> : vector<17x8xf32>
    %61 = tpu.matmul %60, %46, %cst_33 {dimension_numbers = #tpu.dot_dimension_numbers<[1], [0], [0], [1], [0, 0, 1, 1], [], []>} : vector<17x17xf32>, vector<17x8xf32>, vector<17x8xf32> -> vector<17x8xf32>
    %c0_34 = arith.constant 0 : index
    %c0_35 = arith.constant 0 : index
    %c0_36 = arith.constant 0 : index
    %62 = vector.load %arg7[%c0_34, %c0_35, %c0_36] : memref<2x192x128xf32, #tpu.memory_space<vmem>>, vector<1x8x32xf32>
    %63 = vector.shape_cast %62 : vector<1x8x32xf32> to vector<8x32xf32>
    %cst_37 = arith.constant dense<0.000000e+00> : vector<17x32xf32>
    %64 = tpu.matmul %61, %63, %cst_37 {dimension_numbers = #tpu.dot_dimension_numbers<[1], [0], [0], [1], [0, 0, 1, 1], [], []>} : vector<17x8xf32>, vector<8x32xf32>, vector<17x32xf32> -> vector<17x32xf32>
    %c1_38 = arith.constant 1 : index
    %c0_39 = arith.constant 0 : index
    %c0_40 = arith.constant 0 : index
    %65 = vector.load %arg6[%c1_38, %c0_39, %c0_40] : memref<24x32x8xf32, #tpu.memory_space<vmem>>, vector<1x32x8xf32>
    %66 = vector.shape_cast %65 : vector<1x32x8xf32> to vector<32x8xf32>
    %cst_41 = arith.constant dense<0.000000e+00> : vector<17x8xf32>
    %67 = tpu.matmul %28, %66, %cst_41 {dimension_numbers = #tpu.dot_dimension_numbers<[1], [0], [0], [1], [0, 0, 1, 1], [], []>} : vector<17x32xf32>, vector<32x8xf32>, vector<17x8xf32> -> vector<17x8xf32>
    %c25 = arith.constant 25 : index
    %c0_42 = arith.constant 0 : index
    %68 = vector.load %arg5[%c25, %c0_42] : memref<48x128xf32, #tpu.memory_space<vmem>>, vector<1x8xf32>
    %69 = vector.broadcast %68 : vector<1x8xf32> to vector<17x8xf32>
    %70 = arith.addf %67, %69 : vector<17x8xf32>
    %c5 = arith.constant 5 : index
    %c0_43 = arith.constant 0 : index
    %c0_44 = arith.constant 0 : index
    %71 = vector.load %arg6[%c5, %c0_43, %c0_44] : memref<24x32x8xf32, #tpu.memory_space<vmem>>, vector<1x32x8xf32>
    %72 = vector.shape_cast %71 : vector<1x32x8xf32> to vector<32x8xf32>
    %cst_45 = arith.constant dense<0.000000e+00> : vector<17x8xf32>
    %73 = tpu.matmul %28, %72, %cst_45 {dimension_numbers = #tpu.dot_dimension_numbers<[1], [0], [0], [1], [0, 0, 1, 1], [], []>} : vector<17x32xf32>, vector<32x8xf32>, vector<17x8xf32> -> vector<17x8xf32>
    %c29 = arith.constant 29 : index
    %c0_46 = arith.constant 0 : index
    %74 = vector.load %arg5[%c29, %c0_46] : memref<48x128xf32, #tpu.memory_space<vmem>>, vector<1x8xf32>
    %75 = vector.broadcast %74 : vector<1x8xf32> to vector<17x8xf32>
    %76 = arith.addf %73, %75 : vector<17x8xf32>
    %c9 = arith.constant 9 : index
    %c0_47 = arith.constant 0 : index
    %c0_48 = arith.constant 0 : index
    %77 = vector.load %arg6[%c9, %c0_47, %c0_48] : memref<24x32x8xf32, #tpu.memory_space<vmem>>, vector<1x32x8xf32>
    %78 = vector.shape_cast %77 : vector<1x32x8xf32> to vector<32x8xf32>
    %cst_49 = arith.constant dense<0.000000e+00> : vector<17x8xf32>
    %79 = tpu.matmul %28, %78, %cst_49 {dimension_numbers = #tpu.dot_dimension_numbers<[1], [0], [0], [1], [0, 0, 1, 1], [], []>} : vector<17x32xf32>, vector<32x8xf32>, vector<17x8xf32> -> vector<17x8xf32>
    %c33 = arith.constant 33 : index
    %c0_50 = arith.constant 0 : index
    %80 = vector.load %arg5[%c33, %c0_50] : memref<48x128xf32, #tpu.memory_space<vmem>>, vector<1x8xf32>
    %81 = vector.broadcast %80 : vector<1x8xf32> to vector<17x8xf32>
    %82 = arith.addf %79, %81 : vector<17x8xf32>
    %cst_51 = arith.constant dense<0.000000e+00> : vector<17x17xf32>
    %83 = tpu.matmul %70, %76, %cst_51 {dimension_numbers = #tpu.dot_dimension_numbers<[1], [1], [0], [0], [0, 0, 1, 0], [], []>} : vector<17x8xf32>, vector<17x8xf32>, vector<17x17xf32> -> vector<17x17xf32>
    %cst_52 = arith.constant 0.353553385 : f32
    %84 = vector.broadcast %cst_52 : f32 to vector<17x17xf32>
    %85 = arith.mulf %83, %84 : vector<17x17xf32>
    %86 = arith.addf %85, %6 : vector<17x17xf32>
    %cst_53 = arith.constant dense<0xFF800000> : vector<17xf32>
    %87 = vector.multi_reduction <maximumf>, %86, %cst_53 [1] : vector<17x17xf32> to vector<17xf32>
    %88 = vector.shape_cast %87 : vector<17xf32> to vector<17x1xf32>
    %89 = vector.broadcast %88 : vector<17x1xf32> to vector<17x17xf32>
    %90 = arith.subf %86, %89 : vector<17x17xf32>
    %91 = math.exp %90 : vector<17x17xf32>
    %cst_54 = arith.constant dense<0.000000e+00> : vector<17xf32>
    %92 = vector.multi_reduction <add>, %91, %cst_54 [1] : vector<17x17xf32> to vector<17xf32>
    %93 = vector.shape_cast %92 : vector<17xf32> to vector<17x1xf32>
    %94 = tpu.reciprocal %93 {approx = true} : vector<17x1xf32> -> vector<17x1xf32>
    %95 = vector.broadcast %94 : vector<17x1xf32> to vector<17x17xf32>
    %96 = arith.mulf %91, %95 : vector<17x17xf32>
    %cst_55 = arith.constant dense<0.000000e+00> : vector<17x8xf32>
    %97 = tpu.matmul %96, %82, %cst_55 {dimension_numbers = #tpu.dot_dimension_numbers<[1], [0], [0], [1], [0, 0, 1, 1], [], []>} : vector<17x17xf32>, vector<17x8xf32>, vector<17x8xf32> -> vector<17x8xf32>
    %c0_56 = arith.constant 0 : index
    %c8_57 = arith.constant 8 : index
    %c0_58 = arith.constant 0 : index
    %98 = vector.load %arg7[%c0_56, %c8_57, %c0_58] : memref<2x192x128xf32, #tpu.memory_space<vmem>>, vector<1x8x32xf32>
    %99 = vector.shape_cast %98 : vector<1x8x32xf32> to vector<8x32xf32>
    %cst_59 = arith.constant dense<0.000000e+00> : vector<17x32xf32>
    %100 = tpu.matmul %97, %99, %cst_59 {dimension_numbers = #tpu.dot_dimension_numbers<[1], [0], [0], [1], [0, 0, 1, 1], [], []>} : vector<17x8xf32>, vector<8x32xf32>, vector<17x32xf32> -> vector<17x32xf32>
    %101 = arith.addf %64, %100 : vector<17x32xf32>
    %c2 = arith.constant 2 : index
    %c0_60 = arith.constant 0 : index
    %c0_61 = arith.constant 0 : index
    %102 = vector.load %arg6[%c2, %c0_60, %c0_61] : memref<24x32x8xf32, #tpu.memory_space<vmem>>, vector<1x32x8xf32>
    %103 = vector.shape_cast %102 : vector<1x32x8xf32> to vector<32x8xf32>
    %cst_62 = arith.constant dense<0.000000e+00> : vector<17x8xf32>
    %104 = tpu.matmul %28, %103, %cst_62 {dimension_numbers = #tpu.dot_dimension_numbers<[1], [0], [0], [1], [0, 0, 1, 1], [], []>} : vector<17x32xf32>, vector<32x8xf32>, vector<17x8xf32> -> vector<17x8xf32>
    %c26 = arith.constant 26 : index
    %c0_63 = arith.constant 0 : index
    %105 = vector.load %arg5[%c26, %c0_63] : memref<48x128xf32, #tpu.memory_space<vmem>>, vector<1x8xf32>
    %106 = vector.broadcast %105 : vector<1x8xf32> to vector<17x8xf32>
    %107 = arith.addf %104, %106 : vector<17x8xf32>
    %c6 = arith.constant 6 : index
    %c0_64 = arith.constant 0 : index
    %c0_65 = arith.constant 0 : index
    %108 = vector.load %arg6[%c6, %c0_64, %c0_65] : memref<24x32x8xf32, #tpu.memory_space<vmem>>, vector<1x32x8xf32>
    %109 = vector.shape_cast %108 : vector<1x32x8xf32> to vector<32x8xf32>
    %cst_66 = arith.constant dense<0.000000e+00> : vector<17x8xf32>
    %110 = tpu.matmul %28, %109, %cst_66 {dimension_numbers = #tpu.dot_dimension_numbers<[1], [0], [0], [1], [0, 0, 1, 1], [], []>} : vector<17x32xf32>, vector<32x8xf32>, vector<17x8xf32> -> vector<17x8xf32>
    %c30 = arith.constant 30 : index
    %c0_67 = arith.constant 0 : index
    %111 = vector.load %arg5[%c30, %c0_67] : memref<48x128xf32, #tpu.memory_space<vmem>>, vector<1x8xf32>
    %112 = vector.broadcast %111 : vector<1x8xf32> to vector<17x8xf32>
    %113 = arith.addf %110, %112 : vector<17x8xf32>
    %c10 = arith.constant 10 : index
    %c0_68 = arith.constant 0 : index
    %c0_69 = arith.constant 0 : index
    %114 = vector.load %arg6[%c10, %c0_68, %c0_69] : memref<24x32x8xf32, #tpu.memory_space<vmem>>, vector<1x32x8xf32>
    %115 = vector.shape_cast %114 : vector<1x32x8xf32> to vector<32x8xf32>
    %cst_70 = arith.constant dense<0.000000e+00> : vector<17x8xf32>
    %116 = tpu.matmul %28, %115, %cst_70 {dimension_numbers = #tpu.dot_dimension_numbers<[1], [0], [0], [1], [0, 0, 1, 1], [], []>} : vector<17x32xf32>, vector<32x8xf32>, vector<17x8xf32> -> vector<17x8xf32>
    %c34 = arith.constant 34 : index
    %c0_71 = arith.constant 0 : index
    %117 = vector.load %arg5[%c34, %c0_71] : memref<48x128xf32, #tpu.memory_space<vmem>>, vector<1x8xf32>
    %118 = vector.broadcast %117 : vector<1x8xf32> to vector<17x8xf32>
    %119 = arith.addf %116, %118 : vector<17x8xf32>
    %cst_72 = arith.constant dense<0.000000e+00> : vector<17x17xf32>
    %120 = tpu.matmul %107, %113, %cst_72 {dimension_numbers = #tpu.dot_dimension_numbers<[1], [1], [0], [0], [0, 0, 1, 0], [], []>} : vector<17x8xf32>, vector<17x8xf32>, vector<17x17xf32> -> vector<17x17xf32>
    %cst_73 = arith.constant 0.353553385 : f32
    %121 = vector.broadcast %cst_73 : f32 to vector<17x17xf32>
    %122 = arith.mulf %120, %121 : vector<17x17xf32>
    %123 = arith.addf %122, %6 : vector<17x17xf32>
    %cst_74 = arith.constant dense<0xFF800000> : vector<17xf32>
    %124 = vector.multi_reduction <maximumf>, %123, %cst_74 [1] : vector<17x17xf32> to vector<17xf32>
    %125 = vector.shape_cast %124 : vector<17xf32> to vector<17x1xf32>
    %126 = vector.broadcast %125 : vector<17x1xf32> to vector<17x17xf32>
    %127 = arith.subf %123, %126 : vector<17x17xf32>
    %128 = math.exp %127 : vector<17x17xf32>
    %cst_75 = arith.constant dense<0.000000e+00> : vector<17xf32>
    %129 = vector.multi_reduction <add>, %128, %cst_75 [1] : vector<17x17xf32> to vector<17xf32>
    %130 = vector.shape_cast %129 : vector<17xf32> to vector<17x1xf32>
    %131 = tpu.reciprocal %130 {approx = true} : vector<17x1xf32> -> vector<17x1xf32>
    %132 = vector.broadcast %131 : vector<17x1xf32> to vector<17x17xf32>
    %133 = arith.mulf %128, %132 : vector<17x17xf32>
    %cst_76 = arith.constant dense<0.000000e+00> : vector<17x8xf32>
    %134 = tpu.matmul %133, %119, %cst_76 {dimension_numbers = #tpu.dot_dimension_numbers<[1], [0], [0], [1], [0, 0, 1, 1], [], []>} : vector<17x17xf32>, vector<17x8xf32>, vector<17x8xf32> -> vector<17x8xf32>
    %c0_77 = arith.constant 0 : index
    %c16 = arith.constant 16 : index
    %c0_78 = arith.constant 0 : index
    %135 = vector.load %arg7[%c0_77, %c16, %c0_78] : memref<2x192x128xf32, #tpu.memory_space<vmem>>, vector<1x8x32xf32>
    %136 = vector.shape_cast %135 : vector<1x8x32xf32> to vector<8x32xf32>
    %cst_79 = arith.constant dense<0.000000e+00> : vector<17x32xf32>
    %137 = tpu.matmul %134, %136, %cst_79 {dimension_numbers = #tpu.dot_dimension_numbers<[1], [0], [0], [1], [0, 0, 1, 1], [], []>} : vector<17x8xf32>, vector<8x32xf32>, vector<17x32xf32> -> vector<17x32xf32>
    %138 = arith.addf %101, %137 : vector<17x32xf32>
    %c3 = arith.constant 3 : index
    %c0_80 = arith.constant 0 : index
    %c0_81 = arith.constant 0 : index
    %139 = vector.load %arg6[%c3, %c0_80, %c0_81] : memref<24x32x8xf32, #tpu.memory_space<vmem>>, vector<1x32x8xf32>
    %140 = vector.shape_cast %139 : vector<1x32x8xf32> to vector<32x8xf32>
    %cst_82 = arith.constant dense<0.000000e+00> : vector<17x8xf32>
    %141 = tpu.matmul %28, %140, %cst_82 {dimension_numbers = #tpu.dot_dimension_numbers<[1], [0], [0], [1], [0, 0, 1, 1], [], []>} : vector<17x32xf32>, vector<32x8xf32>, vector<17x8xf32> -> vector<17x8xf32>
    %c27 = arith.constant 27 : index
    %c0_83 = arith.constant 0 : index
    %142 = vector.load %arg5[%c27, %c0_83] : memref<48x128xf32, #tpu.memory_space<vmem>>, vector<1x8xf32>
    %143 = vector.broadcast %142 : vector<1x8xf32> to vector<17x8xf32>
    %144 = arith.addf %141, %143 : vector<17x8xf32>
    %c7 = arith.constant 7 : index
    %c0_84 = arith.constant 0 : index
    %c0_85 = arith.constant 0 : index
    %145 = vector.load %arg6[%c7, %c0_84, %c0_85] : memref<24x32x8xf32, #tpu.memory_space<vmem>>, vector<1x32x8xf32>
    %146 = vector.shape_cast %145 : vector<1x32x8xf32> to vector<32x8xf32>
    %cst_86 = arith.constant dense<0.000000e+00> : vector<17x8xf32>
    %147 = tpu.matmul %28, %146, %cst_86 {dimension_numbers = #tpu.dot_dimension_numbers<[1], [0], [0], [1], [0, 0, 1, 1], [], []>} : vector<17x32xf32>, vector<32x8xf32>, vector<17x8xf32> -> vector<17x8xf32>
    %c31 = arith.constant 31 : index
    %c0_87 = arith.constant 0 : index
    %148 = vector.load %arg5[%c31, %c0_87] : memref<48x128xf32, #tpu.memory_space<vmem>>, vector<1x8xf32>
    %149 = vector.broadcast %148 : vector<1x8xf32> to vector<17x8xf32>
    %150 = arith.addf %147, %149 : vector<17x8xf32>
    %c11 = arith.constant 11 : index
    %c0_88 = arith.constant 0 : index
    %c0_89 = arith.constant 0 : index
    %151 = vector.load %arg6[%c11, %c0_88, %c0_89] : memref<24x32x8xf32, #tpu.memory_space<vmem>>, vector<1x32x8xf32>
    %152 = vector.shape_cast %151 : vector<1x32x8xf32> to vector<32x8xf32>
    %cst_90 = arith.constant dense<0.000000e+00> : vector<17x8xf32>
    %153 = tpu.matmul %28, %152, %cst_90 {dimension_numbers = #tpu.dot_dimension_numbers<[1], [0], [0], [1], [0, 0, 1, 1], [], []>} : vector<17x32xf32>, vector<32x8xf32>, vector<17x8xf32> -> vector<17x8xf32>
    %c35 = arith.constant 35 : index
    %c0_91 = arith.constant 0 : index
    %154 = vector.load %arg5[%c35, %c0_91] : memref<48x128xf32, #tpu.memory_space<vmem>>, vector<1x8xf32>
    %155 = vector.broadcast %154 : vector<1x8xf32> to vector<17x8xf32>
    %156 = arith.addf %153, %155 : vector<17x8xf32>
    %cst_92 = arith.constant dense<0.000000e+00> : vector<17x17xf32>
    %157 = tpu.matmul %144, %150, %cst_92 {dimension_numbers = #tpu.dot_dimension_numbers<[1], [1], [0], [0], [0, 0, 1, 0], [], []>} : vector<17x8xf32>, vector<17x8xf32>, vector<17x17xf32> -> vector<17x17xf32>
    %cst_93 = arith.constant 0.353553385 : f32
    %158 = vector.broadcast %cst_93 : f32 to vector<17x17xf32>
    %159 = arith.mulf %157, %158 : vector<17x17xf32>
    %160 = arith.addf %159, %6 : vector<17x17xf32>
    %cst_94 = arith.constant dense<0xFF800000> : vector<17xf32>
    %161 = vector.multi_reduction <maximumf>, %160, %cst_94 [1] : vector<17x17xf32> to vector<17xf32>
    %162 = vector.shape_cast %161 : vector<17xf32> to vector<17x1xf32>
    %163 = vector.broadcast %162 : vector<17x1xf32> to vector<17x17xf32>
    %164 = arith.subf %160, %163 : vector<17x17xf32>
    %165 = math.exp %164 : vector<17x17xf32>
    %cst_95 = arith.constant dense<0.000000e+00> : vector<17xf32>
    %166 = vector.multi_reduction <add>, %165, %cst_95 [1] : vector<17x17xf32> to vector<17xf32>
    %167 = vector.shape_cast %166 : vector<17xf32> to vector<17x1xf32>
    %168 = tpu.reciprocal %167 {approx = true} : vector<17x1xf32> -> vector<17x1xf32>
    %169 = vector.broadcast %168 : vector<17x1xf32> to vector<17x17xf32>
    %170 = arith.mulf %165, %169 : vector<17x17xf32>
    %cst_96 = arith.constant dense<0.000000e+00> : vector<17x8xf32>
    %171 = tpu.matmul %170, %156, %cst_96 {dimension_numbers = #tpu.dot_dimension_numbers<[1], [0], [0], [1], [0, 0, 1, 1], [], []>} : vector<17x17xf32>, vector<17x8xf32>, vector<17x8xf32> -> vector<17x8xf32>
    %c0_97 = arith.constant 0 : index
    %c24_98 = arith.constant 24 : index
    %c0_99 = arith.constant 0 : index
    %172 = vector.load %arg7[%c0_97, %c24_98, %c0_99] : memref<2x192x128xf32, #tpu.memory_space<vmem>>, vector<1x8x32xf32>
    %173 = vector.shape_cast %172 : vector<1x8x32xf32> to vector<8x32xf32>
    %cst_100 = arith.constant dense<0.000000e+00> : vector<17x32xf32>
    %174 = tpu.matmul %171, %173, %cst_100 {dimension_numbers = #tpu.dot_dimension_numbers<[1], [0], [0], [1], [0, 0, 1, 1], [], []>} : vector<17x8xf32>, vector<8x32xf32>, vector<17x32xf32> -> vector<17x32xf32>
    %175 = arith.addf %138, %174 : vector<17x32xf32>
    %176 = arith.addf %5, %175 : vector<17x32xf32>
    %c4_101 = arith.constant 4 : index
    %c0_102 = arith.constant 0 : index
    %177 = vector.load %arg5[%c4_101, %c0_102] : memref<48x128xf32, #tpu.memory_space<vmem>>, vector<1x32xf32>
    %178 = vector.broadcast %177 : vector<1x32xf32> to vector<17x32xf32>
    %179 = arith.addf %176, %178 : vector<17x32xf32>
    %c2_103 = arith.constant 2 : index
    %c0_104 = arith.constant 0 : index
    %180 = vector.load %arg5[%c2_103, %c0_104] : memref<48x128xf32, #tpu.memory_space<vmem>>, vector<1x32xf32>
    %c3_105 = arith.constant 3 : index
    %c0_106 = arith.constant 0 : index
    %181 = vector.load %arg5[%c3_105, %c0_106] : memref<48x128xf32, #tpu.memory_space<vmem>>, vector<1x32xf32>
    %cst_107 = arith.constant dense<0.000000e+00> : vector<17xf32>
    %182 = vector.multi_reduction <add>, %179, %cst_107 [1] : vector<17x32xf32> to vector<17xf32>
    %183 = vector.shape_cast %182 : vector<17xf32> to vector<17x1xf32>
    %cst_108 = arith.constant 3.200000e+01 : f32
    %184 = vector.broadcast %cst_108 : f32 to vector<17x1xf32>
    %185 = arith.divf %183, %184 : vector<17x1xf32>
    %186 = vector.broadcast %185 : vector<17x1xf32> to vector<17x32xf32>
    %187 = arith.subf %179, %186 : vector<17x32xf32>
    %188 = arith.mulf %187, %187 : vector<17x32xf32>
    %cst_109 = arith.constant dense<0.000000e+00> : vector<17xf32>
    %189 = vector.multi_reduction <add>, %188, %cst_109 [1] : vector<17x32xf32> to vector<17xf32>
    %190 = vector.shape_cast %189 : vector<17xf32> to vector<17x1xf32>
    %cst_110 = arith.constant 3.200000e+01 : f32
    %191 = vector.broadcast %cst_110 : f32 to vector<17x1xf32>
    %192 = arith.divf %190, %191 : vector<17x1xf32>
    %cst_111 = arith.constant 9.99999997E-7 : f32
    %193 = vector.broadcast %cst_111 : f32 to vector<17x1xf32>
    %194 = arith.addf %192, %193 : vector<17x1xf32>
    %195 = math.rsqrt %194 : vector<17x1xf32>
    %196 = vector.broadcast %195 : vector<17x1xf32> to vector<17x32xf32>
    %197 = arith.mulf %187, %196 : vector<17x32xf32>
    %198 = vector.broadcast %180 : vector<1x32xf32> to vector<17x32xf32>
    %199 = arith.mulf %197, %198 : vector<17x32xf32>
    %200 = vector.broadcast %181 : vector<1x32xf32> to vector<17x32xf32>
    %201 = arith.addf %199, %200 : vector<17x32xf32>
    %c0_112 = arith.constant 0 : index
    %c32_113 = arith.constant 32 : index
    %c0_114 = arith.constant 0 : index
    %202 = vector.load %arg7[%c0_112, %c32_113, %c0_114] : memref<2x192x128xf32, #tpu.memory_space<vmem>>, vector<1x32x128xf32>
    %203 = vector.shape_cast %202 : vector<1x32x128xf32> to vector<32x128xf32>
    %cst_115 = arith.constant dense<0.000000e+00> : vector<17x128xf32>
    %204 = tpu.matmul %201, %203, %cst_115 {dimension_numbers = #tpu.dot_dimension_numbers<[1], [0], [0], [1], [0, 0, 1, 1], [], []>} : vector<17x32xf32>, vector<32x128xf32>, vector<17x128xf32> -> vector<17x128xf32>
    %c6_116 = arith.constant 6 : index
    %c0_117 = arith.constant 0 : index
    %205 = vector.load %arg5[%c6_116, %c0_117] : memref<48x128xf32, #tpu.memory_space<vmem>>, vector<1x128xf32>
    %206 = vector.broadcast %205 : vector<1x128xf32> to vector<17x128xf32>
    %207 = arith.addf %204, %206 : vector<17x128xf32>
    %208 = arith.mulf %207, %207 : vector<17x128xf32>
    %209 = arith.mulf %207, %208 : vector<17x128xf32>
    %cst_118 = arith.constant 4.471500e-02 : f32
    %210 = vector.broadcast %cst_118 : f32 to vector<17x128xf32>
    %211 = arith.mulf %210, %209 : vector<17x128xf32>
    %212 = arith.addf %207, %211 : vector<17x128xf32>
    %cst_119 = arith.constant 0.797884583 : f32
    %213 = vector.broadcast %cst_119 : f32 to vector<17x128xf32>
    %214 = arith.mulf %213, %212 : vector<17x128xf32>
    %215 = math.tanh %214 : vector<17x128xf32>
    %cst_120 = arith.constant 1.000000e+00 : f32
    %216 = vector.broadcast %cst_120 : f32 to vector<17x128xf32>
    %217 = arith.addf %216, %215 : vector<17x128xf32>
    %cst_121 = arith.constant 5.000000e-01 : f32
    %218 = vector.broadcast %cst_121 : f32 to vector<17x128xf32>
    %219 = arith.mulf %218, %217 : vector<17x128xf32>
    %220 = arith.mulf %207, %219 : vector<17x128xf32>
    %c0_122 = arith.constant 0 : index
    %c64 = arith.constant 64 : index
    %c0_123 = arith.constant 0 : index
    %221 = vector.load %arg7[%c0_122, %c64, %c0_123] : memref<2x192x128xf32, #tpu.memory_space<vmem>>, vector<1x128x32xf32>
    %222 = vector.shape_cast %221 : vector<1x128x32xf32> to vector<128x32xf32>
    %cst_124 = arith.constant dense<0.000000e+00> : vector<17x32xf32>
    %223 = tpu.matmul %220, %222, %cst_124 {dimension_numbers = #tpu.dot_dimension_numbers<[1], [0], [0], [1], [0, 0, 1, 1], [], []>} : vector<17x128xf32>, vector<128x32xf32>, vector<17x32xf32> -> vector<17x32xf32>
    %c5_125 = arith.constant 5 : index
    %c0_126 = arith.constant 0 : index
    %224 = vector.load %arg5[%c5_125, %c0_126] : memref<48x128xf32, #tpu.memory_space<vmem>>, vector<1x32xf32>
    %225 = vector.broadcast %224 : vector<1x32xf32> to vector<17x32xf32>
    %226 = arith.addf %223, %225 : vector<17x32xf32>
    %227 = arith.addf %179, %226 : vector<17x32xf32>
    %c8_127 = arith.constant 8 : index
    %c0_128 = arith.constant 0 : index
    %228 = vector.load %arg5[%c8_127, %c0_128] : memref<48x128xf32, #tpu.memory_space<vmem>>, vector<1x32xf32>
    %c9_129 = arith.constant 9 : index
    %c0_130 = arith.constant 0 : index
    %229 = vector.load %arg5[%c9_129, %c0_130] : memref<48x128xf32, #tpu.memory_space<vmem>>, vector<1x32xf32>
    %cst_131 = arith.constant dense<0.000000e+00> : vector<17xf32>
    %230 = vector.multi_reduction <add>, %227, %cst_131 [1] : vector<17x32xf32> to vector<17xf32>
    %231 = vector.shape_cast %230 : vector<17xf32> to vector<17x1xf32>
    %cst_132 = arith.constant 3.200000e+01 : f32
    %232 = vector.broadcast %cst_132 : f32 to vector<17x1xf32>
    %233 = arith.divf %231, %232 : vector<17x1xf32>
    %234 = vector.broadcast %233 : vector<17x1xf32> to vector<17x32xf32>
    %235 = arith.subf %227, %234 : vector<17x32xf32>
    %236 = arith.mulf %235, %235 : vector<17x32xf32>
    %cst_133 = arith.constant dense<0.000000e+00> : vector<17xf32>
    %237 = vector.multi_reduction <add>, %236, %cst_133 [1] : vector<17x32xf32> to vector<17xf32>
    %238 = vector.shape_cast %237 : vector<17xf32> to vector<17x1xf32>
    %cst_134 = arith.constant 3.200000e+01 : f32
    %239 = vector.broadcast %cst_134 : f32 to vector<17x1xf32>
    %240 = arith.divf %238, %239 : vector<17x1xf32>
    %cst_135 = arith.constant 9.99999997E-7 : f32
    %241 = vector.broadcast %cst_135 : f32 to vector<17x1xf32>
    %242 = arith.addf %240, %241 : vector<17x1xf32>
    %243 = math.rsqrt %242 : vector<17x1xf32>
    %244 = vector.broadcast %243 : vector<17x1xf32> to vector<17x32xf32>
    %245 = arith.mulf %235, %244 : vector<17x32xf32>
    %246 = vector.broadcast %228 : vector<1x32xf32> to vector<17x32xf32>
    %247 = arith.mulf %245, %246 : vector<17x32xf32>
    %248 = vector.broadcast %229 : vector<1x32xf32> to vector<17x32xf32>
    %249 = arith.addf %247, %248 : vector<17x32xf32>
    %c12 = arith.constant 12 : index
    %c0_136 = arith.constant 0 : index
    %c0_137 = arith.constant 0 : index
    %250 = vector.load %arg6[%c12, %c0_136, %c0_137] : memref<24x32x8xf32, #tpu.memory_space<vmem>>, vector<1x32x8xf32>
    %251 = vector.shape_cast %250 : vector<1x32x8xf32> to vector<32x8xf32>
    %cst_138 = arith.constant dense<0.000000e+00> : vector<17x8xf32>
    %252 = tpu.matmul %249, %251, %cst_138 {dimension_numbers = #tpu.dot_dimension_numbers<[1], [0], [0], [1], [0, 0, 1, 1], [], []>} : vector<17x32xf32>, vector<32x8xf32>, vector<17x8xf32> -> vector<17x8xf32>
    %c36 = arith.constant 36 : index
    %c0_139 = arith.constant 0 : index
    %253 = vector.load %arg5[%c36, %c0_139] : memref<48x128xf32, #tpu.memory_space<vmem>>, vector<1x8xf32>
    %254 = vector.broadcast %253 : vector<1x8xf32> to vector<17x8xf32>
    %255 = arith.addf %252, %254 : vector<17x8xf32>
    %c16_140 = arith.constant 16 : index
    %c0_141 = arith.constant 0 : index
    %c0_142 = arith.constant 0 : index
    %256 = vector.load %arg6[%c16_140, %c0_141, %c0_142] : memref<24x32x8xf32, #tpu.memory_space<vmem>>, vector<1x32x8xf32>
    %257 = vector.shape_cast %256 : vector<1x32x8xf32> to vector<32x8xf32>
    %cst_143 = arith.constant dense<0.000000e+00> : vector<17x8xf32>
    %258 = tpu.matmul %249, %257, %cst_143 {dimension_numbers = #tpu.dot_dimension_numbers<[1], [0], [0], [1], [0, 0, 1, 1], [], []>} : vector<17x32xf32>, vector<32x8xf32>, vector<17x8xf32> -> vector<17x8xf32>
    %c40 = arith.constant 40 : index
    %c0_144 = arith.constant 0 : index
    %259 = vector.load %arg5[%c40, %c0_144] : memref<48x128xf32, #tpu.memory_space<vmem>>, vector<1x8xf32>
    %260 = vector.broadcast %259 : vector<1x8xf32> to vector<17x8xf32>
    %261 = arith.addf %258, %260 : vector<17x8xf32>
    %c20 = arith.constant 20 : index
    %c0_145 = arith.constant 0 : index
    %c0_146 = arith.constant 0 : index
    %262 = vector.load %arg6[%c20, %c0_145, %c0_146] : memref<24x32x8xf32, #tpu.memory_space<vmem>>, vector<1x32x8xf32>
    %263 = vector.shape_cast %262 : vector<1x32x8xf32> to vector<32x8xf32>
    %cst_147 = arith.constant dense<0.000000e+00> : vector<17x8xf32>
    %264 = tpu.matmul %249, %263, %cst_147 {dimension_numbers = #tpu.dot_dimension_numbers<[1], [0], [0], [1], [0, 0, 1, 1], [], []>} : vector<17x32xf32>, vector<32x8xf32>, vector<17x8xf32> -> vector<17x8xf32>
    %c44 = arith.constant 44 : index
    %c0_148 = arith.constant 0 : index
    %265 = vector.load %arg5[%c44, %c0_148] : memref<48x128xf32, #tpu.memory_space<vmem>>, vector<1x8xf32>
    %266 = vector.broadcast %265 : vector<1x8xf32> to vector<17x8xf32>
    %267 = arith.addf %264, %266 : vector<17x8xf32>
    %cst_149 = arith.constant dense<0.000000e+00> : vector<17x17xf32>
    %268 = tpu.matmul %255, %261, %cst_149 {dimension_numbers = #tpu.dot_dimension_numbers<[1], [1], [0], [0], [0, 0, 1, 0], [], []>} : vector<17x8xf32>, vector<17x8xf32>, vector<17x17xf32> -> vector<17x17xf32>
    %cst_150 = arith.constant 0.353553385 : f32
    %269 = vector.broadcast %cst_150 : f32 to vector<17x17xf32>
    %270 = arith.mulf %268, %269 : vector<17x17xf32>
    %271 = arith.addf %270, %6 : vector<17x17xf32>
    %cst_151 = arith.constant dense<0xFF800000> : vector<17xf32>
    %272 = vector.multi_reduction <maximumf>, %271, %cst_151 [1] : vector<17x17xf32> to vector<17xf32>
    %273 = vector.shape_cast %272 : vector<17xf32> to vector<17x1xf32>
    %274 = vector.broadcast %273 : vector<17x1xf32> to vector<17x17xf32>
    %275 = arith.subf %271, %274 : vector<17x17xf32>
    %276 = math.exp %275 : vector<17x17xf32>
    %cst_152 = arith.constant dense<0.000000e+00> : vector<17xf32>
    %277 = vector.multi_reduction <add>, %276, %cst_152 [1] : vector<17x17xf32> to vector<17xf32>
    %278 = vector.shape_cast %277 : vector<17xf32> to vector<17x1xf32>
    %279 = tpu.reciprocal %278 {approx = true} : vector<17x1xf32> -> vector<17x1xf32>
    %280 = vector.broadcast %279 : vector<17x1xf32> to vector<17x17xf32>
    %281 = arith.mulf %276, %280 : vector<17x17xf32>
    %cst_153 = arith.constant dense<0.000000e+00> : vector<17x8xf32>
    %282 = tpu.matmul %281, %267, %cst_153 {dimension_numbers = #tpu.dot_dimension_numbers<[1], [0], [0], [1], [0, 0, 1, 1], [], []>} : vector<17x17xf32>, vector<17x8xf32>, vector<17x8xf32> -> vector<17x8xf32>
    %c1_154 = arith.constant 1 : index
    %c0_155 = arith.constant 0 : index
    %c0_156 = arith.constant 0 : index
    %283 = vector.load %arg7[%c1_154, %c0_155, %c0_156] : memref<2x192x128xf32, #tpu.memory_space<vmem>>, vector<1x8x32xf32>
    %284 = vector.shape_cast %283 : vector<1x8x32xf32> to vector<8x32xf32>
    %cst_157 = arith.constant dense<0.000000e+00> : vector<17x32xf32>
    %285 = tpu.matmul %282, %284, %cst_157 {dimension_numbers = #tpu.dot_dimension_numbers<[1], [0], [0], [1], [0, 0, 1, 1], [], []>} : vector<17x8xf32>, vector<8x32xf32>, vector<17x32xf32> -> vector<17x32xf32>
    %c13 = arith.constant 13 : index
    %c0_158 = arith.constant 0 : index
    %c0_159 = arith.constant 0 : index
    %286 = vector.load %arg6[%c13, %c0_158, %c0_159] : memref<24x32x8xf32, #tpu.memory_space<vmem>>, vector<1x32x8xf32>
    %287 = vector.shape_cast %286 : vector<1x32x8xf32> to vector<32x8xf32>
    %cst_160 = arith.constant dense<0.000000e+00> : vector<17x8xf32>
    %288 = tpu.matmul %249, %287, %cst_160 {dimension_numbers = #tpu.dot_dimension_numbers<[1], [0], [0], [1], [0, 0, 1, 1], [], []>} : vector<17x32xf32>, vector<32x8xf32>, vector<17x8xf32> -> vector<17x8xf32>
    %c37 = arith.constant 37 : index
    %c0_161 = arith.constant 0 : index
    %289 = vector.load %arg5[%c37, %c0_161] : memref<48x128xf32, #tpu.memory_space<vmem>>, vector<1x8xf32>
    %290 = vector.broadcast %289 : vector<1x8xf32> to vector<17x8xf32>
    %291 = arith.addf %288, %290 : vector<17x8xf32>
    %c17 = arith.constant 17 : index
    %c0_162 = arith.constant 0 : index
    %c0_163 = arith.constant 0 : index
    %292 = vector.load %arg6[%c17, %c0_162, %c0_163] : memref<24x32x8xf32, #tpu.memory_space<vmem>>, vector<1x32x8xf32>
    %293 = vector.shape_cast %292 : vector<1x32x8xf32> to vector<32x8xf32>
    %cst_164 = arith.constant dense<0.000000e+00> : vector<17x8xf32>
    %294 = tpu.matmul %249, %293, %cst_164 {dimension_numbers = #tpu.dot_dimension_numbers<[1], [0], [0], [1], [0, 0, 1, 1], [], []>} : vector<17x32xf32>, vector<32x8xf32>, vector<17x8xf32> -> vector<17x8xf32>
    %c41 = arith.constant 41 : index
    %c0_165 = arith.constant 0 : index
    %295 = vector.load %arg5[%c41, %c0_165] : memref<48x128xf32, #tpu.memory_space<vmem>>, vector<1x8xf32>
    %296 = vector.broadcast %295 : vector<1x8xf32> to vector<17x8xf32>
    %297 = arith.addf %294, %296 : vector<17x8xf32>
    %c21 = arith.constant 21 : index
    %c0_166 = arith.constant 0 : index
    %c0_167 = arith.constant 0 : index
    %298 = vector.load %arg6[%c21, %c0_166, %c0_167] : memref<24x32x8xf32, #tpu.memory_space<vmem>>, vector<1x32x8xf32>
    %299 = vector.shape_cast %298 : vector<1x32x8xf32> to vector<32x8xf32>
    %cst_168 = arith.constant dense<0.000000e+00> : vector<17x8xf32>
    %300 = tpu.matmul %249, %299, %cst_168 {dimension_numbers = #tpu.dot_dimension_numbers<[1], [0], [0], [1], [0, 0, 1, 1], [], []>} : vector<17x32xf32>, vector<32x8xf32>, vector<17x8xf32> -> vector<17x8xf32>
    %c45 = arith.constant 45 : index
    %c0_169 = arith.constant 0 : index
    %301 = vector.load %arg5[%c45, %c0_169] : memref<48x128xf32, #tpu.memory_space<vmem>>, vector<1x8xf32>
    %302 = vector.broadcast %301 : vector<1x8xf32> to vector<17x8xf32>
    %303 = arith.addf %300, %302 : vector<17x8xf32>
    %cst_170 = arith.constant dense<0.000000e+00> : vector<17x17xf32>
    %304 = tpu.matmul %291, %297, %cst_170 {dimension_numbers = #tpu.dot_dimension_numbers<[1], [1], [0], [0], [0, 0, 1, 0], [], []>} : vector<17x8xf32>, vector<17x8xf32>, vector<17x17xf32> -> vector<17x17xf32>
    %cst_171 = arith.constant 0.353553385 : f32
    %305 = vector.broadcast %cst_171 : f32 to vector<17x17xf32>
    %306 = arith.mulf %304, %305 : vector<17x17xf32>
    %307 = arith.addf %306, %6 : vector<17x17xf32>
    %cst_172 = arith.constant dense<0xFF800000> : vector<17xf32>
    %308 = vector.multi_reduction <maximumf>, %307, %cst_172 [1] : vector<17x17xf32> to vector<17xf32>
    %309 = vector.shape_cast %308 : vector<17xf32> to vector<17x1xf32>
    %310 = vector.broadcast %309 : vector<17x1xf32> to vector<17x17xf32>
    %311 = arith.subf %307, %310 : vector<17x17xf32>
    %312 = math.exp %311 : vector<17x17xf32>
    %cst_173 = arith.constant dense<0.000000e+00> : vector<17xf32>
    %313 = vector.multi_reduction <add>, %312, %cst_173 [1] : vector<17x17xf32> to vector<17xf32>
    %314 = vector.shape_cast %313 : vector<17xf32> to vector<17x1xf32>
    %315 = tpu.reciprocal %314 {approx = true} : vector<17x1xf32> -> vector<17x1xf32>
    %316 = vector.broadcast %315 : vector<17x1xf32> to vector<17x17xf32>
    %317 = arith.mulf %312, %316 : vector<17x17xf32>
    %cst_174 = arith.constant dense<0.000000e+00> : vector<17x8xf32>
    %318 = tpu.matmul %317, %303, %cst_174 {dimension_numbers = #tpu.dot_dimension_numbers<[1], [0], [0], [1], [0, 0, 1, 1], [], []>} : vector<17x17xf32>, vector<17x8xf32>, vector<17x8xf32> -> vector<17x8xf32>
    %c1_175 = arith.constant 1 : index
    %c8_176 = arith.constant 8 : index
    %c0_177 = arith.constant 0 : index
    %319 = vector.load %arg7[%c1_175, %c8_176, %c0_177] : memref<2x192x128xf32, #tpu.memory_space<vmem>>, vector<1x8x32xf32>
    %320 = vector.shape_cast %319 : vector<1x8x32xf32> to vector<8x32xf32>
    %cst_178 = arith.constant dense<0.000000e+00> : vector<17x32xf32>
    %321 = tpu.matmul %318, %320, %cst_178 {dimension_numbers = #tpu.dot_dimension_numbers<[1], [0], [0], [1], [0, 0, 1, 1], [], []>} : vector<17x8xf32>, vector<8x32xf32>, vector<17x32xf32> -> vector<17x32xf32>
    %322 = arith.addf %285, %321 : vector<17x32xf32>
    %c14 = arith.constant 14 : index
    %c0_179 = arith.constant 0 : index
    %c0_180 = arith.constant 0 : index
    %323 = vector.load %arg6[%c14, %c0_179, %c0_180] : memref<24x32x8xf32, #tpu.memory_space<vmem>>, vector<1x32x8xf32>
    %324 = vector.shape_cast %323 : vector<1x32x8xf32> to vector<32x8xf32>
    %cst_181 = arith.constant dense<0.000000e+00> : vector<17x8xf32>
    %325 = tpu.matmul %249, %324, %cst_181 {dimension_numbers = #tpu.dot_dimension_numbers<[1], [0], [0], [1], [0, 0, 1, 1], [], []>} : vector<17x32xf32>, vector<32x8xf32>, vector<17x8xf32> -> vector<17x8xf32>
    %c38 = arith.constant 38 : index
    %c0_182 = arith.constant 0 : index
    %326 = vector.load %arg5[%c38, %c0_182] : memref<48x128xf32, #tpu.memory_space<vmem>>, vector<1x8xf32>
    %327 = vector.broadcast %326 : vector<1x8xf32> to vector<17x8xf32>
    %328 = arith.addf %325, %327 : vector<17x8xf32>
    %c18 = arith.constant 18 : index
    %c0_183 = arith.constant 0 : index
    %c0_184 = arith.constant 0 : index
    %329 = vector.load %arg6[%c18, %c0_183, %c0_184] : memref<24x32x8xf32, #tpu.memory_space<vmem>>, vector<1x32x8xf32>
    %330 = vector.shape_cast %329 : vector<1x32x8xf32> to vector<32x8xf32>
    %cst_185 = arith.constant dense<0.000000e+00> : vector<17x8xf32>
    %331 = tpu.matmul %249, %330, %cst_185 {dimension_numbers = #tpu.dot_dimension_numbers<[1], [0], [0], [1], [0, 0, 1, 1], [], []>} : vector<17x32xf32>, vector<32x8xf32>, vector<17x8xf32> -> vector<17x8xf32>
    %c42 = arith.constant 42 : index
    %c0_186 = arith.constant 0 : index
    %332 = vector.load %arg5[%c42, %c0_186] : memref<48x128xf32, #tpu.memory_space<vmem>>, vector<1x8xf32>
    %333 = vector.broadcast %332 : vector<1x8xf32> to vector<17x8xf32>
    %334 = arith.addf %331, %333 : vector<17x8xf32>
    %c22 = arith.constant 22 : index
    %c0_187 = arith.constant 0 : index
    %c0_188 = arith.constant 0 : index
    %335 = vector.load %arg6[%c22, %c0_187, %c0_188] : memref<24x32x8xf32, #tpu.memory_space<vmem>>, vector<1x32x8xf32>
    %336 = vector.shape_cast %335 : vector<1x32x8xf32> to vector<32x8xf32>
    %cst_189 = arith.constant dense<0.000000e+00> : vector<17x8xf32>
    %337 = tpu.matmul %249, %336, %cst_189 {dimension_numbers = #tpu.dot_dimension_numbers<[1], [0], [0], [1], [0, 0, 1, 1], [], []>} : vector<17x32xf32>, vector<32x8xf32>, vector<17x8xf32> -> vector<17x8xf32>
    %c46 = arith.constant 46 : index
    %c0_190 = arith.constant 0 : index
    %338 = vector.load %arg5[%c46, %c0_190] : memref<48x128xf32, #tpu.memory_space<vmem>>, vector<1x8xf32>
    %339 = vector.broadcast %338 : vector<1x8xf32> to vector<17x8xf32>
    %340 = arith.addf %337, %339 : vector<17x8xf32>
    %cst_191 = arith.constant dense<0.000000e+00> : vector<17x17xf32>
    %341 = tpu.matmul %328, %334, %cst_191 {dimension_numbers = #tpu.dot_dimension_numbers<[1], [1], [0], [0], [0, 0, 1, 0], [], []>} : vector<17x8xf32>, vector<17x8xf32>, vector<17x17xf32> -> vector<17x17xf32>
    %cst_192 = arith.constant 0.353553385 : f32
    %342 = vector.broadcast %cst_192 : f32 to vector<17x17xf32>
    %343 = arith.mulf %341, %342 : vector<17x17xf32>
    %344 = arith.addf %343, %6 : vector<17x17xf32>
    %cst_193 = arith.constant dense<0xFF800000> : vector<17xf32>
    %345 = vector.multi_reduction <maximumf>, %344, %cst_193 [1] : vector<17x17xf32> to vector<17xf32>
    %346 = vector.shape_cast %345 : vector<17xf32> to vector<17x1xf32>
    %347 = vector.broadcast %346 : vector<17x1xf32> to vector<17x17xf32>
    %348 = arith.subf %344, %347 : vector<17x17xf32>
    %349 = math.exp %348 : vector<17x17xf32>
    %cst_194 = arith.constant dense<0.000000e+00> : vector<17xf32>
    %350 = vector.multi_reduction <add>, %349, %cst_194 [1] : vector<17x17xf32> to vector<17xf32>
    %351 = vector.shape_cast %350 : vector<17xf32> to vector<17x1xf32>
    %352 = tpu.reciprocal %351 {approx = true} : vector<17x1xf32> -> vector<17x1xf32>
    %353 = vector.broadcast %352 : vector<17x1xf32> to vector<17x17xf32>
    %354 = arith.mulf %349, %353 : vector<17x17xf32>
    %cst_195 = arith.constant dense<0.000000e+00> : vector<17x8xf32>
    %355 = tpu.matmul %354, %340, %cst_195 {dimension_numbers = #tpu.dot_dimension_numbers<[1], [0], [0], [1], [0, 0, 1, 1], [], []>} : vector<17x17xf32>, vector<17x8xf32>, vector<17x8xf32> -> vector<17x8xf32>
    %c1_196 = arith.constant 1 : index
    %c16_197 = arith.constant 16 : index
    %c0_198 = arith.constant 0 : index
    %356 = vector.load %arg7[%c1_196, %c16_197, %c0_198] : memref<2x192x128xf32, #tpu.memory_space<vmem>>, vector<1x8x32xf32>
    %357 = vector.shape_cast %356 : vector<1x8x32xf32> to vector<8x32xf32>
    %cst_199 = arith.constant dense<0.000000e+00> : vector<17x32xf32>
    %358 = tpu.matmul %355, %357, %cst_199 {dimension_numbers = #tpu.dot_dimension_numbers<[1], [0], [0], [1], [0, 0, 1, 1], [], []>} : vector<17x8xf32>, vector<8x32xf32>, vector<17x32xf32> -> vector<17x32xf32>
    %359 = arith.addf %322, %358 : vector<17x32xf32>
    %c15 = arith.constant 15 : index
    %c0_200 = arith.constant 0 : index
    %c0_201 = arith.constant 0 : index
    %360 = vector.load %arg6[%c15, %c0_200, %c0_201] : memref<24x32x8xf32, #tpu.memory_space<vmem>>, vector<1x32x8xf32>
    %361 = vector.shape_cast %360 : vector<1x32x8xf32> to vector<32x8xf32>
    %cst_202 = arith.constant dense<0.000000e+00> : vector<17x8xf32>
    %362 = tpu.matmul %249, %361, %cst_202 {dimension_numbers = #tpu.dot_dimension_numbers<[1], [0], [0], [1], [0, 0, 1, 1], [], []>} : vector<17x32xf32>, vector<32x8xf32>, vector<17x8xf32> -> vector<17x8xf32>
    %c39 = arith.constant 39 : index
    %c0_203 = arith.constant 0 : index
    %363 = vector.load %arg5[%c39, %c0_203] : memref<48x128xf32, #tpu.memory_space<vmem>>, vector<1x8xf32>
    %364 = vector.broadcast %363 : vector<1x8xf32> to vector<17x8xf32>
    %365 = arith.addf %362, %364 : vector<17x8xf32>
    %c19 = arith.constant 19 : index
    %c0_204 = arith.constant 0 : index
    %c0_205 = arith.constant 0 : index
    %366 = vector.load %arg6[%c19, %c0_204, %c0_205] : memref<24x32x8xf32, #tpu.memory_space<vmem>>, vector<1x32x8xf32>
    %367 = vector.shape_cast %366 : vector<1x32x8xf32> to vector<32x8xf32>
    %cst_206 = arith.constant dense<0.000000e+00> : vector<17x8xf32>
    %368 = tpu.matmul %249, %367, %cst_206 {dimension_numbers = #tpu.dot_dimension_numbers<[1], [0], [0], [1], [0, 0, 1, 1], [], []>} : vector<17x32xf32>, vector<32x8xf32>, vector<17x8xf32> -> vector<17x8xf32>
    %c43 = arith.constant 43 : index
    %c0_207 = arith.constant 0 : index
    %369 = vector.load %arg5[%c43, %c0_207] : memref<48x128xf32, #tpu.memory_space<vmem>>, vector<1x8xf32>
    %370 = vector.broadcast %369 : vector<1x8xf32> to vector<17x8xf32>
    %371 = arith.addf %368, %370 : vector<17x8xf32>
    %c23 = arith.constant 23 : index
    %c0_208 = arith.constant 0 : index
    %c0_209 = arith.constant 0 : index
    %372 = vector.load %arg6[%c23, %c0_208, %c0_209] : memref<24x32x8xf32, #tpu.memory_space<vmem>>, vector<1x32x8xf32>
    %373 = vector.shape_cast %372 : vector<1x32x8xf32> to vector<32x8xf32>
    %cst_210 = arith.constant dense<0.000000e+00> : vector<17x8xf32>
    %374 = tpu.matmul %249, %373, %cst_210 {dimension_numbers = #tpu.dot_dimension_numbers<[1], [0], [0], [1], [0, 0, 1, 1], [], []>} : vector<17x32xf32>, vector<32x8xf32>, vector<17x8xf32> -> vector<17x8xf32>
    %c47 = arith.constant 47 : index
    %c0_211 = arith.constant 0 : index
    %375 = vector.load %arg5[%c47, %c0_211] : memref<48x128xf32, #tpu.memory_space<vmem>>, vector<1x8xf32>
    %376 = vector.broadcast %375 : vector<1x8xf32> to vector<17x8xf32>
    %377 = arith.addf %374, %376 : vector<17x8xf32>
    %cst_212 = arith.constant dense<0.000000e+00> : vector<17x17xf32>
    %378 = tpu.matmul %365, %371, %cst_212 {dimension_numbers = #tpu.dot_dimension_numbers<[1], [1], [0], [0], [0, 0, 1, 0], [], []>} : vector<17x8xf32>, vector<17x8xf32>, vector<17x17xf32> -> vector<17x17xf32>
    %cst_213 = arith.constant 0.353553385 : f32
    %379 = vector.broadcast %cst_213 : f32 to vector<17x17xf32>
    %380 = arith.mulf %378, %379 : vector<17x17xf32>
    %381 = arith.addf %380, %6 : vector<17x17xf32>
    %cst_214 = arith.constant dense<0xFF800000> : vector<17xf32>
    %382 = vector.multi_reduction <maximumf>, %381, %cst_214 [1] : vector<17x17xf32> to vector<17xf32>
    %383 = vector.shape_cast %382 : vector<17xf32> to vector<17x1xf32>
    %384 = vector.broadcast %383 : vector<17x1xf32> to vector<17x17xf32>
    %385 = arith.subf %381, %384 : vector<17x17xf32>
    %386 = math.exp %385 : vector<17x17xf32>
    %cst_215 = arith.constant dense<0.000000e+00> : vector<17xf32>
    %387 = vector.multi_reduction <add>, %386, %cst_215 [1] : vector<17x17xf32> to vector<17xf32>
    %388 = vector.shape_cast %387 : vector<17xf32> to vector<17x1xf32>
    %389 = tpu.reciprocal %388 {approx = true} : vector<17x1xf32> -> vector<17x1xf32>
    %390 = vector.broadcast %389 : vector<17x1xf32> to vector<17x17xf32>
    %391 = arith.mulf %386, %390 : vector<17x17xf32>
    %cst_216 = arith.constant dense<0.000000e+00> : vector<17x8xf32>
    %392 = tpu.matmul %391, %377, %cst_216 {dimension_numbers = #tpu.dot_dimension_numbers<[1], [0], [0], [1], [0, 0, 1, 1], [], []>} : vector<17x17xf32>, vector<17x8xf32>, vector<17x8xf32> -> vector<17x8xf32>
    %c1_217 = arith.constant 1 : index
    %c24_218 = arith.constant 24 : index
    %c0_219 = arith.constant 0 : index
    %393 = vector.load %arg7[%c1_217, %c24_218, %c0_219] : memref<2x192x128xf32, #tpu.memory_space<vmem>>, vector<1x8x32xf32>
    %394 = vector.shape_cast %393 : vector<1x8x32xf32> to vector<8x32xf32>
    %cst_220 = arith.constant dense<0.000000e+00> : vector<17x32xf32>
    %395 = tpu.matmul %392, %394, %cst_220 {dimension_numbers = #tpu.dot_dimension_numbers<[1], [0], [0], [1], [0, 0, 1, 1], [], []>} : vector<17x8xf32>, vector<8x32xf32>, vector<17x32xf32> -> vector<17x32xf32>
    %396 = arith.addf %359, %395 : vector<17x32xf32>
    %397 = arith.addf %227, %396 : vector<17x32xf32>
    %c12_221 = arith.constant 12 : index
    %c0_222 = arith.constant 0 : index
    %398 = vector.load %arg5[%c12_221, %c0_222] : memref<48x128xf32, #tpu.memory_space<vmem>>, vector<1x32xf32>
    %399 = vector.broadcast %398 : vector<1x32xf32> to vector<17x32xf32>
    %400 = arith.addf %397, %399 : vector<17x32xf32>
    %c10_223 = arith.constant 10 : index
    %c0_224 = arith.constant 0 : index
    %401 = vector.load %arg5[%c10_223, %c0_224] : memref<48x128xf32, #tpu.memory_space<vmem>>, vector<1x32xf32>
    %c11_225 = arith.constant 11 : index
    %c0_226 = arith.constant 0 : index
    %402 = vector.load %arg5[%c11_225, %c0_226] : memref<48x128xf32, #tpu.memory_space<vmem>>, vector<1x32xf32>
    %cst_227 = arith.constant dense<0.000000e+00> : vector<17xf32>
    %403 = vector.multi_reduction <add>, %400, %cst_227 [1] : vector<17x32xf32> to vector<17xf32>
    %404 = vector.shape_cast %403 : vector<17xf32> to vector<17x1xf32>
    %cst_228 = arith.constant 3.200000e+01 : f32
    %405 = vector.broadcast %cst_228 : f32 to vector<17x1xf32>
    %406 = arith.divf %404, %405 : vector<17x1xf32>
    %407 = vector.broadcast %406 : vector<17x1xf32> to vector<17x32xf32>
    %408 = arith.subf %400, %407 : vector<17x32xf32>
    %409 = arith.mulf %408, %408 : vector<17x32xf32>
    %cst_229 = arith.constant dense<0.000000e+00> : vector<17xf32>
    %410 = vector.multi_reduction <add>, %409, %cst_229 [1] : vector<17x32xf32> to vector<17xf32>
    %411 = vector.shape_cast %410 : vector<17xf32> to vector<17x1xf32>
    %cst_230 = arith.constant 3.200000e+01 : f32
    %412 = vector.broadcast %cst_230 : f32 to vector<17x1xf32>
    %413 = arith.divf %411, %412 : vector<17x1xf32>
    %cst_231 = arith.constant 9.99999997E-7 : f32
    %414 = vector.broadcast %cst_231 : f32 to vector<17x1xf32>
    %415 = arith.addf %413, %414 : vector<17x1xf32>
    %416 = math.rsqrt %415 : vector<17x1xf32>
    %417 = vector.broadcast %416 : vector<17x1xf32> to vector<17x32xf32>
    %418 = arith.mulf %408, %417 : vector<17x32xf32>
    %419 = vector.broadcast %401 : vector<1x32xf32> to vector<17x32xf32>
    %420 = arith.mulf %418, %419 : vector<17x32xf32>
    %421 = vector.broadcast %402 : vector<1x32xf32> to vector<17x32xf32>
    %422 = arith.addf %420, %421 : vector<17x32xf32>
    %c1_232 = arith.constant 1 : index
    %c32_233 = arith.constant 32 : index
    %c0_234 = arith.constant 0 : index
    %423 = vector.load %arg7[%c1_232, %c32_233, %c0_234] : memref<2x192x128xf32, #tpu.memory_space<vmem>>, vector<1x32x128xf32>
    %424 = vector.shape_cast %423 : vector<1x32x128xf32> to vector<32x128xf32>
    %cst_235 = arith.constant dense<0.000000e+00> : vector<17x128xf32>
    %425 = tpu.matmul %422, %424, %cst_235 {dimension_numbers = #tpu.dot_dimension_numbers<[1], [0], [0], [1], [0, 0, 1, 1], [], []>} : vector<17x32xf32>, vector<32x128xf32>, vector<17x128xf32> -> vector<17x128xf32>
    %c14_236 = arith.constant 14 : index
    %c0_237 = arith.constant 0 : index
    %426 = vector.load %arg5[%c14_236, %c0_237] : memref<48x128xf32, #tpu.memory_space<vmem>>, vector<1x128xf32>
    %427 = vector.broadcast %426 : vector<1x128xf32> to vector<17x128xf32>
    %428 = arith.addf %425, %427 : vector<17x128xf32>
    %429 = arith.mulf %428, %428 : vector<17x128xf32>
    %430 = arith.mulf %428, %429 : vector<17x128xf32>
    %cst_238 = arith.constant 4.471500e-02 : f32
    %431 = vector.broadcast %cst_238 : f32 to vector<17x128xf32>
    %432 = arith.mulf %431, %430 : vector<17x128xf32>
    %433 = arith.addf %428, %432 : vector<17x128xf32>
    %cst_239 = arith.constant 0.797884583 : f32
    %434 = vector.broadcast %cst_239 : f32 to vector<17x128xf32>
    %435 = arith.mulf %434, %433 : vector<17x128xf32>
    %436 = math.tanh %435 : vector<17x128xf32>
    %cst_240 = arith.constant 1.000000e+00 : f32
    %437 = vector.broadcast %cst_240 : f32 to vector<17x128xf32>
    %438 = arith.addf %437, %436 : vector<17x128xf32>
    %cst_241 = arith.constant 5.000000e-01 : f32
    %439 = vector.broadcast %cst_241 : f32 to vector<17x128xf32>
    %440 = arith.mulf %439, %438 : vector<17x128xf32>
    %441 = arith.mulf %428, %440 : vector<17x128xf32>
    %c1_242 = arith.constant 1 : index
    %c64_243 = arith.constant 64 : index
    %c0_244 = arith.constant 0 : index
    %442 = vector.load %arg7[%c1_242, %c64_243, %c0_244] : memref<2x192x128xf32, #tpu.memory_space<vmem>>, vector<1x128x32xf32>
    %443 = vector.shape_cast %442 : vector<1x128x32xf32> to vector<128x32xf32>
    %cst_245 = arith.constant dense<0.000000e+00> : vector<17x32xf32>
    %444 = tpu.matmul %441, %443, %cst_245 {dimension_numbers = #tpu.dot_dimension_numbers<[1], [0], [0], [1], [0, 0, 1, 1], [], []>} : vector<17x128xf32>, vector<128x32xf32>, vector<17x32xf32> -> vector<17x32xf32>
    %c13_246 = arith.constant 13 : index
    %c0_247 = arith.constant 0 : index
    %445 = vector.load %arg5[%c13_246, %c0_247] : memref<48x128xf32, #tpu.memory_space<vmem>>, vector<1x32xf32>
    %446 = vector.broadcast %445 : vector<1x32xf32> to vector<17x32xf32>
    %447 = arith.addf %444, %446 : vector<17x32xf32>
    %448 = arith.addf %400, %447 : vector<17x32xf32>
    %c16_248 = arith.constant 16 : index
    %c0_249 = arith.constant 0 : index
    %449 = vector.load %arg5[%c16_248, %c0_249] : memref<48x128xf32, #tpu.memory_space<vmem>>, vector<1x32xf32>
    %c17_250 = arith.constant 17 : index
    %c0_251 = arith.constant 0 : index
    %450 = vector.load %arg5[%c17_250, %c0_251] : memref<48x128xf32, #tpu.memory_space<vmem>>, vector<1x32xf32>
    %cst_252 = arith.constant dense<0.000000e+00> : vector<17xf32>
    %451 = vector.multi_reduction <add>, %448, %cst_252 [1] : vector<17x32xf32> to vector<17xf32>
    %452 = vector.shape_cast %451 : vector<17xf32> to vector<17x1xf32>
    %cst_253 = arith.constant 3.200000e+01 : f32
    %453 = vector.broadcast %cst_253 : f32 to vector<17x1xf32>
    %454 = arith.divf %452, %453 : vector<17x1xf32>
    %455 = vector.broadcast %454 : vector<17x1xf32> to vector<17x32xf32>
    %456 = arith.subf %448, %455 : vector<17x32xf32>
    %457 = arith.mulf %456, %456 : vector<17x32xf32>
    %cst_254 = arith.constant dense<0.000000e+00> : vector<17xf32>
    %458 = vector.multi_reduction <add>, %457, %cst_254 [1] : vector<17x32xf32> to vector<17xf32>
    %459 = vector.shape_cast %458 : vector<17xf32> to vector<17x1xf32>
    %cst_255 = arith.constant 3.200000e+01 : f32
    %460 = vector.broadcast %cst_255 : f32 to vector<17x1xf32>
    %461 = arith.divf %459, %460 : vector<17x1xf32>
    %cst_256 = arith.constant 9.99999997E-7 : f32
    %462 = vector.broadcast %cst_256 : f32 to vector<17x1xf32>
    %463 = arith.addf %461, %462 : vector<17x1xf32>
    %464 = math.rsqrt %463 : vector<17x1xf32>
    %465 = vector.broadcast %464 : vector<17x1xf32> to vector<17x32xf32>
    %466 = arith.mulf %456, %465 : vector<17x32xf32>
    %467 = vector.broadcast %449 : vector<1x32xf32> to vector<17x32xf32>
    %468 = arith.mulf %466, %467 : vector<17x32xf32>
    %469 = vector.broadcast %450 : vector<1x32xf32> to vector<17x32xf32>
    %470 = arith.addf %468, %469 : vector<17x32xf32>
    %c48 = arith.constant 48 : index
    %c0_257 = arith.constant 0 : index
    %471 = vector.load %arg4[%c48, %c0_257] : memref<368x128xf32, #tpu.memory_space<vmem>>, vector<32x128xf32>
    %cst_258 = arith.constant dense<0.000000e+00> : vector<17x128xf32>
    %472 = tpu.matmul %470, %471, %cst_258 {dimension_numbers = #tpu.dot_dimension_numbers<[1], [0], [0], [1], [0, 0, 1, 1], [], []>} : vector<17x32xf32>, vector<32x128xf32>, vector<17x128xf32> -> vector<17x128xf32>
    %c18_259 = arith.constant 18 : index
    %c0_260 = arith.constant 0 : index
    %473 = vector.load %arg5[%c18_259, %c0_260] : memref<48x128xf32, #tpu.memory_space<vmem>>, vector<1x128xf32>
    %474 = vector.broadcast %473 : vector<1x128xf32> to vector<17x128xf32>
    %475 = arith.addf %472, %474 : vector<17x128xf32>
    %c80 = arith.constant 80 : index
    %c0_261 = arith.constant 0 : index
    %476 = vector.load %arg4[%c80, %c0_261] : memref<368x128xf32, #tpu.memory_space<vmem>>, vector<32x128xf32>
    %cst_262 = arith.constant dense<0.000000e+00> : vector<17x128xf32>
    %477 = tpu.matmul %470, %476, %cst_262 {dimension_numbers = #tpu.dot_dimension_numbers<[1], [0], [0], [1], [0, 0, 1, 1], [], []>} : vector<17x32xf32>, vector<32x128xf32>, vector<17x128xf32> -> vector<17x128xf32>
    %c19_263 = arith.constant 19 : index
    %c0_264 = arith.constant 0 : index
    %478 = vector.load %arg5[%c19_263, %c0_264] : memref<48x128xf32, #tpu.memory_space<vmem>>, vector<1x128xf32>
    %479 = vector.broadcast %478 : vector<1x128xf32> to vector<17x128xf32>
    %480 = arith.addf %477, %479 : vector<17x128xf32>
    %cst_265 = arith.constant 0.000000e+00 : f32
    %481 = vector.broadcast %cst_265 : f32 to vector<17x128xf32>
    %482 = arith.maximumf %475, %481 : vector<17x128xf32>
    %cst_266 = arith.constant 0.000000e+00 : f32
    %483 = vector.broadcast %cst_266 : f32 to vector<17x128xf32>
    %484 = arith.maximumf %480, %483 : vector<17x128xf32>
    %c112 = arith.constant 112 : index
    %c0_267 = arith.constant 0 : index
    %485 = vector.load %arg4[%c112, %c0_267] : memref<368x128xf32, #tpu.memory_space<vmem>>, vector<128x128xf32>
    %cst_268 = arith.constant dense<0.000000e+00> : vector<17x128xf32>
    %486 = tpu.matmul %482, %485, %cst_268 {dimension_numbers = #tpu.dot_dimension_numbers<[1], [0], [0], [1], [0, 0, 1, 1], [], []>} : vector<17x128xf32>, vector<128x128xf32>, vector<17x128xf32> -> vector<17x128xf32>
    %c240 = arith.constant 240 : index
    %c0_269 = arith.constant 0 : index
    %487 = vector.load %arg4[%c240, %c0_269] : memref<368x128xf32, #tpu.memory_space<vmem>>, vector<128x128xf32>
    %cst_270 = arith.constant dense<0.000000e+00> : vector<17x128xf32>
    %488 = tpu.matmul %484, %487, %cst_270 {dimension_numbers = #tpu.dot_dimension_numbers<[1], [0], [0], [1], [0, 0, 1, 1], [], []>} : vector<17x128xf32>, vector<128x128xf32>, vector<17x128xf32> -> vector<17x128xf32>
    %489 = arith.addf %486, %488 : vector<17x128xf32>
    %c20_271 = arith.constant 20 : index
    %c0_272 = arith.constant 0 : index
    %490 = vector.load %arg5[%c20_271, %c0_272] : memref<48x128xf32, #tpu.memory_space<vmem>>, vector<1x128xf32>
    %491 = vector.broadcast %490 : vector<1x128xf32> to vector<17x128xf32>
    %492 = arith.addf %489, %491 : vector<17x128xf32>
    %c0_273 = arith.constant 0 : index
    %c0_274 = arith.constant 0 : index
    %c0_275 = arith.constant 0 : index
    %493 = vector.load %arg8[%c0_273, %c0_274, %c0_275] : memref<1x17x128xf32, #tpu.memory_space<vmem>>, vector<1x17x128xf32>
    %494 = vector.shape_cast %493 : vector<1x17x128xf32> to vector<17x128xf32>
    %495 = vector.shape_cast %492 : vector<17x128xf32> to vector<1x17x128xf32>
    tpu.vector_store %arg8[%c0_273, %c0_274, %c0_275], %495 {strides = array<i32>} : memref<1x17x128xf32, #tpu.memory_space<vmem>>, vector<1x17x128xf32>,
    return
  }
  func.func @transform_0(%arg0: i32) -> (i32, i32, i32) {
    %c0_i32 = arith.constant 0 : i32
    %c0_i32_0 = arith.constant 0 : i32
    %c0_i32_1 = arith.constant 0 : i32
    return %arg0, %c0_i32, %c0_i32_0 : i32, i32, i32
  }
  func.func @transform_1(%arg0: i32) -> (i32, i32) {
    %c0_i32 = arith.constant 0 : i32
    %c0_i32_0 = arith.constant 0 : i32
    %c0_i32_1 = arith.constant 0 : i32
    return %c0_i32, %c0_i32_0 : i32, i32
  }
  func.func @transform_2(%arg0: i32) -> (i32, i32) {
    %c0_i32 = arith.constant 0 : i32
    %c0_i32_0 = arith.constant 0 : i32
    %c0_i32_1 = arith.constant 0 : i32
    return %c0_i32, %c0_i32_0 : i32, i32
  }
  func.func @transform_3(%arg0: i32) -> (i32, i32) {
    %c0_i32 = arith.constant 0 : i32
    %c0_i32_0 = arith.constant 0 : i32
    %c0_i32_1 = arith.constant 0 : i32
    return %c0_i32, %c0_i32_0 : i32, i32
  }
  func.func @transform_4(%arg0: i32) -> (i32, i32) {
    %c0_i32 = arith.constant 0 : i32
    %c0_i32_0 = arith.constant 0 : i32
    %c0_i32_1 = arith.constant 0 : i32
    return %c0_i32, %c0_i32_0 : i32, i32
  }
  func.func @transform_5(%arg0: i32) -> (i32, i32, i32) {
    %c0_i32 = arith.constant 0 : i32
    %c0_i32_0 = arith.constant 0 : i32
    %c0_i32_1 = arith.constant 0 : i32
    %c0_i32_2 = arith.constant 0 : i32
    return %c0_i32, %c0_i32_0, %c0_i32_1 : i32, i32, i32
  }
  func.func @transform_6(%arg0: i32) -> (i32, i32, i32) {
    %c0_i32 = arith.constant 0 : i32
    %c0_i32_0 = arith.constant 0 : i32
    %c0_i32_1 = arith.constant 0 : i32
    %c0_i32_2 = arith.constant 0 : i32
    return %c0_i32, %c0_i32_0, %c0_i32_1 : i32, i32, i32
  }
  func.func @transform_7(%arg0: i32) -> (i32, i32, i32) {
    %c0_i32 = arith.constant 0 : i32
    %c0_i32_0 = arith.constant 0 : i32
    %c0_i32_1 = arith.constant 0 : i32
    return %arg0, %c0_i32, %c0_i32_0 : i32, i32, i32
  }
}

</mosaic_0001>

<bundles_post_ra>
// kernel: _lambda_.1
= control target key start
LH: loop header
LB: loop body
LE: loop exit
PB: predicated region body
PF: predicated region fallthrough
CT: control target
= control target key end

     0   :  { %s8629_s24 = smov 0   ;;  %s10391_s0 = inlined_call_operand.vmem [shape: f32[2,17,48], index: 0, kind: input, shape index: {}]   ;;  %s10392_s1 = inlined_call_operand.vmem [shape: f32[17,32], index: 1, kind: input, shape index: {}]   ;;  %s10393_s2 = inlined_call_operand.vmem [shape: f32[17,17], index: 2, kind: input, shape index: {}]   ;;  %s10394_s3 = inlined_call_operand.vmem [shape: f32[368,128], index: 3, kind: input, shape index: {}]   ;;  %s10395_s4 = inlined_call_operand.vmem [shape: f32[48,128], index: 4, kind: input, shape index: {}]   ;;  %s10396_s5 = inlined_call_operand.vmem [shape: f32[24,32,8], index: 5, kind: input, shape index: {}]   ;;  %s10397_s6 = inlined_call_operand.vmem [shape: f32[2,192,128], index: 6, kind: input, shape index: {}]   ;;  %s10398_s7 = inlined_call_operand.vmem [shape: f32[2,17,128], index: 7, kind: output, shape index: {}]  }
   0x1 LB: > { %s6339_s25 = sadd.s32 4294967295, %s8584_s24   ;;  %p6343_p0 = scmp.ge.s32.totalorder %s8584_s24, 1  ;;  %s8584_s24 = sphi %s8629_s24, %s17_s24  }
   0x2   : > { %p237_p1 = scmp.lt.s32.totalorder %s8584_s24, 3 }
   0x4   : > { %p238_p2 = pnand %p6343_p0, %p237_p1 }
   0x5   : > { %v279_v0 = vld [vmem:[%s10394_s3] sm:$0xff] (!%p238_p2)  ;;  %v280_v1 = vld [vmem:[%s10394_s3 + $0x8] sm:$0xff] (!%p238_p2)  ;;  %v281_v2 = vld [vmem:[%s10394_s3 + $0x10] sm:$0xff] (!%p238_p2)  ;;  %v8586_v3 = vmov (!%p238_p2), 0.0|0.0   ;;  %vm8587_vm0 = vmmov (!%p238_p2), 0   ;;  %v8588_v6 = vmov (!%p238_p2), 0.0  }
   0x6   : > { %241 = sbr.rel (%p238_p2) target bundleno = 11023 (0x2b0f), region = 48  ;;  %8096 = vmatprep.subr.bf16.mxu0 (!%p238_p2), %v8586_v3  ;;  %v8097_v4 = vpack.c.bf16 (!%p238_p2), %v280_v1, %v279_v0  ;;  %v282_v5 = vld [vmem:[%s10394_s3 + $0x18] sm:$0xff] (!%p238_p2)  ;;  %7119 = vmatprep.mubr.msk.f32.mxu0 (!%p238_p2), %vm8587_vm0, %v8588_v6  ;;  %p269_p3 = scmp.lt.s32.totalorder (!%p238_p2), %s6339_s25, 1  ;;  %v283_v8 = vld [vmem:[%s10394_s3 + $0x20] sm:$0xff] (!%p238_p2)  ;;  %v284_v9 = vld [vmem:[%s10394_s3 + $0x28] sm:$0xff] (!%p238_p2)  ;;  %vm291_vm1 = vcmask (!%p238_p2), 392192  }
   0x7   : > { %8105 = vmatprep.subr.bf16.mxu1 (!%p238_p2), %v8586_v3  ;;  %7136 = vmatprep.mubr.msk.f32.mxu1 (!%p238_p2), %vm8587_vm0, %v8588_v6  ;;  %v8100_v7 = vpack.c.bf16 (!%p238_p2), %v282_v5, %v281_v2  ;;  %v8103_v10 = vpack.c.bf16 (!%p238_p2), %v284_v9, %v283_v8  ;;  %v288_v14 = vld [vmem:[%s10392_s1] sm:$0xff] (!%p238_p2)  ;;  %vm386_vm2 = vcmask (!%p238_p2), 261120   ;;  %v289_v18 = vld [vmem:[%s10392_s1 + $0x8] sm:$0xff] (!%p238_p2)  ;;  %v290_v23 = vld [vmem:[%s10392_s1 + $0x10] sm:$0x1] (!%p238_p2)  ;;  %vm393_vm3 = vcmask (!%p238_p2), 253952  }
   0x8   : > { %8098 = vmatpush3.bf16.msra.mxu0 (!%p238_p2), %v8097_v4  ;;  %v442_v44 = vld [vmem:[%s10396_s5] sm:$0xff] (!%p238_p2)  ;;  %v443_v45 = vld [vmem:[%s10396_s5 + $0x8] sm:$0xff] (!%p238_p2)  ;;  %v444_v50 = vld [vmem:[%s10396_s5 + $0x10] sm:$0xff] (!%p238_p2)  ;;  %vm869_vm4 = vcmask (!%p238_p2), 1040384   ;;  %vm720_vm5 = vcmask (!%p238_p2), 64512   ;;  %vm825_vm7 = vcmask (!%p238_p2), 138240  }
   0x9   : > { %8099 = vmatprep.subr.bf16.mxu0 (!%p238_p2), %v8586_v3  ;;  %v6363_v46 = vld [vmem:[%s10396_s5 + $0x100] sm:$0xff] (!%p238_p2)  ;;  %v8106_v47 = vpack.c.bf16 (!%p238_p2), %v443_v45, %v442_v44  ;;  %v6364_v48 = vld [vmem:[%s10396_s5 + $0x108] sm:$0xff] (!%p238_p2)  ;;  %v445_v51 = vld [vmem:[%s10396_s5 + $0x18] sm:$0xff] (!%p238_p2)  ;;  %vm832_vm8 = vcmask (!%p238_p2), 131072  }
   0xa   : > { %v8118_v49 = vpack.c.bf16 (!%p238_p2), %v6364_v48, %v6363_v46  ;;  %v6365_v52 = vld [vmem:[%s10396_s5 + $0x110] sm:$0xff] (!%p238_p2)  ;;  %v8109_v53 = vpack.c.bf16 (!%p238_p2), %v445_v51, %v444_v50  ;;  %v6366_v54 = vld [vmem:[%s10396_s5 + $0x118] sm:$0xff] (!%p238_p2)  ;;  %v6349_v2 = vld [vmem:[%s10395_s4] ss:$0 sm:$0xff] (!%p238_p2) }
   0xb   : > { %8107 = vmatpush3.bf16.msra.mxu1 (!%p238_p2), %v8106_v47  ;;  %v8121_v55 = vpack.c.bf16 (!%p238_p2), %v6366_v54, %v6365_v52  ;;  %v6355_v5 = vld [vmem:[%s10396_s5 + $0x80] sm:$0xff] (!%p238_p2)  ;;  %v6359_v45 = vld [vmem:[%s10395_s4 + $0x1c] ss:$0 sm:$0xff] (!%p238_p2)  ;;  %vm8806_vm6 = vmpackc.low (!%p238_p2), %vm720_vm5, %vm720_vm5 }
   0xc   : > { %8101 = vmatpush3.bf16.msra.mxu0 (!%p238_p2), %v8100_v7  ;;  %8108 = vmatprep.subr.bf16.mxu1 (!%p238_p2), %v8586_v3  ;;  %v6356_v7 = vld [vmem:[%s10396_s5 + $0x88] sm:$0xff] (!%p238_p2)  ;;  %v6350_v8 = vld [vmem:[%s10395_s4 + $0x1] ss:$0 sm:$0xff] (!%p238_p2) }
   0xd   : > { %s10402_s25 = smov (!%p269_p3, %s6339_s25), 1  ;;  %8102 = vmatprep.subr.bf16.mxu0 %v8586_v3  ;;  %v6381_v54 = vld [vmem:[%s10396_s5 + $0x20] sm:$0xff] }
   0xe   : > { %s8425_s15 = smul.u32 24, %s10402_s25 }
   0xf   : > { %8110 = vmatpush3.bf16.msra.mxu1 %v8109_v53 }
  0x10   : > { %s273_s18 = scalar_lea.vmem %s10391_s0, %s8425_s15  ;;  %8104 = vmatpush3.bf16.msra.mxu0 %v8103_v10  ;;  %8111 = vmatprep.subr.bf16.mxu1 %v8586_v3  ;;  %s278_s12 = scalar_lea.vmem %s10398_s7, %s8425_s15 }
  0x11   : > { %v285_v11 = vld [vmem:[%s273_s18] sm:$0xff]  ;;  %8117 = vmatprep.subr.bf16.mxu0 %v8586_v3  ;;  %v286_v12 = vld [vmem:[%s273_s18 + $0x8] sm:$0xff]  ;;  %v287_v13 = vld [vmem:[%s273_s18 + $0x10] sm:$0x1] }
  0x13   : > { %7120 = vmatmul.mubr.msk.f32.vlgmr.msra.gmra.mrb[0].mxu0 %vm291_vm1, %v285_v11  ;;  %v8112_v11 = vpack.c.bf16 %v6356_v7, %v6355_v5  ;;  %v6399_v5 = vld [vmem:[%s10396_s5 + $0x130] sm:$0xff]  ;;  %v6400_v7 = vld [vmem:[%s10396_s5 + $0x138] sm:$0xff] }
  0x14   : > { %7122 = vmatprep.mubr.msk.f32.mxu0 %vm8587_vm0, %v8588_v6  ;;  %8119 = vmatpush3.bf16.msra.mxu0 %v8118_v49 }
  0x15   : > { %8120 = vmatprep.subr.bf16.mxu0 %v8586_v3 }
  0x17   : > { %7123 = vmatmul.mubr.msk.f32.gmra.mrb[2].mxu0 %vm291_vm1, %v286_v12 }
  0x18   : > { %7125 = vmatprep.mubr.msk.f32.mxu0 %vm8587_vm0, %v8588_v6  ;;  %8122 = vmatpush3.bf16.msra.mxu0 %v8121_v55  ;;  %v6382_v55 = vld [vmem:[%s10396_s5 + $0x28] sm:$0xff] }
  0x19   : > { %8127 = vmatprep.subr.bf16.mxu0 %v8586_v3 }
  0x1b   : > { %7126 = vmatmul.mubr.msk.f32.gmra.mrb[4].mxu0 %vm291_vm1, %v287_v13 }
  0x1c   : > { %7170 = vmatprep.mubr.msk.f32.mxu0 %vm8587_vm0, %v8588_v6 }
  0xe6   : > { %v367_v15 = vpop.f32.mrb[0].mxu0 }
  0xe7   : > { %v8681_v16 = vadd.f32 %v367_v15, %v288_v14  ;;  %v7121_v17 = vpop.f32.mrb[1].mxu0  ;;  %v6357_v14 = vld [vmem:[%s10396_s5 + $0x90] sm:$0xff]  ;;  %v6358_v15 = vld [vmem:[%s10396_s5 + $0x98] sm:$0xff] }
  0xe9   : > { %v387_v19 = vsel %vm386_vm2, %v8681_v16, 0.0 }
  0xea   : > { %388 = vadd.xlane.f32.xlu0 %v387_v19  ;;  %v372_v20 = vpop.f32.mrb[2].mxu0 }
  0xeb   : > { %v8688_v21 = vadd.f32 %v372_v20, %v289_v18  ;;  %v7124_v22 = vpop.f32.mrb[3].mxu0 }
  0xec   : > { %v8115_v22 = vpack.c.bf16 %v6358_v15, %v6357_v14 }
  0xed   : > { %v390_v24 = vsel %vm386_vm2, %v8688_v21, 0.0 }
  0xee   : > { %391 = vadd.xlane.f32.xlu0 %v390_v24  ;;  %v377_v25 = vpop.f32.mrb[4].mxu0 }
  0xef   : > { %v8695_v26 = vadd.f32 %v377_v25, %v290_v23  ;;  %v7127_v27 = vpop.f32.mrb[5].mxu0 }
  0xf1   : > { %v394_v28 = vsel %vm393_vm3, %v8695_v26, 0.0 }
  0xf2   : > { %395 = vadd.xlane.f32.xlu1 %v394_v28 }
 0x177   : > { %v389_v29 = vpop.xlane.xlu0 %388 }
 0x178   : > { %v398_v30 = vmul.f32 0.03125, %v389_v29 }
 0x17a   : > { %v401_v31 = vsub.f32 %v8681_v16, %v398_v30  ;;  %v6367_v30 = vld [vmem:[%s10395_s4 + $0x20] ss:$0 sm:$0xff] }
 0x17b   : > { %v392_v32 = vpop.xlane.xlu0 %391 }
 0x17c   : > { %v399_v33 = vmul.f32 0.03125, %v392_v32  ;;  %v404_v34 = vmul.f32 %v401_v31, %v401_v31 }
 0x17e   : > { %v402_v35 = vsub.f32 %v8688_v21, %v399_v33  ;;  %v407_v36 = vsel %vm386_vm2, %v404_v34, 0.0 }
 0x17f   : > { %408 = vadd.xlane.f32.xlu1 %v407_v36  ;;  %v396_v37 = vpop.xlane.xlu1 %395 }
 0x180   : > { %v400_v38 = vmul.f32 0.03125, %v396_v37  ;;  %v405_v39 = vmul.f32 %v402_v35, %v402_v35 }
 0x182   : > { %v403_v40 = vsub.f32 %v8695_v26, %v400_v38  ;;  %v410_v41 = vsel %vm386_vm2, %v405_v39, 0.0 }
 0x183   : > { %411 = vadd.xlane.f32.xlu0 %v410_v41 }
 0x184   : > { %v406_v42 = vmul.f32 %v403_v40, %v403_v40 }
 0x186   : > { %v413_v43 = vsel %vm393_vm3, %v406_v42, 0.0 }
 0x187   : > { %414 = vadd.xlane.f32.xlu1 %v413_v43 }
 0x20c   : > { %v409_v56 = vpop.xlane.xlu1 %408 }
 0x20d   : > { %v416_v57 = vmul.f32 0.03125, %v409_v56  ;;  %v6351_v56 = vld [vmem:[%s10395_s4 + $0x18] ss:$0 sm:$0xff] }
 0x20f   : > { %v419_v58 = vadd.f32 1e-06, %v416_v57 }
 0x210   : > { %v412_v59 = vpop.xlane.xlu0 %411 }
 0x211   : > { %8437 = vrsqrt.f32 %v419_v58  ;;  %v417_v60 = vmul.f32 0.03125, %v412_v59  ;;  %v8131_v58 = vpack.c.bf16 %v6382_v55, %v6381_v54 }
 0x213   : > { %v420_v61 = vadd.f32 1e-06, %v417_v60  ;;  %v6383_v60 = vld [vmem:[%s10396_s5 + $0x30] sm:$0xff] }
 0x214   : > { %v415_v62 = vpop.xlane.xlu1 %414 }
 0x215   : > { %8439 = vrsqrt.f32 %v420_v61  ;;  %v418_v63 = vmul.f32 0.03125, %v415_v62  ;;  %v6384_v61 = vld [vmem:[%s10396_s5 + $0x38] sm:$0xff] }
 0x216   : > { %v8134_v62 = vpack.c.bf16 %v6384_v61, %v6383_v60 }
 0x217   : > { %v421_v0 = vadd.f32 1e-06, %v418_v63 }
 0x219   : > { %8441 = vrsqrt.f32 %v421_v0 }
 0x21b   : > { %v8438_v1 = vpop.eup %8437 }
 0x21c   : > { %v425_v4 = vmul.f32 %v8438_v1, %v401_v31  ;;  %v6397_v1 = vld [vmem:[%s10396_s5 + $0x120] sm:$0xff] }
 0x21e   : > { %v432_v9 = vmul.f32 %v6349_v2, %v425_v4 }
 0x21f   : > { %v8440_v10 = vpop.eup %8439 }
 0x220   : > { %v8745_v12 = vadd.f32 %v6350_v8, %v432_v9  ;;  %v426_v13 = vmul.f32 %v8440_v10, %v402_v35  ;;  %v8882_v10 = vld [vmem:[%s10393_s2] sm:$0xff] }
 0x222   : > { %v433_v17 = vmul.f32 %v6349_v2, %v426_v13  ;;  %7137 = vmatmul.mubr.msk.f32.vlgmr.msra.gmra.mrb[0].mxu1 %vm386_vm2, %v8745_v12  ;;  %7171 = vmatmul.mubr.msk.f32.vlgmr.msra.gmra.mrb[6].mxu0 %vm386_vm2, %v8745_v12 }
 0x223   : > { %v8442_v18 = vpop.eup %8441  ;;  %7139 = vmatprep.mubr.msk.f32.mxu1 %vm8587_vm0, %v8588_v6  ;;  %8113 = vmatpush3.bf16.msra.mxu1 %v8112_v11 }
 0x224   : > { %v8759_v19 = vadd.f32 %v6350_v8, %v433_v17  ;;  %v427_v20 = vmul.f32 %v8442_v18, %v403_v40  ;;  %7173 = vmatprep.mubr.msk.f32.mxu0 %vm8587_vm0, %v8588_v6  ;;  %8114 = vmatprep.subr.bf16.mxu1 %v8586_v3  ;;  %v8888_v17 = vld [vmem:[%s10393_s2 + $0x8] sm:$0xff] }
 0x226   : > { %v434_v23 = vmul.f32 %v6349_v2, %v427_v20  ;;  %7140 = vmatmul.mubr.msk.f32.gmra.mrb[2].mxu1 %vm386_vm2, %v8759_v19  ;;  %7174 = vmatmul.mubr.msk.f32.gmra.mrb[8].mxu0 %vm386_vm2, %v8759_v19  ;;  %v6398_v2 = vld [vmem:[%s10396_s5 + $0x128] sm:$0xff] }
 0x227   : > { %7142 = vmatprep.mubr.msk.f32.mxu1 %vm8587_vm0, %v8588_v6  ;;  %7176 = vmatprep.mubr.msk.f32.mxu0 %vm8587_vm0, %v8588_v6  ;;  %v8143_v4 = vpack.c.bf16 %v6398_v2, %v6397_v1 }
 0x228   : > { %v8772_v24 = vadd.f32 %v6350_v8, %v434_v23  ;;  %8116 = vmatpush3.bf16.msra.mxu1 %v8115_v22  ;;  %v8146_v8 = vpack.c.bf16 %v6400_v7, %v6399_v5  ;;  %v6389_v7 = vld [vmem:[%s10396_s5 + $0xa0] sm:$0xff] }
 0x229   : > { %8123 = vmatprep.subr.bf16.mxu1 %v8586_v3 }
 0x22a   : > { %7143 = vmatmul.mubr.msk.f32.gmra.mrb[4].mxu1 %vm386_vm2, %v8772_v24  ;;  %7177 = vmatmul.mubr.msk.f32.gmra.mrb[10].mxu0 %vm386_vm2, %v8772_v24 }
 0x22b   : > { %7153 = vmatprep.mubr.msk.f32.mxu1 %vm8587_vm0, %v8588_v6  ;;  %7200 = vmatprep.mubr.msk.f32.mxu0 %vm8587_vm0, %v8588_v6 }
 0x22e   : > { %7154 = vmatmul.mubr.msk.f32.vlgmr.msra.gmra.mrb[6].mxu1 %vm386_vm2, %v8745_v12 }
 0x22f   : > { %7156 = vmatprep.mubr.msk.f32.mxu1 %vm8587_vm0, %v8588_v6 }
 0x232   : > { %7157 = vmatmul.mubr.msk.f32.gmra.mrb[8].mxu1 %vm386_vm2, %v8759_v19 }
 0x233   : > { %7159 = vmatprep.mubr.msk.f32.mxu1 %vm8587_vm0, %v8588_v6 }
 0x236   : > { %7160 = vmatmul.mubr.msk.f32.gmra.mrb[10].mxu1 %vm386_vm2, %v8772_v24 }
 0x237   : > { %7185 = vmatprep.mubr.msk.f32.mxu1 %vm8587_vm0, %v8588_v6 }
 0x2f5   : > { %v526_v25 = vpop.f32.mrb[0].mxu1  ;;  %v706_v27 = vpop.f32.mrb[6].mxu0 }
 0x2f6   : > { %v7138_v28 = vpop.f32.mrb[1].mxu1  ;;  %v7172_v29 = vpop.f32.mrb[7].mxu0  ;;  %v707_v33 = vadd.f32 %v6367_v30, %v706_v27  ;;  %v527_v59 = vadd.f32 %v6351_v56, %v526_v25  ;;  %v8895_v27 = vld [vmem:[%s10393_s2 + $0x10] sm:$0x1] }
 0x2f9   : > { %v531_v31 = vpop.f32.mrb[2].mxu1  ;;  %v711_v32 = vpop.f32.mrb[8].mxu0 }
 0x2fa   : > { %v712_v34 = vadd.f32 %v6367_v30, %v711_v32  ;;  %v7141_v35 = vpop.f32.mrb[3].mxu1  ;;  %v7175_v36 = vpop.f32.mrb[9].mxu0  ;;  %v532_v63 = vadd.f32 %v6351_v56, %v531_v31 }
 0x2fc   : > { %v8128_v37 = vpack.c.bf16 %v712_v34, %v707_v33 }
 0x2fd   : > { %v536_v38 = vpop.f32.mrb[4].mxu1  ;;  %v716_v39 = vpop.f32.mrb[10].mxu0 }
 0x2fe   : > { %v7144_v40 = vpop.f32.mrb[5].mxu1  ;;  %v7178_v41 = vpop.f32.mrb[11].mxu0  ;;  %8129 = vmatpush3.bf16.msra.mxu0 %v8128_v37  ;;  %v717_v42 = vadd.f32 %v6367_v30, %v716_v39  ;;  %v537_v0 = vadd.f32 %v6351_v56, %v536_v38 }
 0x2ff   : > { %7198 = vmatprep.subr.mxu0 %v8588_v6  ;;  %v6401_v41 = vld [vmem:[%s10395_s4 + $0x21] ss:$0 sm:$0xff] }
 0x301   : > { %v616_v43 = vpop.f32.mrb[6].mxu1 }
 0x302   : > { %v7155_v44 = vpop.f32.mrb[7].mxu1  ;;  %7199 = vmatpush3.msk.msra.mxu0 %vm869_vm4, %v717_v42  ;;  %v617_v47 = vadd.f32 %v6359_v45, %v616_v43 }
 0x303   : > { %8136 = vmatprep.subr.bf16.mxu0 %v8586_v3 }
 0x305   : > { %v621_v46 = vpop.f32.mrb[8].mxu1 }
 0x306   : > { %v622_v48 = vadd.f32 %v6359_v45, %v621_v46  ;;  %v7158_v49 = vpop.f32.mrb[9].mxu1 }
 0x308   : > { %v8124_v51 = vpack.c.bf16 %v622_v48, %v617_v47 }
 0x309   : > { %v626_v52 = vpop.f32.mrb[10].mxu1 }
 0x30a   : > { %v7161_v53 = vpop.f32.mrb[11].mxu1  ;;  %8126 = vmatpush3.bf16.xpose.msk.msra.mxu1 %vm8806_vm6, %v8124_v51  ;;  %v627_v57 = vadd.f32 %v6359_v45, %v626_v52 }
 0x30b   : > { %7183 = vmatprep.subr.mxu1 %v8588_v6 }
 0x312   : > { %7184 = vmatpush3.xpose.msk.msra.mxu1 %vm720_vm5, %v627_v57 }
 0x313   : > { %8130 = vmatprep.subr.bf16.mxu1 %v8586_v3 }
 0x315   : > { %7186 = vmatmul.mubr.msk.f32.vlgmr.msra.gmra.mrb[12].mxu1 %vm720_vm5, %v527_v59 }
 0x316   : > { %7188 = vmatprep.mubr.msk.f32.mxu1 %vm8587_vm0, %v8588_v6  ;;  %8132 = vmatpush3.bf16.msra.mxu1 %v8131_v58 }
 0x317   : > { %8133 = vmatprep.subr.bf16.mxu1 %v8586_v3 }
 0x319   : > { %7189 = vmatmul.mubr.msk.f32.gmra.mrb[14].mxu1 %vm720_vm5, %v532_v63 }
 0x31a   : > { %7191 = vmatprep.mubr.msk.f32.mxu1 %vm8587_vm0, %v8588_v6  ;;  %8135 = vmatpush3.bf16.msra.mxu1 %v8134_v62 }
 0x31b   : > { %8142 = vmatprep.subr.bf16.mxu1 %v8586_v3 }
 0x31d   : > { %7192 = vmatmul.mubr.msk.f32.gmra.mrb[16].mxu1 %vm720_vm5, %v537_v0 }
 0x31e   : > { %7217 = vmatprep.mubr.msk.f32.mxu1 %vm8587_vm0, %v8588_v6 }
 0x321   : > { %7218 = vmatmul.mubr.msk.f32.vlgmr.msra.gmra.mrb[18].mxu1 %vm386_vm2, %v8745_v12 }
 0x322   : > { %7220 = vmatprep.mubr.msk.f32.mxu1 %vm8587_vm0, %v8588_v6  ;;  %8144 = vmatpush3.bf16.msra.mxu1 %v8143_v4 }
 0x323   : > { %8145 = vmatprep.subr.bf16.mxu1 %v8586_v3 }
 0x325   : > { %7221 = vmatmul.mubr.msk.f32.gmra.mrb[20].mxu1 %vm386_vm2, %v8759_v19 }
 0x326   : > { %7223 = vmatprep.mubr.msk.f32.mxu1 %vm8587_vm0, %v8588_v6  ;;  %8147 = vmatpush3.bf16.msra.mxu1 %v8146_v8  ;;  %v6390_v8 = vld [vmem:[%s10396_s5 + $0xa8] sm:$0xff] }
 0x327   : > { %8152 = vmatprep.subr.bf16.mxu1 %v8586_v3 }
 0x329   : > { %7224 = vmatmul.mubr.msk.f32.gmra.mrb[22].mxu1 %vm386_vm2, %v8772_v24 }
 0x32a   : > { %7251 = vmatprep.mubr.msk.f32.mxu1 %vm8587_vm0, %v8588_v6 }
 0x32d   : > { %7252 = vmatmul.mubr.msk.f32.vlgmr.msra.gmra.mrb[24].mxu1 %vm386_vm2, %v8745_v12 }
 0x32e   : > { %7254 = vmatprep.mubr.msk.f32.mxu1 %vm8587_vm0, %v8588_v6 }
 0x331   : > { %7255 = vmatmul.mubr.msk.f32.gmra.mrb[26].mxu1 %vm386_vm2, %v8759_v19 }
 0x332   : > { %7257 = vmatprep.mubr.msk.f32.mxu1 %vm8587_vm0, %v8588_v6 }
 0x335   : > { %7258 = vmatmul.mubr.msk.f32.gmra.mrb[28].mxu1 %vm386_vm2, %v8772_v24 }
 0x336   : > { %7281 = vmatprep.mubr.msk.f32.mxu1 %vm8587_vm0, %v8588_v6 }
 0x3e8   : > { %v805_v9 = vpop.f32.mrb[12].mxu1 }
 0x3e9   : > { %v819_v11 = vmul.f32 0.35355338, %v805_v9  ;;  %v7187_v13 = vpop.f32.mrb[13].mxu1 }
 0x3eb   : > { %v822_v14 = vadd.f32 %v819_v11, %v8882_v10  ;;  %v8137_v11 = vpack.c.bf16 %v6390_v8, %v6389_v7 }
 0x3ec   : > { %v810_v15 = vpop.f32.mrb[14].mxu1 }
 0x3ed   : > { %v820_v18 = vmul.f32 0.35355338, %v810_v15  ;;  %v7190_v20 = vpop.f32.mrb[15].mxu1  ;;  %v826_v22 = vsel %vm825_vm7, %v822_v14, -inf  ;;  %v6392_v15 = vld [vmem:[%s10396_s5 + $0xb8] sm:$0xff] }
 0x3ee   : > { %827 = vmax.xlane.f32.xlu0 %v826_v22 }
 0x3ef   : > { %v823_v23 = vadd.f32 %v820_v18, %v8888_v17 }
 0x3f0   : > { %v815_v25 = vpop.f32.mrb[16].mxu1 }
 0x3f1   : > { %v821_v28 = vmul.f32 0.35355338, %v815_v25  ;;  %v7193_v29 = vpop.f32.mrb[17].mxu1  ;;  %v829_v30 = vsel %vm825_vm7, %v823_v23, -inf }
 0x3f2   : > { %830 = vmax.xlane.f32.xlu1 %v829_v30 }
 0x3f3   : > { %v824_v31 = vadd.f32 %v821_v28, %v8895_v27 }
 0x3f4   : > { %v8899_v32 = vpop.f32.mrb[18].mxu1 }
 0x3f5   : > { %v7219_v33 = vpop.f32.mrb[19].mxu1  ;;  %v833_v34 = vsel %vm832_vm8, %v824_v31, -inf }
 0x3f6   : > { %834 = vmax.xlane.f32.xlu0 %v833_v34 }
 0x3f8   : > { %v8902_v35 = vpop.f32.mrb[20].mxu1 }
 0x3f9   : > { %v7222_v36 = vpop.f32.mrb[21].mxu1 }
 0x3fc   : > { %v8904_v37 = vpop.f32.mrb[22].mxu1 }
 0x3fd   : > { %v7225_v38 = vpop.f32.mrb[23].mxu1 }
 0x400   : > { %v1210_v39 = vpop.f32.mrb[24].mxu1 }
 0x401   : > { %v7253_v40 = vpop.f32.mrb[25].mxu1  ;;  %v1211_v43 = vadd.f32 %v6401_v41, %v1210_v39  ;;  %v6393_v39 = vld [vmem:[%s10395_s4 + $0x1d] ss:$0 sm:$0xff] }
 0x404   : > { %v1215_v42 = vpop.f32.mrb[26].mxu1 }
 0x405   : > { %v1216_v44 = vadd.f32 %v6401_v41, %v1215_v42  ;;  %v7256_v45 = vpop.f32.mrb[27].mxu1 }
 0x407   : > { %v8153_v46 = vpack.c.bf16 %v1216_v44, %v1211_v43 }
 0x408   : > { %v1220_v47 = vpop.f32.mrb[28].mxu1 }
 0x409   : > { %v7259_v48 = vpop.f32.mrb[29].mxu1  ;;  %8154 = vmatpush3.bf16.msra.mxu1 %v8153_v46  ;;  %v1221_v49 = vadd.f32 %v6401_v41, %v1220_v47  ;;  %v6385_v47 = vld [vmem:[%s10395_s4 + $0x19] ss:$0 sm:$0xff] }
 0x40a   : > { %7279 = vmatprep.subr.mxu1 %v8588_v6 }
 0x40d   : > { %7280 = vmatpush3.msk.msra.mxu1 %vm869_vm4, %v1221_v49  ;;  %v1031_v49 = vadd.f32 %v6385_v47, %v8899_v32 }
 0x40e   : > { %7301 = vmatprep.subr.mxu1 %v8588_v6 }
 0x47b   : > { %v828_v51 = vpop.xlane.xlu0 %827 }
 0x47c   : > { %v836_v52 = vsub.f32 %v822_v14, %v828_v51  ;;  %v6391_v14 = vld [vmem:[%s10396_s5 + $0xb0] sm:$0xff]  ;;  %v1036_v51 = vadd.f32 %v6385_v47, %v8902_v35 }
 0x47d   : > { %v8140_v20 = vpack.c.bf16 %v6392_v15, %v6391_v14 }
 0x47e   : > { %v839_v53 = vmul.f32 1.442695, %v836_v52  ;;  %v1041_v52 = vadd.f32 %v6385_v47, %v8904_v37  ;;  %v6431_v47 = vld [vmem:[%s10396_s5 + $0xd0] sm:$0xff] }
 0x47f   : > { %v831_v54 = vpop.xlane.xlu1 %830 }
 0x480   : > { %8443 = vpow2.f32 %v839_v53  ;;  %v837_v55 = vsub.f32 %v823_v23, %v831_v54 }
 0x482   : > { %v841_v56 = vmul.f32 1.442695, %v837_v55 }
 0x483   : > { %v835_v57 = vpop.xlane.xlu0 %834 }
 0x484   : > { %8445 = vpow2.f32 %v841_v56  ;;  %v838_v58 = vsub.f32 %v824_v31, %v835_v57 }
 0x486   : > { %v843_v59 = vmul.f32 1.442695, %v838_v58 }
 0x488   : > { %8447 = vpow2.f32 %v843_v59 }
 0x48a   : > { %v8444_v60 = vpop.eup %8443 }
 0x48b   : > { %v845_v61 = vsel %vm825_vm7, %v8444_v60, 0.0 }
 0x48c   : > { %846 = vadd.xlane.f32.xlu1 %v845_v61 }
 0x48e   : > { %v8446_v62 = vpop.eup %8445 }
 0x48f   : > { %v848_v63 = vsel %vm825_vm7, %v8446_v62, 0.0 }
 0x490   : > { %849 = vadd.xlane.f32.xlu0 %v848_v63 }
 0x492   : > { %v8448_v0 = vpop.eup %8447 }
 0x493   : > { %v851_v1 = vsel %vm832_vm8, %v8448_v0, 0.0 }
 0x494   : > { %852 = vadd.xlane.f32.xlu1 %v851_v1 }
 0x519   : > { %v847_v2 = vpop.xlane.xlu1 %846 }
 0x51a   : > { %8449 = vrcp.f32 %v847_v2 }
 0x51d   : > { %v850_v4 = vpop.xlane.xlu0 %849 }
 0x51e   : > { %8451 = vrcp.f32 %v850_v4 }
 0x521   : > { %v853_v5 = vpop.xlane.xlu1 %852 }
 0x522   : > { %8453 = vrcp.f32 %v853_v5 }
 0x524   : > { %v8450_v9 = vpop.eup %8449 }
 0x525   : > { %v857_v13 = vmul.f32 %v8450_v9, %v8444_v60 }
 0x527   : > { %7201 = vmatmul.mubr.msk.f32.vlgmr.msra.gmra.mrb[12].mxu0 %vm825_vm7, %v857_v13 }
 0x528   : > { %v8452_v18 = vpop.eup %8451  ;;  %7203 = vmatprep.mubr.msk.f32.mxu0 %vm8587_vm0, %v8588_v6  ;;  %8138 = vmatpush3.bf16.msra.mxu0 %v8137_v11 }
 0x529   : > { %v858_v22 = vmul.f32 %v8452_v18, %v8446_v62  ;;  %8139 = vmatprep.subr.bf16.mxu0 %v8586_v3 }
 0x52b   : > { %7204 = vmatmul.mubr.msk.f32.gmra.mrb[14].mxu0 %vm825_vm7, %v858_v22 }
 0x52c   : > { %v8454_v23 = vpop.eup %8453  ;;  %7206 = vmatprep.mubr.msk.f32.mxu0 %vm8587_vm0, %v8588_v6  ;;  %8141 = vmatpush3.bf16.msra.mxu0 %v8140_v20 }
 0x52d   : > { %v859_v25 = vmul.f32 %v8454_v23, %v8448_v0  ;;  %8148 = vmatprep.subr.bf16.mxu0 %v8586_v3 }
 0x52f   : > { %7207 = vmatmul.mubr.msk.f32.gmra.mrb[16].mxu0 %vm825_vm7, %v859_v25  ;;  %v1453_v25 = vld [vmem:[%s10397_s6 + $0x8] sm:$0xff] }
 0x530   : > { %7234 = vmatprep.mubr.msk.f32.mxu0 %vm8587_vm0, %v8588_v6 }
 0x533   : > { %7235 = vmatmul.mubr.msk.f32.vlgmr.msra.gmra.mrb[18].mxu0 %vm386_vm2, %v8745_v12 }
 0x534   : > { %7237 = vmatprep.mubr.msk.f32.mxu0 %vm8587_vm0, %v8588_v6 }
 0x537   : > { %7238 = vmatmul.mubr.msk.f32.gmra.mrb[20].mxu0 %vm386_vm2, %v8759_v19 }
 0x538   : > { %7240 = vmatprep.mubr.msk.f32.mxu0 %vm8587_vm0, %v8588_v6 }
 0x53b   : > { %7241 = vmatmul.mubr.msk.f32.gmra.mrb[22].mxu0 %vm386_vm2, %v8772_v24 }
 0x53c   : > { %7266 = vmatprep.mubr.msk.f32.mxu0 %vm8587_vm0, %v8588_v6 }
 0x5fa   : > { %v8950_v28 = vpop.f32.mrb[12].mxu0 }
 0x5fb   : > { %v7202_v29 = vpop.f32.mrb[13].mxu0 }
 0x5fe   : > { %v8952_v30 = vpop.f32.mrb[14].mxu0 }
 0x5ff   : > { %v7205_v31 = vpop.f32.mrb[15].mxu0 }
 0x602   : > { %v8954_v33 = vpop.f32.mrb[16].mxu0 }
 0x603   : > { %v7208_v34 = vpop.f32.mrb[17].mxu0 }
 0x606   : > { %v1120_v36 = vpop.f32.mrb[18].mxu0 }
 0x607   : > { %v7236_v38 = vpop.f32.mrb[19].mxu0  ;;  %v1121_v41 = vadd.f32 %v6393_v39, %v1120_v36 }
 0x60a   : > { %v1125_v40 = vpop.f32.mrb[20].mxu0 }
 0x60b   : > { %v1126_v42 = vadd.f32 %v6393_v39, %v1125_v40  ;;  %v7239_v43 = vpop.f32.mrb[21].mxu0 }
 0x60d   : > { %v8149_v44 = vpack.c.bf16 %v1126_v42, %v1121_v41 }
 0x60e   : > { %v1130_v45 = vpop.f32.mrb[22].mxu0 }
 0x60f   : > { %v7242_v46 = vpop.f32.mrb[23].mxu0  ;;  %8151 = vmatpush3.bf16.xpose.msk.msra.mxu0 %vm8806_vm6, %v8149_v44  ;;  %v1131_v48 = vadd.f32 %v6393_v39, %v1130_v45  ;;  %v953_v39 = vld [vmem:[%s10397_s6] sm:$0xff]  ;;  %v6430_v45 = vld [vmem:[%s10396_s5 + $0xc8] sm:$0xff] }
 0x610   : > { %7264 = vmatprep.subr.mxu0 %v8588_v6  ;;  %v6429_v44 = vld [vmem:[%s10396_s5 + $0xc0] sm:$0xff] }
 0x611   : > { %v8162_v46 = vpack.c.bf16 %v6430_v45, %v6429_v44 }
 0x617   : > { %7265 = vmatpush3.xpose.msk.msra.mxu0 %vm720_vm5, %v1131_v48  ;;  %v6432_v48 = vld [vmem:[%s10396_s5 + $0xd8] sm:$0xff] }
 0x618   : > { %7290 = vmatprep.subr.mxu0 %v8588_v6 }
 0x61a   : > { %7267 = vmatmul.mubr.msk.f32.vlgmr.msra.gmra.mrb[24].mxu0 %vm720_vm5, %v1031_v49  ;;  %v8165_v49 = vpack.c.bf16 %v6432_v48, %v6431_v47 }
 0x61b   : > { %7269 = vmatprep.mubr.msk.f32.mxu0 %vm8587_vm0, %v8588_v6  ;;  %7291 = vmatpush3.msra.mxu0 %v1453_v25 }
 0x61c   : > { %8155 = vmatprep.subr.bf16.mxu0 %v8586_v3 }
 0x61e   : > { %7270 = vmatmul.mubr.msk.f32.gmra.mrb[26].mxu0 %vm720_vm5, %v1036_v51  ;;  %v6423_v51 = vld [vmem:[%s10396_s5 + $0x50] sm:$0xff] }
 0x61f   : > { %7272 = vmatprep.mubr.msk.f32.mxu0 %vm8587_vm0, %v8588_v6 }
 0x622   : > { %7273 = vmatmul.mubr.msk.f32.gmra.mrb[28].mxu0 %vm720_vm5, %v1041_v52  ;;  %v6424_v52 = vld [vmem:[%s10396_s5 + $0x58] sm:$0xff] }
 0x623   : > { %7292 = vmatprep.mubr.msk.f32.mxu0 %vm8587_vm0, %v8588_v6 }
 0x6ed   : > { %v1308_v32 = vpop.f32.mrb[24].mxu0 }
 0x6ee   : > { %v1322_v53 = vmul.f32 0.35355338, %v1308_v32  ;;  %v7268_v54 = vpop.f32.mrb[25].mxu0 }
 0x6ef   : > { %v8159_v54 = vpack.c.bf16 %v6424_v52, %v6423_v51  ;;  %v6441_v52 = vld [vmem:[%s10395_s4 + $0x22] ss:$0 sm:$0xff] }
 0x6f0   : > { %v1325_v55 = vadd.f32 %v1322_v53, %v8882_v10 }
 0x6f1   : > { %v1313_v56 = vpop.f32.mrb[26].mxu0 }
 0x6f2   : > { %v1323_v57 = vmul.f32 0.35355338, %v1313_v56  ;;  %v7271_v35 = vpop.f32.mrb[27].mxu0  ;;  %v1328_v58 = vsel %vm825_vm7, %v1325_v55, -inf }
 0x6f3   : > { %1329 = vmax.xlane.f32.xlu0 %v1328_v58  ;;  %v6438_v35 = vld [vmem:[%s10396_s5 + $0x148] sm:$0xff] }
 0x6f4   : > { %v1326_v59 = vadd.f32 %v1323_v57, %v8888_v17  ;;  %v6437_v57 = vld [vmem:[%s10396_s5 + $0x140] sm:$0xff] }
 0x6f5   : > { %v1318_v60 = vpop.f32.mrb[28].mxu0 }
 0x6f6   : > { %v1324_v37 = vmul.f32 0.35355338, %v1318_v60  ;;  %v7274_v61 = vpop.f32.mrb[29].mxu0  ;;  %v1331_v62 = vsel %vm825_vm7, %v1326_v59, -inf  ;;  %v8168_v60 = vpack.c.bf16 %v6438_v35, %v6437_v57 }
 0x6f7   : > { %1332 = vmax.xlane.f32.xlu1 %v1331_v62  ;;  %v6440_v61 = vld [vmem:[%s10396_s5 + $0x158] sm:$0xff] }
 0x6f8   : > { %v1327_v63 = vadd.f32 %v1324_v37, %v8895_v27  ;;  %v6439_v37 = vld [vmem:[%s10396_s5 + $0x150] sm:$0xff] }
 0x6fa   : > { %v1334_v0 = vsel %vm832_vm8, %v1327_v63, -inf }
 0x6fb   : > { %1335 = vmax.xlane.f32.xlu0 %v1334_v0  ;;  %v8171_v0 = vpack.c.bf16 %v6440_v61, %v6439_v37 }
 0x780   : > { %v1330_v1 = vpop.xlane.xlu0 %1329 }
 0x781   : > { %v1337_v2 = vsub.f32 %v1325_v55, %v1330_v1 }
 0x783   : > { %v1340_v4 = vmul.f32 1.442695, %v1337_v2 }
 0x784   : > { %v1333_v5 = vpop.xlane.xlu1 %1332 }
 0x785   : > { %8455 = vpow2.f32 %v1340_v4  ;;  %v1338_v7 = vsub.f32 %v1326_v59, %v1333_v5 }
 0x787   : > { %v1342_v8 = vmul.f32 1.442695, %v1338_v7 }
 0x788   : > { %v1336_v9 = vpop.xlane.xlu0 %1335 }
 0x789   : > { %8457 = vpow2.f32 %v1342_v8  ;;  %v1339_v11 = vsub.f32 %v1327_v63, %v1336_v9  ;;  %v6433_v9 = vld [vmem:[%s10395_s4 + $0x1e] ss:$0 sm:$0xff] }
 0x78b   : > { %v1344_v13 = vmul.f32 1.442695, %v1339_v11 }
 0x78d   : > { %8459 = vpow2.f32 %v1344_v13 }
 0x78f   : > { %v8456_v14 = vpop.eup %8455 }
 0x790   : > { %v1346_v15 = vsel %vm825_vm7, %v8456_v14, 0.0 }
 0x791   : > { %1347 = vadd.xlane.f32.xlu1 %v1346_v15 }
 0x793   : > { %v8458_v18 = vpop.eup %8457 }
 0x794   : > { %v1349_v20 = vsel %vm825_vm7, %v8458_v18, 0.0 }
 0x795   : > { %1350 = vadd.xlane.f32.xlu0 %v1349_v20 }
 0x797   : > { %v8460_v22 = vpop.eup %8459 }
 0x798   : > { %v1352_v23 = vsel %vm832_vm8, %v8460_v22, 0.0 }
 0x799   : > { %1353 = vadd.xlane.f32.xlu1 %v1352_v23 }
 0x81e   : > { %v1348_v29 = vpop.xlane.xlu1 %1347 }
 0x81f   : > { %8461 = vrcp.f32 %v1348_v29 }
 0x822   : > { %v1351_v31 = vpop.xlane.xlu0 %1350 }
 0x823   : > { %8463 = vrcp.f32 %v1351_v31 }
 0x826   : > { %v1354_v34 = vpop.xlane.xlu1 %1353 }
 0x827   : > { %8465 = vrcp.f32 %v1354_v34 }
 0x829   : > { %v8462_v36 = vpop.eup %8461 }
 0x82a   : > { %v1358_v38 = vmul.f32 %v8462_v36, %v8456_v14 }
 0x82c   : > { %7282 = vmatmul.mubr.msk.f32.vlgmr.msra.gmra.mrb[30].mxu1 %vm825_vm7, %v1358_v38 }
 0x82d   : > { %v8464_v40 = vpop.eup %8463  ;;  %7284 = vmatprep.mubr.msk.f32.mxu1 %vm8587_vm0, %v8588_v6  ;;  %7302 = vmatpush3.msra.mxu1 %v953_v39 }
 0x82e   : > { %v1359_v41 = vmul.f32 %v8464_v40, %v8458_v18  ;;  %8161 = vmatprep.subr.bf16.mxu1 %v8586_v3 }
 0x830   : > { %7285 = vmatmul.mubr.msk.f32.gmra.mrb[32].mxu1 %vm825_vm7, %v1359_v41 }
 0x831   : > { %v8466_v42 = vpop.eup %8465  ;;  %7287 = vmatprep.mubr.msk.f32.mxu1 %vm8587_vm0, %v8588_v6 }
 0x832   : > { %v1360_v43 = vmul.f32 %v8466_v42, %v8460_v22  ;;  %v6425_v42 = vld [vmem:[%s10395_s4 + $0x1a] ss:$0 sm:$0xff] }
 0x834   : > { %7288 = vmatmul.mubr.msk.f32.gmra.mrb[34].mxu1 %vm825_vm7, %v1360_v43 }
 0x835   : > { %7303 = vmatprep.mubr.msk.f32.mxu1 %vm8587_vm0, %v8588_v6 }
 0x838   : > { %7304 = vmatmul.mubr.msk.f32.vlgmr.msra.gmra.mrb[36].mxu1 %vm720_vm5, %v8950_v28  ;;  %v6421_v28 = vld [vmem:[%s10396_s5 + $0x40] sm:$0xff] }
 0x839   : > { %7306 = vmatprep.mubr.msk.f32.mxu1 %vm8587_vm0, %v8588_v6  ;;  %8163 = vmatpush3.bf16.msra.mxu1 %v8162_v46 }
 0x83a   : > { %8164 = vmatprep.subr.bf16.mxu1 %v8586_v3 }
 0x83c   : > { %7307 = vmatmul.mubr.msk.f32.gmra.mrb[38].mxu1 %vm720_vm5, %v8952_v30  ;;  %v6422_v30 = vld [vmem:[%s10396_s5 + $0x48] sm:$0xff] }
 0x83d   : > { %7309 = vmatprep.mubr.msk.f32.mxu1 %vm8587_vm0, %v8588_v6  ;;  %8166 = vmatpush3.bf16.msra.mxu1 %v8165_v49 }
 0x83e   : > { %8173 = vmatprep.subr.bf16.mxu1 %v8586_v3 }
 0x840   : > { %7310 = vmatmul.mubr.msk.f32.gmra.mrb[40].mxu1 %vm720_vm5, %v8954_v33  ;;  %v8156_v33 = vpack.c.bf16 %v6422_v30, %v6421_v28 }
 0x841   : > { %7337 = vmatprep.mubr.msk.f32.mxu1 %vm8587_vm0, %v8588_v6 }
 0x844   : > { %7338 = vmatmul.mubr.msk.f32.vlgmr.msra.gmra.mrb[42].mxu1 %vm386_vm2, %v8745_v12 }
 0x845   : > { %7340 = vmatprep.mubr.msk.f32.mxu1 %vm8587_vm0, %v8588_v6 }
 0x848   : > { %7341 = vmatmul.mubr.msk.f32.gmra.mrb[44].mxu1 %vm386_vm2, %v8759_v19 }
 0x849   : > { %7343 = vmatprep.mubr.msk.f32.mxu1 %vm8587_vm0, %v8588_v6 }
 0x84c   : > { %7344 = vmatmul.mubr.msk.f32.gmra.mrb[46].mxu1 %vm386_vm2, %v8772_v24 }
 0x84d   : > { %7369 = vmatprep.mubr.msk.f32.mxu1 %vm8587_vm0, %v8588_v6 }
 0x8ff   : > { %v1439_v32 = vpop.f32.mrb[30].mxu1 }
 0x900   : > { %v7283_v53 = vpop.f32.mrb[31].mxu1  ;;  %7293 = vmatmul.mubr.msk.f32.vlgmr.msra.gmra.mrb[30].mxu0 %vm720_vm5, %v1439_v32 }
 0x901   : > { %7295 = vmatprep.mubr.msk.f32.mxu0 %vm8587_vm0, %v8588_v6  ;;  %8157 = vmatpush3.bf16.msra.mxu0 %v8156_v33 }
 0x902   : > { %8158 = vmatprep.subr.bf16.mxu0 %v8586_v3 }
 0x903   : > { %v1444_v55 = vpop.f32.mrb[32].mxu1 }
 0x904   : > { %v7286_v56 = vpop.f32.mrb[33].mxu1  ;;  %7296 = vmatmul.mubr.msk.f32.gmra.mrb[32].mxu0 %vm720_vm5, %v1444_v55 }
 0x905   : > { %7298 = vmatprep.mubr.msk.f32.mxu0 %vm8587_vm0, %v8588_v6  ;;  %8160 = vmatpush3.bf16.msra.mxu0 %v8159_v54 }
 0x906   : > { %8167 = vmatprep.subr.bf16.mxu0 %v8586_v3 }
 0x907   : > { %v1449_v58 = vpop.f32.mrb[34].mxu1 }
 0x908   : > { %v7289_v59 = vpop.f32.mrb[35].mxu1  ;;  %7299 = vmatmul.mubr.msk.f32.gmra.mrb[34].mxu0 %vm720_vm5, %v1449_v58 }
 0x909   : > { %7320 = vmatprep.mubr.msk.f32.mxu0 %vm8587_vm0, %v8588_v6 }
 0x90b   : > { %v1618_v62 = vpop.f32.mrb[36].mxu1 }
 0x90c   : > { %v7305_v63 = vpop.f32.mrb[37].mxu1  ;;  %7321 = vmatmul.mubr.msk.f32.vlgmr.msra.gmra.mrb[36].mxu0 %vm386_vm2, %v8745_v12 }
 0x90d   : > { %7323 = vmatprep.mubr.msk.f32.mxu0 %vm8587_vm0, %v8588_v6  ;;  %8169 = vmatpush3.bf16.msra.mxu0 %v8168_v60 }
 0x90e   : > { %8170 = vmatprep.subr.bf16.mxu0 %v8586_v3 }
 0x90f   : > { %v1623_v1 = vpop.f32.mrb[38].mxu1 }
 0x910   : > { %v7308_v2 = vpop.f32.mrb[39].mxu1  ;;  %7324 = vmatmul.mubr.msk.f32.gmra.mrb[38].mxu0 %vm386_vm2, %v8759_v19 }
 0x911   : > { %7326 = vmatprep.mubr.msk.f32.mxu0 %vm8587_vm0, %v8588_v6  ;;  %8172 = vmatpush3.bf16.msra.mxu0 %v8171_v0 }
 0x912   : > { %8177 = vmatprep.subr.bf16.mxu0 %v8586_v3 }
 0x913   : > { %v1628_v4 = vpop.f32.mrb[40].mxu1 }
 0x914   : > { %v7311_v5 = vpop.f32.mrb[41].mxu1  ;;  %7327 = vmatmul.mubr.msk.f32.gmra.mrb[40].mxu0 %vm386_vm2, %v8772_v24 }
 0x915   : > { %7354 = vmatprep.mubr.msk.f32.mxu0 %vm8587_vm0, %v8588_v6 }
 0x917   : > { %v1798_v7 = vpop.f32.mrb[42].mxu1 }
 0x918   : > { %v7339_v8 = vpop.f32.mrb[43].mxu1  ;;  %7355 = vmatmul.mubr.msk.f32.vlgmr.msra.gmra.mrb[42].mxu0 %vm386_vm2, %v8745_v12  ;;  %v1799_v13 = vadd.f32 %v6433_v9, %v1798_v7 }
 0x919   : > { %7357 = vmatprep.mubr.msk.f32.mxu0 %vm8587_vm0, %v8588_v6 }
 0x91b   : > { %v1803_v11 = vpop.f32.mrb[44].mxu1 }
 0x91c   : > { %v1804_v14 = vadd.f32 %v6433_v9, %v1803_v11  ;;  %v7342_v15 = vpop.f32.mrb[45].mxu1  ;;  %7358 = vmatmul.mubr.msk.f32.gmra.mrb[44].mxu0 %vm386_vm2, %v8759_v19 }
 0x91d   : > { %7360 = vmatprep.mubr.msk.f32.mxu0 %vm8587_vm0, %v8588_v6 }
 0x91e   : > { %v8174_v18 = vpack.c.bf16 %v1804_v14, %v1799_v13 }
 0x91f   : > { %v1808_v20 = vpop.f32.mrb[46].mxu1 }
 0x920   : > { %v7345_v22 = vpop.f32.mrb[47].mxu1  ;;  %7361 = vmatmul.mubr.msk.f32.gmra.mrb[46].mxu0 %vm386_vm2, %v8772_v24  ;;  %8176 = vmatpush3.bf16.xpose.msk.msra.mxu1 %vm8806_vm6, %v8174_v18  ;;  %v1809_v23 = vadd.f32 %v6433_v9, %v1808_v20 }
 0x921   : > { %7367 = vmatprep.subr.mxu1 %v8588_v6  ;;  %7384 = vmatprep.mubr.msk.f32.mxu0 %vm8587_vm0, %v8588_v6 }
 0x928   : > { %7368 = vmatpush3.xpose.msk.msra.mxu1 %vm720_vm5, %v1809_v23 }
 0x929   : > { %7393 = vmatprep.subr.mxu1 %v8588_v6 }
 0x9d3   : > { %v1529_v25 = vpop.f32.mrb[30].mxu0 }
 0x9d4   : > { %v9112_v29 = vadd.f32 %v1618_v62, %v1529_v25  ;;  %v7294_v31 = vpop.f32.mrb[31].mxu0 }
 0x9d7   : > { %v1534_v34 = vpop.f32.mrb[32].mxu0 }
 0x9d8   : > { %v9114_v36 = vadd.f32 %v1623_v1, %v1534_v34  ;;  %v7297_v38 = vpop.f32.mrb[33].mxu0 }
 0x9db   : > { %v1539_v39 = vpop.f32.mrb[34].mxu0 }
 0x9dc   : > { %v9116_v40 = vadd.f32 %v1628_v4, %v1539_v39  ;;  %v7300_v41 = vpop.f32.mrb[35].mxu0 }
 0x9df   : > { %v1708_v43 = vpop.f32.mrb[36].mxu0 }
 0x9e0   : > { %v1709_v44 = vadd.f32 %v6425_v42, %v1708_v43  ;;  %v7322_v45 = vpop.f32.mrb[37].mxu0 }
 0x9e2   : > { %7370 = vmatmul.mubr.msk.f32.vlgmr.msra.gmra.mrb[48].mxu1 %vm720_vm5, %v1709_v44  ;;  %v2131_v44 = vld [vmem:[%s10397_s6 + $0x10] sm:$0xff] }
 0x9e3   : > { %v1713_v46 = vpop.f32.mrb[38].mxu0  ;;  %7372 = vmatprep.mubr.msk.f32.mxu1 %vm8587_vm0, %v8588_v6  ;;  %7394 = vmatpush3.msra.mxu1 %v2131_v44 }
 0x9e4   : > { %v1714_v47 = vadd.f32 %v6425_v42, %v1713_v46  ;;  %v7325_v48 = vpop.f32.mrb[39].mxu0  ;;  %8186 = vmatprep.subr.bf16.mxu1 %v8586_v3 }
 0x9e5   : > { %v6458_v48 = vld [vmem:[%s10396_s5 + $0x60] sm:$0xff] }
 0x9e6   : > { %7373 = vmatmul.mubr.msk.f32.gmra.mrb[50].mxu1 %vm720_vm5, %v1714_v47 }
 0x9e7   : > { %v1718_v49 = vpop.f32.mrb[40].mxu0  ;;  %7375 = vmatprep.mubr.msk.f32.mxu1 %vm8587_vm0, %v8588_v6 }
 0x9e8   : > { %v1719_v28 = vadd.f32 %v6425_v42, %v1718_v49  ;;  %v7328_v30 = vpop.f32.mrb[41].mxu0  ;;  %v6459_v49 = vld [vmem:[%s10396_s5 + $0x68] sm:$0xff] }
 0x9e9   : > { %v8181_v30 = vpack.c.bf16 %v6459_v49, %v6458_v48 }
 0x9ea   : > { %7376 = vmatmul.mubr.msk.f32.gmra.mrb[52].mxu1 %vm720_vm5, %v1719_v28 }
 0x9eb   : > { %v1888_v33 = vpop.f32.mrb[42].mxu0  ;;  %7395 = vmatprep.mubr.msk.f32.mxu1 %vm8587_vm0, %v8588_v6 }
 0x9ec   : > { %v7356_v51 = vpop.f32.mrb[43].mxu0  ;;  %v1889_v53 = vadd.f32 %v6441_v52, %v1888_v33 }
 0x9ed   : > { %v6460_v51 = vld [vmem:[%s10396_s5 + $0x70] sm:$0xff] }
 0x9ef   : > { %v1893_v32 = vpop.f32.mrb[44].mxu0 }
 0x9f0   : > { %v1894_v54 = vadd.f32 %v6441_v52, %v1893_v32  ;;  %v7359_v55 = vpop.f32.mrb[45].mxu0 }
 0x9f2   : > { %v8178_v56 = vpack.c.bf16 %v1894_v54, %v1889_v53 }
 0x9f3   : > { %v1898_v57 = vpop.f32.mrb[46].mxu0 }
 0x9f4   : > { %v7362_v35 = vpop.f32.mrb[47].mxu0  ;;  %8179 = vmatpush3.bf16.msra.mxu0 %v8178_v56  ;;  %v1899_v58 = vadd.f32 %v6441_v52, %v1898_v57  ;;  %v6461_v52 = vld [vmem:[%s10396_s5 + $0x78] sm:$0xff]  ;;  %v6474_v57 = vld [vmem:[%s10396_s5 + $0x160] sm:$0xff] }
 0x9f5   : > { %7382 = vmatprep.subr.mxu0 %v8588_v6  ;;  %v8184_v53 = vpack.c.bf16 %v6461_v52, %v6460_v51  ;;  %v6475_v35 = vld [vmem:[%s10396_s5 + $0x168] sm:$0xff]  ;;  %v6470_v52 = vld [vmem:[%s10395_s4 + $0x1f] ss:$0 sm:$0xff] }
 0x9f8   : > { %7383 = vmatpush3.msk.msra.mxu0 %vm869_vm4, %v1899_v58  ;;  %v8193_v58 = vpack.c.bf16 %v6475_v35, %v6474_v57 }
 0x9f9   : > { %8180 = vmatprep.subr.bf16.mxu0 %v8586_v3 }
 0xab5   : > { %v1986_v59 = vpop.f32.mrb[48].mxu1 }
 0xab6   : > { %v2000_v60 = vmul.f32 0.35355338, %v1986_v59  ;;  %v7371_v37 = vpop.f32.mrb[49].mxu1  ;;  %v6476_v59 = vld [vmem:[%s10396_s5 + $0x170] sm:$0xff] }
 0xab8   : > { %v2003_v61 = vadd.f32 %v2000_v60, %v8882_v10  ;;  %v6477_v60 = vld [vmem:[%s10396_s5 + $0x178] sm:$0xff] }
 0xab9   : > { %v1991_v62 = vpop.f32.mrb[50].mxu1  ;;  %v8196_v37 = vpack.c.bf16 %v6477_v60, %v6476_v59 }
 0xaba   : > { %v2001_v63 = vmul.f32 0.35355338, %v1991_v62  ;;  %v7374_v0 = vpop.f32.mrb[51].mxu1  ;;  %v2006_v1 = vsel %vm825_vm7, %v2003_v61, -inf  ;;  %v6467_v62 = vld [vmem:[%s10396_s5 + $0xe8] sm:$0xff] }
 0xabb   : > { %2007 = vmax.xlane.f32.xlu0 %v2006_v1  ;;  %v6468_v0 = vld [vmem:[%s10396_s5 + $0xf0] sm:$0xff]  ;;  %v6469_v1 = vld [vmem:[%s10396_s5 + $0xf8] sm:$0xff] }
 0xabc   : > { %v2004_v2 = vadd.f32 %v2001_v63, %v8888_v17 }
 0xabd   : > { %v1996_v4 = vpop.f32.mrb[52].mxu1 }
 0xabe   : > { %v2002_v5 = vmul.f32 0.35355338, %v1996_v4  ;;  %v7377_v7 = vpop.f32.mrb[53].mxu1  ;;  %v2009_v8 = vsel %vm825_vm7, %v2004_v2, -inf }
 0xabf   : > { %2010 = vmax.xlane.f32.xlu1 %v2009_v8 }
 0xac0   : > { %v2005_v9 = vadd.f32 %v2002_v5, %v8895_v27  ;;  %v8190_v5 = vpack.c.bf16 %v6469_v1, %v6468_v0 }
 0xac2   : > { %v2012_v11 = vsel %vm832_vm8, %v2005_v9, -inf }
 0xac3   : > { %2013 = vmax.xlane.f32.xlu0 %v2012_v11 }
 0xb48   : > { %v2008_v13 = vpop.xlane.xlu0 %2007 }
 0xb49   : > { %v2015_v14 = vsub.f32 %v2003_v61, %v2008_v13  ;;  %v6466_v61 = vld [vmem:[%s10396_s5 + $0xe0] sm:$0xff] }
 0xb4a   : > { %v8187_v63 = vpack.c.bf16 %v6467_v62, %v6466_v61 }
 0xb4b   : > { %v2018_v15 = vmul.f32 1.442695, %v2015_v14 }
 0xb4c   : > { %v2011_v18 = vpop.xlane.xlu1 %2010 }
 0xb4d   : > { %8467 = vpow2.f32 %v2018_v15  ;;  %v2016_v20 = vsub.f32 %v2004_v2, %v2011_v18 }
 0xb4f   : > { %v2020_v22 = vmul.f32 1.442695, %v2016_v20 }
 0xb50   : > { %v2014_v23 = vpop.xlane.xlu0 %2013 }
 0xb51   : > { %8469 = vpow2.f32 %v2020_v22  ;;  %v2017_v25 = vsub.f32 %v2005_v9, %v2014_v23 }
 0xb53   : > { %v2022_v31 = vmul.f32 1.442695, %v2017_v25  ;;  %v6478_v25 = vld [vmem:[%s10395_s4 + $0x23] ss:$0 sm:$0xff] }
 0xb55   : > { %8471 = vpow2.f32 %v2022_v31 }
 0xb57   : > { %v8468_v34 = vpop.eup %8467 }
 0xb58   : > { %v2024_v38 = vsel %vm825_vm7, %v8468_v34, 0.0 }
 0xb59   : > { %2025 = vadd.xlane.f32.xlu1 %v2024_v38 }
 0xb5b   : > { %v8470_v39 = vpop.eup %8469 }
 0xb5c   : > { %v2027_v41 = vsel %vm825_vm7, %v8470_v39, 0.0 }
 0xb5d   : > { %2028 = vadd.xlane.f32.xlu0 %v2027_v41 }
 0xb5f   : > { %v8472_v42 = vpop.eup %8471 }
 0xb60   : > { %v2030_v43 = vsel %vm832_vm8, %v8472_v42, 0.0 }
 0xb61   : > { %2031 = vadd.xlane.f32.xlu1 %v2030_v43 }
 0xbe6   : > { %v2026_v45 = vpop.xlane.xlu1 %2025 }
 0xbe7   : > { %8473 = vrcp.f32 %v2026_v45 }
 0xbea   : > { %v2029_v46 = vpop.xlane.xlu0 %2028 }
 0xbeb   : > { %8475 = vrcp.f32 %v2029_v46 }
 0xbee   : > { %v2032_v47 = vpop.xlane.xlu1 %2031 }
 0xbef   : > { %8477 = vrcp.f32 %v2032_v47 }
 0xbf1   : > { %v8474_v28 = vpop.eup %8473 }
 0xbf2   : > { %v2036_v33 = vmul.f32 %v8474_v28, %v8468_v34 }
 0xbf4   : > { %7385 = vmatmul.mubr.msk.f32.vlgmr.msra.gmra.mrb[48].mxu0 %vm825_vm7, %v2036_v33 }
 0xbf5   : > { %v8476_v32 = vpop.eup %8475  ;;  %7387 = vmatprep.mubr.msk.f32.mxu0 %vm8587_vm0, %v8588_v6  ;;  %8182 = vmatpush3.bf16.msra.mxu0 %v8181_v30 }
 0xbf6   : > { %v2037_v54 = vmul.f32 %v8476_v32, %v8470_v39  ;;  %8183 = vmatprep.subr.bf16.mxu0 %v8586_v3 }
 0xbf8   : > { %7388 = vmatmul.mubr.msk.f32.gmra.mrb[50].mxu0 %vm825_vm7, %v2037_v54 }
 0xbf9   : > { %v8478_v55 = vpop.eup %8477  ;;  %7390 = vmatprep.mubr.msk.f32.mxu0 %vm8587_vm0, %v8588_v6  ;;  %8185 = vmatpush3.bf16.msra.mxu0 %v8184_v53 }
 0xbfa   : > { %v2038_v56 = vmul.f32 %v8478_v55, %v8472_v42  ;;  %8192 = vmatprep.subr.bf16.mxu0 %v8586_v3 }
 0xbfc   : > { %7391 = vmatmul.mubr.msk.f32.gmra.mrb[52].mxu0 %vm825_vm7, %v2038_v56 }
 0xbfd   : > { %7412 = vmatprep.mubr.msk.f32.mxu0 %vm8587_vm0, %v8588_v6 }
 0xc00   : > { %7413 = vmatmul.mubr.msk.f32.vlgmr.msra.gmra.mrb[54].mxu0 %vm386_vm2, %v8745_v12 }
 0xc01   : > { %7415 = vmatprep.mubr.msk.f32.mxu0 %vm8587_vm0, %v8588_v6  ;;  %8194 = vmatpush3.bf16.msra.mxu0 %v8193_v58 }
 0xc02   : > { %8195 = vmatprep.subr.bf16.mxu0 %v8586_v3 }
 0xc04   : > { %7416 = vmatmul.mubr.msk.f32.gmra.mrb[56].mxu0 %vm386_vm2, %v8759_v19 }
 0xc05   : > { %7418 = vmatprep.mubr.msk.f32.mxu0 %vm8587_vm0, %v8588_v6  ;;  %8197 = vmatpush3.bf16.msra.mxu0 %v8196_v37 }
 0xc06   : > { %8202 = vmatprep.subr.bf16.mxu0 %v8586_v3 }
 0xc08   : > { %7419 = vmatmul.mubr.msk.f32.gmra.mrb[58].mxu0 %vm386_vm2, %v8772_v24 }
 0xc09   : > { %7446 = vmatprep.mubr.msk.f32.mxu0 %vm8587_vm0, %v8588_v6 }
 0xc0c   : > { %7447 = vmatmul.mubr.msk.f32.vlgmr.msra.gmra.mrb[60].mxu0 %vm386_vm2, %v8745_v12 }
 0xc0d   : > { %7449 = vmatprep.mubr.msk.f32.mxu0 %vm8587_vm0, %v8588_v6 }
 0xc10   : > { %7450 = vmatmul.mubr.msk.f32.gmra.mrb[62].mxu0 %vm386_vm2, %v8759_v19 }
 0xc11   : > { %7452 = vmatprep.mubr.msk.f32.mxu0 %vm8587_vm0, %v8588_v6 }
 0xc14   : > { %7453 = vmatmul.mubr.msk.f32.gmra.mrb[64].mxu0 %vm386_vm2, %v8772_v24 }
 0xc15   : > { %7476 = vmatprep.mubr.msk.f32.mxu0 %vm8587_vm0, %v8588_v6 }
 0xcc7   : > { %v2117_v2 = vpop.f32.mrb[48].mxu0 }
 0xcc8   : > { %v7386_v4 = vpop.f32.mrb[49].mxu0  ;;  %7396 = vmatmul.mubr.msk.f32.vlgmr.msra.gmra.mrb[54].mxu1 %vm720_vm5, %v2117_v2 }
 0xcc9   : > { %7398 = vmatprep.mubr.msk.f32.mxu1 %vm8587_vm0, %v8588_v6  ;;  %8188 = vmatpush3.bf16.msra.mxu1 %v8187_v63 }
 0xcca   : > { %8189 = vmatprep.subr.bf16.mxu1 %v8586_v3 }
 0xccb   : > { %v2122_v7 = vpop.f32.mrb[50].mxu0 }
 0xccc   : > { %v7389_v8 = vpop.f32.mrb[51].mxu0  ;;  %7399 = vmatmul.mubr.msk.f32.gmra.mrb[56].mxu1 %vm720_vm5, %v2122_v7 }
 0xccd   : > { %7401 = vmatprep.mubr.msk.f32.mxu1 %vm8587_vm0, %v8588_v6  ;;  %8191 = vmatpush3.bf16.msra.mxu1 %v8190_v5 }
 0xcce   : > { %8198 = vmatprep.subr.bf16.mxu1 %v8586_v3 }
 0xccf   : > { %v2127_v9 = vpop.f32.mrb[52].mxu0 }
 0xcd0   : > { %v7392_v11 = vpop.f32.mrb[53].mxu0  ;;  %7402 = vmatmul.mubr.msk.f32.gmra.mrb[58].mxu1 %vm720_vm5, %v2127_v9 }
 0xcd1   : > { %7429 = vmatprep.mubr.msk.f32.mxu1 %vm8587_vm0, %v8588_v6 }
 0xcd3   : > { %v2300_v13 = vpop.f32.mrb[54].mxu0 }
 0xcd4   : > { %v7414_v14 = vpop.f32.mrb[55].mxu0  ;;  %7430 = vmatmul.mubr.msk.f32.vlgmr.msra.gmra.mrb[60].mxu1 %vm386_vm2, %v8745_v12 }
 0xcd5   : > { %7432 = vmatprep.mubr.msk.f32.mxu1 %vm8587_vm0, %v8588_v6 }
 0xcd7   : > { %v2305_v15 = vpop.f32.mrb[56].mxu0 }
 0xcd8   : > { %v7417_v18 = vpop.f32.mrb[57].mxu0  ;;  %7433 = vmatmul.mubr.msk.f32.gmra.mrb[62].mxu1 %vm386_vm2, %v8759_v19 }
 0xcd9   : > { %7435 = vmatprep.mubr.msk.f32.mxu1 %vm8587_vm0, %v8588_v6 }
 0xcdb   : > { %v2310_v20 = vpop.f32.mrb[58].mxu0 }
 0xcdc   : > { %v7420_v22 = vpop.f32.mrb[59].mxu0  ;;  %7436 = vmatmul.mubr.msk.f32.gmra.mrb[64].mxu1 %vm386_vm2, %v8772_v24 }
 0xcdd   : > { %7461 = vmatprep.mubr.msk.f32.mxu1 %vm8587_vm0, %v8588_v6 }
 0xcdf   : > { %v2480_v12 = vpop.f32.mrb[60].mxu0 }
 0xce0   : > { %v7448_v23 = vpop.f32.mrb[61].mxu0  ;;  %v2481_v34 = vadd.f32 %v6478_v25, %v2480_v12 }
 0xce3   : > { %v2485_v31 = vpop.f32.mrb[62].mxu0 }
 0xce4   : > { %v2486_v19 = vadd.f32 %v6478_v25, %v2485_v31  ;;  %v7451_v38 = vpop.f32.mrb[63].mxu0 }
 0xce6   : > { %v8203_v39 = vpack.c.bf16 %v2486_v19, %v2481_v34 }
 0xce7   : > { %v2490_v41 = vpop.f32.mrb[64].mxu0 }
 0xce8   : > { %v7454_v42 = vpop.f32.mrb[65].mxu0  ;;  %8204 = vmatpush3.bf16.msra.mxu0 %v8203_v39  ;;  %v2491_v24 = vadd.f32 %v6478_v25, %v2490_v41  ;;  %v2723_v39 = vld [vmem:[%s10397_s6 + $0x18] sm:$0xff] }
 0xce9   : > { %7474 = vmatprep.subr.mxu0 %v8588_v6 }
 0xcec   : > { %7475 = vmatpush3.msk.msra.mxu0 %vm869_vm4, %v2491_v24 }
 0xced   : > { %8205 = vmatprep.subr.bf16.mxu0 %v8586_v3 }
 0xd9b   : > { %v2207_v43 = vpop.f32.mrb[54].mxu1 }
 0xd9c   : > { %v9252_v44 = vadd.f32 %v2207_v43, %v9112_v29  ;;  %v7397_v45 = vpop.f32.mrb[55].mxu1 }
 0xd9f   : > { %v2212_v46 = vpop.f32.mrb[56].mxu1 }
 0xda0   : > { %v9255_v47 = vadd.f32 %v2212_v46, %v9114_v36  ;;  %v7400_v48 = vpop.f32.mrb[57].mxu1 }
 0xda3   : > { %v2217_v49 = vpop.f32.mrb[58].mxu1 }
 0xda4   : > { %v9258_v28 = vadd.f32 %v2217_v49, %v9116_v40  ;;  %v7403_v30 = vpop.f32.mrb[59].mxu1  ;;  %v6462_v40 = vld [vmem:[%s10395_s4 + $0x1b] ss:$0 sm:$0xff] }
 0xda5   : > { %v2301_v35 = vadd.f32 %v6462_v40, %v2300_v13  ;;  %v2306_v58 = vadd.f32 %v6462_v40, %v2305_v15  ;;  %v2311_v59 = vadd.f32 %v6462_v40, %v2310_v20 }
 0xda7   : > { %v2390_v33 = vpop.f32.mrb[60].mxu1 }
 0xda8   : > { %v7431_v51 = vpop.f32.mrb[61].mxu1  ;;  %v2391_v29 = vadd.f32 %v6470_v52, %v2390_v33 }
 0xdab   : > { %v2395_v32 = vpop.f32.mrb[62].mxu1 }
 0xdac   : > { %v2396_v53 = vadd.f32 %v6470_v52, %v2395_v32  ;;  %v7434_v54 = vpop.f32.mrb[63].mxu1 }
 0xdae   : > { %v8199_v55 = vpack.c.bf16 %v2396_v53, %v2391_v29 }
 0xdaf   : > { %v2400_v56 = vpop.f32.mrb[64].mxu1 }
 0xdb0   : > { %v7437_v36 = vpop.f32.mrb[65].mxu1  ;;  %8201 = vmatpush3.bf16.xpose.msk.msra.mxu1 %vm8806_vm6, %v8199_v55  ;;  %v2401_v57 = vadd.f32 %v6470_v52, %v2400_v56 }
 0xdb1   : > { %7459 = vmatprep.subr.mxu1 %v8588_v6  ;;  %v6495_v36 = vld [vmem:[%s10395_s4 + $0x4] ss:$0 sm:$0xff] }
 0xdb8   : > { %7460 = vmatpush3.xpose.msk.msra.mxu1 %vm720_vm5, %v2401_v57 }
 0xdb9   : > { %7485 = vmatprep.subr.mxu1 %v8588_v6 }
 0xdbb   : > { %7462 = vmatmul.mubr.msk.f32.vlgmr.msra.gmra.mrb[66].mxu1 %vm720_vm5, %v2301_v35 }
 0xdbc   : > { %7464 = vmatprep.mubr.msk.f32.mxu1 %vm8587_vm0, %v8588_v6  ;;  %7486 = vmatpush3.msra.mxu1 %v2723_v39 }
 0xdbd   : > { %8211 = vmatprep.subr.bf16.mxu1 %v8586_v3 }
 0xdbf   : > { %7465 = vmatmul.mubr.msk.f32.gmra.mrb[68].mxu1 %vm720_vm5, %v2306_v58 }
 0xdc0   : > { %7467 = vmatprep.mubr.msk.f32.mxu1 %vm8587_vm0, %v8588_v6 }
 0xdc3   : > { %7468 = vmatmul.mubr.msk.f32.gmra.mrb[70].mxu1 %vm720_vm5, %v2311_v59 }
 0xdc4   : > { %7487 = vmatprep.mubr.msk.f32.mxu1 %vm8587_vm0, %v8588_v6 }
 0xe8e   : > { %v2578_v60 = vpop.f32.mrb[66].mxu1 }
 0xe8f   : > { %v2592_v37 = vmul.f32 0.35355338, %v2578_v60  ;;  %v7463_v61 = vpop.f32.mrb[67].mxu1 }
 0xe91   : > { %v2595_v62 = vadd.f32 %v2592_v37, %v8882_v10 }
 0xe92   : > { %v2583_v63 = vpop.f32.mrb[68].mxu1 }
 0xe93   : > { %v2593_v0 = vmul.f32 0.35355338, %v2583_v63  ;;  %v7466_v1 = vpop.f32.mrb[69].mxu1  ;;  %v2598_v2 = vsel %vm825_vm7, %v2595_v62, -inf }
 0xe94   : > { %2599 = vmax.xlane.f32.xlu0 %v2598_v2 }
 0xe95   : > { %v2596_v4 = vadd.f32 %v2593_v0, %v8888_v17 }
 0xe96   : > { %v2588_v5 = vpop.f32.mrb[70].mxu1 }
 0xe97   : > { %v2594_v7 = vmul.f32 0.35355338, %v2588_v5  ;;  %v7469_v8 = vpop.f32.mrb[71].mxu1  ;;  %v2601_v9 = vsel %vm825_vm7, %v2596_v4, -inf }
 0xe98   : > { %2602 = vmax.xlane.f32.xlu1 %v2601_v9 }
 0xe99   : > { %v2597_v11 = vadd.f32 %v2594_v7, %v8895_v27 }
 0xe9b   : > { %v2604_v13 = vsel %vm832_vm8, %v2597_v11, -inf }
 0xe9c   : > { %2605 = vmax.xlane.f32.xlu0 %v2604_v13 }
 0xf21   : > { %v2600_v10 = vpop.xlane.xlu0 %2599 }
 0xf22   : > { %v2607_v14 = vsub.f32 %v2595_v62, %v2600_v10 }
 0xf24   : > { %v2610_v15 = vmul.f32 1.442695, %v2607_v14 }
 0xf25   : > { %v2603_v18 = vpop.xlane.xlu1 %2602 }
 0xf26   : > { %8479 = vpow2.f32 %v2610_v15  ;;  %v2608_v20 = vsub.f32 %v2596_v4, %v2603_v18 }
 0xf28   : > { %v2612_v22 = vmul.f32 1.442695, %v2608_v20  ;;  %v2882_v20 = vld [vmem:[%s10397_s6 + $0x20] sm:$0xff] }
 0xf29   : > { %v2606_v12 = vpop.xlane.xlu0 %2605 }
 0xf2a   : > { %8481 = vpow2.f32 %v2612_v22  ;;  %v2609_v17 = vsub.f32 %v2597_v11, %v2606_v12  ;;  %v2883_v22 = vld [vmem:[%s10397_s6 + $0x28] sm:$0xff] }
 0xf2b   : > { %v8206_v12 = vpack.c.bf16 %v2883_v22, %v2882_v20 }
 0xf2c   : > { %v2614_v23 = vmul.f32 1.442695, %v2609_v17  ;;  %v2884_v17 = vld [vmem:[%s10397_s6 + $0x30] sm:$0xff] }
 0xf2e   : > { %8483 = vpow2.f32 %v2614_v23  ;;  %v2885_v23 = vld [vmem:[%s10397_s6 + $0x38] sm:$0xff] }
 0xf30   : > { %v8480_v25 = vpop.eup %8479 }
 0xf31   : > { %v2616_v31 = vsel %vm825_vm7, %v8480_v25, 0.0 }
 0xf32   : > { %2617 = vadd.xlane.f32.xlu1 %v2616_v31  ;;  %v3007_v31 = vld [vmem:[%s10397_s6 + $0x40] sm:$0xff] }
 0xf34   : > { %v8482_v27 = vpop.eup %8481 }
 0xf35   : > { %v2619_v34 = vsel %vm825_vm7, %v8482_v27, 0.0 }
 0xf36   : > { %2620 = vadd.xlane.f32.xlu0 %v2619_v34 }
 0xf38   : > { %v8484_v19 = vpop.eup %8483 }
 0xf39   : > { %v2622_v38 = vsel %vm832_vm8, %v8484_v19, 0.0 }
 0xf3a   : > { %2623 = vadd.xlane.f32.xlu1 %v2622_v38 }
 0xfbf   : > { %v2618_v41 = vpop.xlane.xlu1 %2617 }
 0xfc0   : > { %8485 = vrcp.f32 %v2618_v41 }
 0xfc3   : > { %v2621_v42 = vpop.xlane.xlu0 %2620 }
 0xfc4   : > { %8487 = vrcp.f32 %v2621_v42 }
 0xfc7   : > { %v2624_v24 = vpop.xlane.xlu1 %2623 }
 0xfc8   : > { %8489 = vrcp.f32 %v2624_v24 }
 0xfca   : > { %v8486_v43 = vpop.eup %8485 }
 0xfcb   : > { %v2628_v45 = vmul.f32 %v8486_v43, %v8480_v25  ;;  %v8209_v25 = vpack.c.bf16 %v2885_v23, %v2884_v17 }
 0xfcd   : > { %7477 = vmatmul.mubr.msk.f32.vlgmr.msra.gmra.mrb[66].mxu0 %vm825_vm7, %v2628_v45 }
 0xfce   : > { %v8488_v46 = vpop.eup %8487  ;;  %7479 = vmatprep.mubr.msk.f32.mxu0 %vm8587_vm0, %v8588_v6  ;;  %8207 = vmatpush3.bf16.msra.mxu0 %v8206_v12 }
 0xfcf   : > { %v2629_v48 = vmul.f32 %v8488_v46, %v8482_v27  ;;  %8208 = vmatprep.subr.bf16.mxu0 %v8586_v3  ;;  %v3008_v27 = vld [vmem:[%s10397_s6 + $0x48] sm:$0xff] }
 0xfd0   : > { %v8212_v34 = vpack.c.bf16 %v3008_v27, %v3007_v31 }
 0xfd1   : > { %7480 = vmatmul.mubr.msk.f32.gmra.mrb[68].mxu0 %vm825_vm7, %v2629_v48 }
 0xfd2   : > { %v8490_v49 = vpop.eup %8489  ;;  %7482 = vmatprep.mubr.msk.f32.mxu0 %vm8587_vm0, %v8588_v6  ;;  %8210 = vmatpush3.bf16.msra.mxu0 %v8209_v25 }
 0xfd3   : > { %v2630_v30 = vmul.f32 %v8490_v49, %v8484_v19  ;;  %8235 = vmatprep.subr.bf16.mxu0 %v8586_v3  ;;  %v6496_v49 = vld [vmem:[%s10395_s4 + $0x2] ss:$0 sm:$0xff] }
 0xfd5   : > { %7483 = vmatmul.mubr.msk.f32.gmra.mrb[70].mxu0 %vm825_vm7, %v2630_v30 }
 0xfd6   : > { %7504 = vmatprep.mubr.msk.f32.mxu0 %vm8587_vm0, %v8588_v6 }
0x10a0   : > { %v2709_v33 = vpop.f32.mrb[66].mxu0 }
0x10a1   : > { %v7478_v51 = vpop.f32.mrb[67].mxu0  ;;  %7488 = vmatmul.mubr.msk.f32.vlgmr.msra.gmra.mrb[72].mxu1 %vm720_vm5, %v2709_v33  ;;  %v6497_v33 = vld [vmem:[%s10395_s4 + $0x3] ss:$0 sm:$0xff] }
0x10a2   : > { %7490 = vmatprep.mubr.msk.f32.mxu1 %vm8587_vm0, %v8588_v6  ;;  %8213 = vmatpush3.bf16.msra.mxu1 %v8212_v34 }
0x10a3   : > { %8214 = vmatprep.subr.bf16.mxu1 %v8586_v3 }
0x10a4   : > { %v2714_v52 = vpop.f32.mrb[68].mxu0 }
0x10a5   : > { %v7481_v32 = vpop.f32.mrb[69].mxu0  ;;  %7491 = vmatmul.mubr.msk.f32.gmra.mrb[74].mxu1 %vm720_vm5, %v2714_v52 }
0x10a6   : > { %7493 = vmatprep.mubr.msk.f32.mxu1 %vm8587_vm0, %v8588_v6 }
0x10a8   : > { %v2719_v29 = vpop.f32.mrb[70].mxu0 }
0x10a9   : > { %v7484_v53 = vpop.f32.mrb[71].mxu0  ;;  %7494 = vmatmul.mubr.msk.f32.gmra.mrb[76].mxu1 %vm720_vm5, %v2719_v29 }
0x10aa   : > { %7545 = vmatprep.mubr.msk.f32.mxu1 %vm8587_vm0, %v8588_v6 }
0x1174   : > { %v2799_v54 = vpop.f32.mrb[72].mxu1 }
0x1175   : > { %v2813_v55 = vadd.f32 %v2799_v54, %v9252_v44  ;;  %v7489_v56 = vpop.f32.mrb[73].mxu1 }
0x1177   : > { %v2816_v40 = vadd.f32 %v2813_v55, %v8681_v16 }
0x1178   : > { %v2804_v57 = vpop.f32.mrb[74].mxu1 }
0x1179   : > { %v9316_v35 = vadd.f32 %v6495_v36, %v2816_v40  ;;  %v2814_v58 = vadd.f32 %v2804_v57, %v9255_v47  ;;  %v7492_v59 = vpop.f32.mrb[75].mxu1  ;;  %v3009_v57 = vld [vmem:[%s10397_s6 + $0x50] sm:$0xff] }
0x117b   : > { %v2817_v60 = vadd.f32 %v2814_v58, %v8688_v21  ;;  %v2829_v37 = vsel %vm386_vm2, %v9316_v35, 0.0  ;;  %v3010_v58 = vld [vmem:[%s10397_s6 + $0x58] sm:$0xff] }
0x117c   : > { %2830 = vadd.xlane.f32.xlu0 %v2829_v37  ;;  %v2809_v44 = vpop.f32.mrb[76].mxu1  ;;  %v8215_v59 = vpack.c.bf16 %v3010_v58, %v3009_v57  ;;  %v3012_v37 = vld [vmem:[%s10397_s6 + $0x68] sm:$0xff]  ;;  %v6502_v57 = vld [vmem:[%s10395_s4 + $0x5] ss:$0 sm:$0xff] }
0x117d   : > { %v9322_v61 = vadd.f32 %v6495_v36, %v2817_v60  ;;  %v2815_v62 = vadd.f32 %v2809_v44, %v9258_v28  ;;  %v7495_v63 = vpop.f32.mrb[77].mxu1  ;;  %v3011_v60 = vld [vmem:[%s10397_s6 + $0x60] sm:$0xff] }
0x117e   : > { %8216 = vmatpush3.bf16.msra.mxu1 %v8215_v59  ;;  %v8218_v44 = vpack.c.bf16 %v3012_v37, %v3011_v60  ;;  %v3014_v63 = vld [vmem:[%s10397_s6 + $0x78] sm:$0xff] }
0x117f   : > { %v2818_v16 = vadd.f32 %v2815_v62, %v8695_v26  ;;  %v2832_v0 = vsel %vm386_vm2, %v9322_v61, 0.0  ;;  %8217 = vmatprep.subr.bf16.mxu1 %v8586_v3  ;;  %v3013_v62 = vld [vmem:[%s10397_s6 + $0x70] sm:$0xff] }
0x1180   : > { %2833 = vadd.xlane.f32.xlu1 %v2832_v0  ;;  %v3015_v0 = vld [vmem:[%s10397_s6 + $0x80] sm:$0xff] }
0x1181   : > { %v9328_v47 = vadd.f32 %v6495_v36, %v2818_v16  ;;  %v8221_v16 = vpack.c.bf16 %v3014_v63, %v3013_v62 }
0x1182   : > { %8219 = vmatpush3.bf16.msra.mxu1 %v8218_v44 }
0x1183   : > { %v2835_v21 = vsel %vm393_vm3, %v9328_v47, 0.0  ;;  %8220 = vmatprep.subr.bf16.mxu1 %v8586_v3 }
0x1184   : > { %2836 = vadd.xlane.f32.xlu0 %v2835_v21  ;;  %v3016_v21 = vld [vmem:[%s10397_s6 + $0x88] sm:$0xff] }
0x1186   : > { %8222 = vmatpush3.bf16.msra.mxu1 %v8221_v16 }
0x1187   : > { %8223 = vmatprep.subr.bf16.mxu1 %v8586_v3 }
0x1209   : > { %v2831_v1 = vpop.xlane.xlu0 %2830 }
0x120a   : > { %v2838_v2 = vmul.f32 0.03125, %v2831_v1  ;;  %v8224_v1 = vpack.c.bf16 %v3016_v21, %v3015_v0 }
0x120c   : > { %v2841_v4 = vsub.f32 %v9316_v35, %v2838_v2  ;;  %8225 = vmatpush3.bf16.msra.mxu1 %v8224_v1  ;;  %v3017_v2 = vld [vmem:[%s10397_s6 + $0x90] sm:$0xff] }
0x120d   : > { %v2834_v5 = vpop.xlane.xlu1 %2833  ;;  %8226 = vmatprep.subr.bf16.mxu1 %v8586_v3 }
0x120e   : > { %v2839_v7 = vmul.f32 0.03125, %v2834_v5  ;;  %v2844_v28 = vmul.f32 %v2841_v4, %v2841_v4 }
0x1210   : > { %v2842_v8 = vsub.f32 %v9322_v61, %v2839_v7  ;;  %v2847_v26 = vsel %vm386_vm2, %v2844_v28, 0.0  ;;  %v3019_v7 = vld [vmem:[%s10397_s6 + $0xa0] sm:$0xff]  ;;  %v3020_v28 = vld [vmem:[%s10397_s6 + $0xa8] sm:$0xff] }
0x1211   : > { %2848 = vadd.xlane.f32.xlu1 %v2847_v26  ;;  %v2837_v9 = vpop.xlane.xlu0 %2836  ;;  %v3021_v26 = vld [vmem:[%s10397_s6 + $0xb0] sm:$0xff] }
0x1212   : > { %v2840_v11 = vmul.f32 0.03125, %v2837_v9  ;;  %v2845_v13 = vmul.f32 %v2842_v8, %v2842_v8  ;;  %v3022_v9 = vld [vmem:[%s10397_s6 + $0xb8] sm:$0xff] }
0x1214   : > { %v2843_v10 = vsub.f32 %v9328_v47, %v2840_v11  ;;  %v2850_v14 = vsel %vm386_vm2, %v2845_v13, 0.0  ;;  %v8233_v11 = vpack.c.bf16 %v3022_v9, %v3021_v26  ;;  %v6498_v13 = vld [vmem:[%s10395_s4 + $0x6] ss:$0 sm:$0xff] }
0x1215   : > { %2851 = vadd.xlane.f32.xlu0 %v2850_v14 }
0x1216   : > { %v2846_v15 = vmul.f32 %v2843_v10, %v2843_v10 }
0x1218   : > { %v2853_v18 = vsel %vm393_vm3, %v2846_v15, 0.0 }
0x1219   : > { %2854 = vadd.xlane.f32.xlu1 %v2853_v18 }
0x129e   : > { %v2849_v19 = vpop.xlane.xlu1 %2848 }
0x129f   : > { %v2856_v38 = vmul.f32 0.03125, %v2849_v19 }
0x12a1   : > { %v2859_v39 = vadd.f32 1e-06, %v2856_v38 }
0x12a2   : > { %v2852_v41 = vpop.xlane.xlu0 %2851 }
0x12a3   : > { %8491 = vrsqrt.f32 %v2859_v39  ;;  %v2857_v42 = vmul.f32 0.03125, %v2852_v41 }
0x12a5   : > { %v2860_v24 = vadd.f32 1e-06, %v2857_v42 }
0x12a6   : > { %v2855_v43 = vpop.xlane.xlu1 %2854 }
0x12a7   : > { %8493 = vrsqrt.f32 %v2860_v24  ;;  %v2858_v45 = vmul.f32 0.03125, %v2855_v43 }
0x12a9   : > { %v2861_v46 = vadd.f32 1e-06, %v2858_v45 }
0x12ab   : > { %8495 = vrsqrt.f32 %v2861_v46 }
0x12ad   : > { %v8492_v48 = vpop.eup %8491 }
0x12ae   : > { %v2865_v30 = vmul.f32 %v8492_v48, %v2841_v4  ;;  %v3018_v4 = vld [vmem:[%s10397_s6 + $0x98] sm:$0xff] }
0x12af   : > { %v8227_v5 = vpack.c.bf16 %v3018_v4, %v3017_v2 }
0x12b0   : > { %v2872_v51 = vmul.f32 %v6496_v49, %v2865_v30 }
0x12b1   : > { %v8494_v52 = vpop.eup %8493  ;;  %8228 = vmatpush3.bf16.msra.mxu1 %v8227_v5 }
0x12b2   : > { %v2879_v32 = vadd.f32 %v6497_v33, %v2872_v51  ;;  %v2866_v29 = vmul.f32 %v8494_v52, %v2842_v8  ;;  %8229 = vmatprep.subr.bf16.mxu1 %v8586_v3  ;;  %v8230_v8 = vpack.c.bf16 %v3020_v28, %v3019_v7 }
0x12b4   : > { %7505 = vmatmul.mubr.msk.f32.vlgmr.msra.gmra.mrb[72].mxu0 %vm386_vm2, %v2879_v32  ;;  %v2873_v53 = vmul.f32 %v6496_v49, %v2866_v29 }
0x12b5   : > { %v8496_v54 = vpop.eup %8495  ;;  %7507 = vmatprep.mubr.msk.f32.mxu0 %vm8587_vm0, %v8588_v6  ;;  %8231 = vmatpush3.bf16.msra.mxu1 %v8230_v8 }
0x12b6   : > { %v2880_v55 = vadd.f32 %v6497_v33, %v2873_v53  ;;  %v2867_v56 = vmul.f32 %v8496_v54, %v2843_v10  ;;  %8232 = vmatprep.subr.bf16.mxu1 %v8586_v3 }
0x12b8   : > { %7508 = vmatmul.mubr.msk.f32.gmra.mrb[74].mxu0 %vm386_vm2, %v2880_v55  ;;  %v2874_v36 = vmul.f32 %v6496_v49, %v2867_v56 }
0x12b9   : > { %7510 = vmatprep.mubr.msk.f32.mxu0 %vm8587_vm0, %v8588_v6  ;;  %8234 = vmatpush3.bf16.msra.mxu1 %v8233_v11 }
0x12ba   : > { %v2881_v40 = vadd.f32 %v6497_v33, %v2874_v36  ;;  %8253 = vmatprep.subr.bf16.mxu1 %v8586_v3 }
0x12bc   : > { %7511 = vmatmul.mubr.msk.f32.gmra.mrb[76].mxu0 %vm386_vm2, %v2881_v40 }
0x12bd   : > { %7562 = vmatprep.mubr.msk.f32.mxu0 %vm8587_vm0, %v8588_v6 }
0x1387   : > { %v2966_v10 = vpop.f32.mrb[72].mxu0 }
0x1388   : > { %v2967_v14 = vadd.f32 %v6498_v13, %v2966_v10  ;;  %v7506_v15 = vpop.f32.mrb[73].mxu0 }
0x138a   : > { %v2980_v18 = vmul.f32 %v2967_v14, %v2967_v14 }
0x138b   : > { %v2971_v20 = vpop.f32.mrb[74].mxu0 }
0x138c   : > { %v2983_v22 = vmul.f32 %v2980_v18, %v2967_v14  ;;  %v2972_v12 = vadd.f32 %v6498_v13, %v2971_v20  ;;  %v7509_v17 = vpop.f32.mrb[75].mxu0 }
0x138d   : > { %v6506_v17 = vld [vmem:[%s10396_s5 + $0x188] sm:$0xff] }
0x138e   : > { %v2986_v23 = vmul.f32 0.044715, %v2983_v22  ;;  %v2981_v25 = vmul.f32 %v2972_v12, %v2972_v12 }
0x138f   : > { %v2976_v31 = vpop.f32.mrb[76].mxu0 }
0x1390   : > { %v2989_v27 = vadd.f32 %v2986_v23, %v2967_v14  ;;  %v2984_v34 = vmul.f32 %v2981_v25, %v2972_v12  ;;  %v2977_v19 = vadd.f32 %v6498_v13, %v2976_v31  ;;  %v7512_v38 = vpop.f32.mrb[77].mxu0  ;;  %v6507_v25 = vld [vmem:[%s10396_s5 + $0x190] sm:$0xff]  ;;  %v6508_v31 = vld [vmem:[%s10396_s5 + $0x198] sm:$0xff] }
0x1392   : > { %v2992_v39 = vmul.f32 0.7978846, %v2989_v27  ;;  %v2987_v41 = vmul.f32 0.044715, %v2984_v34  ;;  %v2982_v42 = vmul.f32 %v2977_v19, %v2977_v19  ;;  %v8239_v27 = vpack.c.bf16 %v6508_v31, %v6507_v25  ;;  %v6540_v31 = vld [vmem:[%s10396_s5 + $0x1a0] sm:$0xff] }
0x1394   : > { %8497 = vtanh.f32 %v2992_v39  ;;  %v2990_v24 = vadd.f32 %v2987_v41, %v2972_v12  ;;  %v2985_v43 = vmul.f32 %v2982_v42, %v2977_v19 }
0x1396   : > { %v2993_v45 = vmul.f32 0.7978846, %v2990_v24  ;;  %v2988_v46 = vmul.f32 0.044715, %v2985_v43 }
0x1398   : > { %v2991_v48 = vadd.f32 %v2988_v46, %v2977_v19  ;;  %8499 = vtanh.f32 %v2993_v45 }
0x139a   : > { %v2994_v49 = vmul.f32 0.7978846, %v2991_v48  ;;  %v6503_v48 = vld [vmem:[%s10395_s4 + $0x8] ss:$0 sm:$0xff] }
0x139c   : > { %8501 = vtanh.f32 %v2994_v49 }
0x139e   : > { %v8498_v30 = vpop.eup %8497 }
0x139f   : > { %v2998_v33 = vadd.f32 1.0, %v8498_v30  ;;  %v6513_v30 = vld [vmem:[%s10396_s5 + $0x200] sm:$0xff] }
0x13a1   : > { %v3001_v51 = vmul.f32 0.5, %v2998_v33  ;;  %v6514_v33 = vld [vmem:[%s10396_s5 + $0x208] sm:$0xff] }
0x13a2   : > { %v8500_v52 = vpop.eup %8499 }
0x13a3   : > { %v3004_v32 = vmul.f32 %v3001_v51, %v2967_v14  ;;  %v2999_v29 = vadd.f32 1.0, %v8500_v52  ;;  %v6504_v51 = vld [vmem:[%s10395_s4 + $0x9] ss:$0 sm:$0xff] }
0x13a5   : > { %7546 = vmatmul.mubr.f32.vlgmr.msra.gmra.mrb[78].mxu1 %v3004_v32  ;;  %v3002_v53 = vmul.f32 0.5, %v2999_v29  ;;  %v8242_v29 = vpack.c.bf16 %v6514_v33, %v6513_v30 }
0x13a6   : > { %v8502_v54 = vpop.eup %8501  ;;  %7548 = vmatprep.mubr.msk.f32.mxu1 %vm8587_vm0, %v8588_v6 }
0x13a7   : > { %v3005_v55 = vmul.f32 %v3002_v53, %v2972_v12  ;;  %v3000_v56 = vadd.f32 1.0, %v8502_v54  ;;  %v6505_v12 = vld [vmem:[%s10396_s5 + $0x180] sm:$0xff] }
0x13a8   : > { %v8236_v23 = vpack.c.bf16 %v6506_v17, %v6505_v12  ;;  %v6525_v17 = vld [vmem:[%s10395_s4 + $0x2c] ss:$0 sm:$0xff] }
0x13a9   : > { %7549 = vmatmul.mubr.f32.gmra.mrb[80].mxu1 %v3005_v55  ;;  %v3003_v36 = vmul.f32 0.5, %v3000_v56  ;;  %v6515_v55 = vld [vmem:[%s10396_s5 + $0x210] sm:$0xff]  ;;  %v6516_v56 = vld [vmem:[%s10396_s5 + $0x218] sm:$0xff] }
0x13aa   : > { %7551 = vmatprep.mubr.msk.f32.mxu1 %vm8587_vm0, %v8588_v6  ;;  %8237 = vmatpush3.bf16.msra.mxu0 %v8236_v23  ;;  %v6509_v23 = vld [vmem:[%s10395_s4 + $0x24] ss:$0 sm:$0xff] }
0x13ab   : > { %v3006_v40 = vmul.f32 %v3003_v36, %v2977_v19  ;;  %8238 = vmatprep.subr.bf16.mxu0 %v8586_v3 }
0x13ad   : > { %7552 = vmatmul.mubr.f32.gmra.mrb[82].mxu1 %v3006_v40 }
0x13ae   : > { %7611 = vmatprep.mubr.msk.f32.mxu1 %vm8587_vm0, %v8588_v6  ;;  %8240 = vmatpush3.bf16.msra.mxu0 %v8239_v27  ;;  %v6541_v27 = vld [vmem:[%s10396_s5 + $0x1a8] sm:$0xff] }
0x13af   : > { %8241 = vmatprep.subr.bf16.mxu0 %v8586_v3 }
0x1478   : > { %v3094_v58 = vpop.f32.mrb[78].mxu1 }
0x1479   : > { %v3095_v59 = vadd.f32 %v6502_v57, %v3094_v58  ;;  %v7547_v60 = vpop.f32.mrb[79].mxu1 }
0x147b   : > { %v9436_v37 = vadd.f32 %v3095_v59, %v9316_v35 }
0x147c   : > { %v3099_v44 = vpop.f32.mrb[80].mxu1 }
0x147d   : > { %v3100_v62 = vadd.f32 %v6502_v57, %v3099_v44  ;;  %v7550_v63 = vpop.f32.mrb[81].mxu1  ;;  %v3113_v16 = vsel %vm386_vm2, %v9436_v37, 0.0 }
0x147e   : > { %3114 = vadd.xlane.f32.xlu0 %v3113_v16  ;;  %v6522_v63 = vld [vmem:[%s10396_s5 + $0x288] sm:$0xff] }
0x147f   : > { %v9441_v0 = vadd.f32 %v3100_v62, %v9322_v61  ;;  %v6521_v62 = vld [vmem:[%s10396_s5 + $0x280] sm:$0xff] }
0x1480   : > { %v3104_v21 = vpop.f32.mrb[82].mxu1  ;;  %v8248_v16 = vpack.c.bf16 %v6522_v63, %v6521_v62 }
0x1481   : > { %v3105_v1 = vadd.f32 %v6502_v57, %v3104_v21  ;;  %v7553_v2 = vpop.f32.mrb[83].mxu1  ;;  %v3116_v4 = vsel %vm386_vm2, %v9441_v0, 0.0  ;;  %v8245_v57 = vpack.c.bf16 %v6516_v56, %v6515_v55  ;;  %v6523_v21 = vld [vmem:[%s10396_s5 + $0x290] sm:$0xff]  ;;  %v6559_v55 = vld [vmem:[%s10396_s5 + $0x2b8] sm:$0xff] }
0x1482   : > { %3117 = vadd.xlane.f32.xlu1 %v3116_v4 }
0x1483   : > { %v9446_v35 = vadd.f32 %v3105_v1, %v9328_v47  ;;  %v6524_v1 = vld [vmem:[%s10396_s5 + $0x298] sm:$0xff] }
0x1484   : > { %v8251_v2 = vpack.c.bf16 %v6524_v1, %v6523_v21  ;;  %v9634_v1 = vld [vmem:[%s10393_s2 + $0x8] sm:$0xff] }
0x1485   : > { %v3119_v5 = vsel %vm393_vm3, %v9446_v35, 0.0 }
0x1486   : > { %3120 = vadd.xlane.f32.xlu0 %v3119_v5 }
0x150b   : > { %v3115_v7 = vpop.xlane.xlu0 %3114 }
0x150c   : > { %v3122_v28 = vmul.f32 0.03125, %v3115_v7 }
0x150e   : > { %v3125_v8 = vsub.f32 %v9436_v37, %v3122_v28 }
0x150f   : > { %v3118_v61 = vpop.xlane.xlu1 %3117 }
0x1510   : > { %v3123_v26 = vmul.f32 0.03125, %v3118_v61  ;;  %v3128_v9 = vmul.f32 %v3125_v8, %v3125_v8 }
0x1512   : > { %v3126_v11 = vsub.f32 %v9441_v0, %v3123_v26  ;;  %v3131_v13 = vsel %vm386_vm2, %v3128_v9, 0.0 }
0x1513   : > { %3132 = vadd.xlane.f32.xlu1 %v3131_v13  ;;  %v3121_v10 = vpop.xlane.xlu0 %3120 }
0x1514   : > { %v3124_v14 = vmul.f32 0.03125, %v3121_v10  ;;  %v3129_v47 = vmul.f32 %v3126_v11, %v3126_v11 }
0x1516   : > { %v3127_v15 = vsub.f32 %v9446_v35, %v3124_v14  ;;  %v3134_v18 = vsel %vm386_vm2, %v3129_v47, 0.0 }
0x1517   : > { %3135 = vadd.xlane.f32.xlu0 %v3134_v18 }
0x1518   : > { %v3130_v20 = vmul.f32 %v3127_v15, %v3127_v15 }
0x151a   : > { %v3137_v22 = vsel %vm393_vm3, %v3130_v20, 0.0 }
0x151b   : > { %3138 = vadd.xlane.f32.xlu1 %v3137_v22 }
0x15a0   : > { %v3133_v34 = vpop.xlane.xlu1 %3132 }
0x15a1   : > { %v3140_v19 = vmul.f32 0.03125, %v3133_v34 }
0x15a3   : > { %v3143_v38 = vadd.f32 1e-06, %v3140_v19 }
0x15a4   : > { %v3136_v39 = vpop.xlane.xlu0 %3135 }
0x15a5   : > { %8503 = vrsqrt.f32 %v3143_v38  ;;  %v3141_v41 = vmul.f32 0.03125, %v3136_v39 }
0x15a7   : > { %v3144_v42 = vadd.f32 1e-06, %v3141_v41 }
0x15a8   : > { %v3139_v24 = vpop.xlane.xlu1 %3138 }
0x15a9   : > { %8505 = vrsqrt.f32 %v3144_v42  ;;  %v3142_v43 = vmul.f32 0.03125, %v3139_v24  ;;  %v8261_v42 = vpack.c.bf16 %v6541_v27, %v6540_v31 }
0x15ab   : > { %v3145_v45 = vadd.f32 1e-06, %v3142_v43  ;;  %v6542_v43 = vld [vmem:[%s10396_s5 + $0x1b0] sm:$0xff] }
0x15ad   : > { %8507 = vrsqrt.f32 %v3145_v45  ;;  %v6543_v45 = vld [vmem:[%s10396_s5 + $0x1b8] sm:$0xff] }
0x15ae   : > { %v8264_v30 = vpack.c.bf16 %v6543_v45, %v6542_v43 }
0x15af   : > { %v8504_v46 = vpop.eup %8503 }
0x15b0   : > { %v3149_v49 = vmul.f32 %v8504_v46, %v3125_v8 }
0x15b2   : > { %v3156_v52 = vmul.f32 %v6503_v48, %v3149_v49 }
0x15b3   : > { %v8506_v32 = vpop.eup %8505 }
0x15b4   : > { %v9482_v53 = vadd.f32 %v6504_v51, %v3156_v52  ;;  %v3150_v54 = vmul.f32 %v8506_v32, %v3126_v11  ;;  %v6517_v11 = vld [vmem:[%s10395_s4 + $0x28] ss:$0 sm:$0xff]  ;;  %v6556_v52 = vld [vmem:[%s10396_s5 + $0x2a0] sm:$0xff] }
0x15b5   : > { %v6557_v32 = vld [vmem:[%s10396_s5 + $0x2a8] sm:$0xff] }
0x15b6   : > { %v3157_v36 = vmul.f32 %v6503_v48, %v3150_v54  ;;  %7563 = vmatmul.mubr.msk.f32.vlgmr.msra.gmra.mrb[78].mxu0 %vm386_vm2, %v9482_v53  ;;  %v6558_v54 = vld [vmem:[%s10396_s5 + $0x2b0] sm:$0xff] }
0x15b7   : > { %v8508_v40 = vpop.eup %8507  ;;  %7565 = vmatprep.mubr.msk.f32.mxu0 %vm8587_vm0, %v8588_v6  ;;  %8243 = vmatpush3.bf16.msra.mxu0 %v8242_v29  ;;  %v8273_v29 = vpack.c.bf16 %v6557_v32, %v6556_v52  ;;  %v8276_v56 = vpack.c.bf16 %v6559_v55, %v6558_v54  ;;  %v6548_v55 = vld [vmem:[%s10396_s5 + $0x220] sm:$0xff] }
0x15b8   : > { %v9494_v58 = vadd.f32 %v6504_v51, %v3157_v36  ;;  %v3151_v59 = vmul.f32 %v8508_v40, %v3127_v15  ;;  %8244 = vmatprep.subr.bf16.mxu0 %v8586_v3 }
0x15ba   : > { %v3158_v60 = vmul.f32 %v6503_v48, %v3151_v59  ;;  %7566 = vmatmul.mubr.msk.f32.gmra.mrb[80].mxu0 %vm386_vm2, %v9494_v58  ;;  %v9627_v59 = vld [vmem:[%s10393_s2] sm:$0xff] }
0x15bb   : > { %7568 = vmatprep.mubr.msk.f32.mxu0 %vm8587_vm0, %v8588_v6  ;;  %8246 = vmatpush3.bf16.msra.mxu0 %v8245_v57 }
0x15bc   : > { %v9501_v44 = vadd.f32 %v6504_v51, %v3158_v60  ;;  %8247 = vmatprep.subr.bf16.mxu0 %v8586_v3 }
0x15be   : > { %7569 = vmatmul.mubr.msk.f32.gmra.mrb[82].mxu0 %vm386_vm2, %v9501_v44 }
0x15bf   : > { %7579 = vmatprep.mubr.msk.f32.mxu0 %vm8587_vm0, %v8588_v6 }
0x15c2   : > { %7580 = vmatmul.mubr.msk.f32.vlgmr.msra.gmra.mrb[84].mxu0 %vm386_vm2, %v9482_v53 }
0x15c3   : > { %7582 = vmatprep.mubr.msk.f32.mxu0 %vm8587_vm0, %v8588_v6  ;;  %8249 = vmatpush3.bf16.msra.mxu0 %v8248_v16 }
0x15c4   : > { %8250 = vmatprep.subr.bf16.mxu0 %v8586_v3 }
0x15c6   : > { %7583 = vmatmul.mubr.msk.f32.gmra.mrb[86].mxu0 %vm386_vm2, %v9494_v58 }
0x15c7   : > { %7585 = vmatprep.mubr.msk.f32.mxu0 %vm8587_vm0, %v8588_v6  ;;  %8252 = vmatpush3.bf16.msra.mxu0 %v8251_v2 }
0x15c8   : > { %8257 = vmatprep.subr.bf16.mxu0 %v8586_v3 }
0x15ca   : > { %7586 = vmatmul.mubr.msk.f32.gmra.mrb[88].mxu0 %vm386_vm2, %v9501_v44 }
0x15cb   : > { %7596 = vmatprep.mubr.msk.f32.mxu0 %vm8587_vm0, %v8588_v6 }
0x15ce   : > { %7597 = vmatmul.mubr.msk.f32.vlgmr.msra.gmra.mrb[90].mxu0 %vm386_vm2, %v9482_v53 }
0x15cf   : > { %7599 = vmatprep.mubr.msk.f32.mxu0 %vm8587_vm0, %v8588_v6 }
0x15d2   : > { %7600 = vmatmul.mubr.msk.f32.gmra.mrb[92].mxu0 %vm386_vm2, %v9494_v58 }
0x15d3   : > { %7602 = vmatprep.mubr.msk.f32.mxu0 %vm8587_vm0, %v8588_v6 }
0x15d6   : > { %7603 = vmatmul.mubr.msk.f32.gmra.mrb[94].mxu0 %vm386_vm2, %v9501_v44 }
0x15d7   : > { %7626 = vmatprep.mubr.msk.f32.mxu0 %vm8587_vm0, %v8588_v6 }
0x1689   : > { %v3251_v4 = vpop.f32.mrb[78].mxu0 }
0x168a   : > { %v7564_v5 = vpop.f32.mrb[79].mxu0  ;;  %v3252_v41 = vadd.f32 %v6509_v23, %v3251_v4 }
0x168d   : > { %v3256_v7 = vpop.f32.mrb[80].mxu0 }
0x168e   : > { %v7567_v28 = vpop.f32.mrb[81].mxu0  ;;  %v3257_v49 = vadd.f32 %v6509_v23, %v3256_v7 }
0x1691   : > { %v3261_v8 = vpop.f32.mrb[82].mxu0 }
0x1692   : > { %v7570_v61 = vpop.f32.mrb[83].mxu0  ;;  %v3262_v51 = vadd.f32 %v6509_v23, %v3261_v8  ;;  %v9641_v8 = vld [vmem:[%s10393_s2 + $0x10] sm:$0x1] }
0x1695   : > { %v3341_v26 = vpop.f32.mrb[84].mxu0 }
0x1696   : > { %v7581_v9 = vpop.f32.mrb[85].mxu0  ;;  %v3342_v10 = vadd.f32 %v6517_v11, %v3341_v26 }
0x1699   : > { %v3346_v13 = vpop.f32.mrb[86].mxu0 }
0x169a   : > { %v3347_v14 = vadd.f32 %v6517_v11, %v3346_v13  ;;  %v7584_v47 = vpop.f32.mrb[87].mxu0 }
0x169c   : > { %v8254_v15 = vpack.c.bf16 %v3347_v14, %v3342_v10 }
0x169d   : > { %v3351_v18 = vpop.f32.mrb[88].mxu0 }
0x169e   : > { %v7587_v20 = vpop.f32.mrb[89].mxu0  ;;  %8256 = vmatpush3.bf16.xpose.msk.msra.mxu1 %vm8806_vm6, %v8254_v15  ;;  %v3352_v25 = vadd.f32 %v6517_v11, %v3351_v18 }
0x169f   : > { %7609 = vmatprep.subr.mxu1 %v8588_v6  ;;  %v6560_v20 = vld [vmem:[%s10395_s4 + $0x2d] ss:$0 sm:$0xff] }
0x16a1   : > { %v3431_v22 = vpop.f32.mrb[90].mxu0 }
0x16a2   : > { %v7598_v12 = vpop.f32.mrb[91].mxu0  ;;  %v3432_v19 = vadd.f32 %v6525_v17, %v3431_v22 }
0x16a5   : > { %v3436_v34 = vpop.f32.mrb[92].mxu0 }
0x16a6   : > { %v3437_v38 = vadd.f32 %v6525_v17, %v3436_v34  ;;  %v7601_v39 = vpop.f32.mrb[93].mxu0  ;;  %7610 = vmatpush3.xpose.msk.msra.mxu1 %vm720_vm5, %v3352_v25 }
0x16a7   : > { %8260 = vmatprep.subr.bf16.mxu1 %v8586_v3 }
0x16a8   : > { %v8258_v24 = vpack.c.bf16 %v3437_v38, %v3432_v19 }
0x16a9   : > { %v3441_v46 = vpop.f32.mrb[94].mxu0  ;;  %7612 = vmatmul.mubr.msk.f32.vlgmr.msra.gmra.mrb[84].mxu1 %vm720_vm5, %v3252_v41 }
0x16aa   : > { %v7604_v48 = vpop.f32.mrb[95].mxu0  ;;  %8259 = vmatpush3.bf16.msra.mxu0 %v8258_v24  ;;  %7614 = vmatprep.mubr.msk.f32.mxu1 %vm8587_vm0, %v8588_v6  ;;  %v3442_v33 = vadd.f32 %v6525_v17, %v3441_v46 }
0x16ab   : > { %7624 = vmatprep.subr.mxu0 %v8588_v6  ;;  %8262 = vmatpush3.bf16.msra.mxu1 %v8261_v42 }
0x16ac   : > { %8263 = vmatprep.subr.bf16.mxu1 %v8586_v3 }
0x16ad   : > { %7615 = vmatmul.mubr.msk.f32.gmra.mrb[86].mxu1 %vm720_vm5, %v3257_v49 }
0x16ae   : > { %7625 = vmatpush3.msk.msra.mxu0 %vm869_vm4, %v3442_v33  ;;  %7617 = vmatprep.mubr.msk.f32.mxu1 %vm8587_vm0, %v8588_v6 }
0x16af   : > { %8265 = vmatpush3.bf16.msra.mxu1 %v8264_v30  ;;  %8266 = vmatprep.subr.bf16.mxu0 %v8586_v3 }
0x16b0   : > { %8272 = vmatprep.subr.bf16.mxu1 %v8586_v3 }
0x16b1   : > { %7618 = vmatmul.mubr.msk.f32.gmra.mrb[88].mxu1 %vm720_vm5, %v3262_v51 }
0x16b2   : > { %7643 = vmatprep.mubr.msk.f32.mxu1 %vm8587_vm0, %v8588_v6 }
0x16b5   : > { %7644 = vmatmul.mubr.msk.f32.vlgmr.msra.gmra.mrb[90].mxu1 %vm386_vm2, %v9482_v53 }
0x16b6   : > { %7646 = vmatprep.mubr.msk.f32.mxu1 %vm8587_vm0, %v8588_v6  ;;  %8274 = vmatpush3.bf16.msra.mxu1 %v8273_v29 }
0x16b7   : > { %8275 = vmatprep.subr.bf16.mxu1 %v8586_v3 }
0x16b9   : > { %7647 = vmatmul.mubr.msk.f32.gmra.mrb[92].mxu1 %vm386_vm2, %v9494_v58 }
0x16ba   : > { %7649 = vmatprep.mubr.msk.f32.mxu1 %vm8587_vm0, %v8588_v6  ;;  %8277 = vmatpush3.bf16.msra.mxu1 %v8276_v56  ;;  %v6549_v56 = vld [vmem:[%s10396_s5 + $0x228] sm:$0xff] }
0x16bb   : > { %8282 = vmatprep.subr.bf16.mxu1 %v8586_v3 }
0x16bd   : > { %7650 = vmatmul.mubr.msk.f32.gmra.mrb[94].mxu1 %vm386_vm2, %v9501_v44 }
0x16be   : > { %7677 = vmatprep.mubr.msk.f32.mxu1 %vm8587_vm0, %v8588_v6 }
0x16c1   : > { %7678 = vmatmul.mubr.msk.f32.vlgmr.msra.gmra.mrb[96].mxu1 %vm386_vm2, %v9482_v53 }
0x16c2   : > { %7680 = vmatprep.mubr.msk.f32.mxu1 %vm8587_vm0, %v8588_v6 }
0x16c5   : > { %7681 = vmatmul.mubr.msk.f32.gmra.mrb[98].mxu1 %vm386_vm2, %v9494_v58 }
0x16c6   : > { %7683 = vmatprep.mubr.msk.f32.mxu1 %vm8587_vm0, %v8588_v6 }
0x16c9   : > { %7684 = vmatmul.mubr.msk.f32.gmra.mrb[100].mxu1 %vm386_vm2, %v9501_v44 }
0x16ca   : > { %7707 = vmatprep.mubr.msk.f32.mxu1 %vm8587_vm0, %v8588_v6 }
0x177c   : > { %v3529_v36 = vpop.f32.mrb[84].mxu1 }
0x177d   : > { %v3543_v40 = vmul.f32 0.35355338, %v3529_v36  ;;  %v7613_v57 = vpop.f32.mrb[85].mxu1 }
0x177f   : > { %v3546_v60 = vadd.f32 %v9627_v59, %v3543_v40  ;;  %v8267_v40 = vpack.c.bf16 %v6549_v56, %v6548_v55 }
0x1780   : > { %v3534_v62 = vpop.f32.mrb[86].mxu1 }
0x1781   : > { %v3544_v63 = vmul.f32 0.35355338, %v3534_v62  ;;  %v7616_v16 = vpop.f32.mrb[87].mxu1  ;;  %v3549_v21 = vsel %vm825_vm7, %v3546_v60, -inf  ;;  %v6551_v62 = vld [vmem:[%s10396_s5 + $0x238] sm:$0xff] }
0x1782   : > { %3550 = vmax.xlane.f32.xlu0 %v3549_v21 }
0x1783   : > { %v3547_v2 = vadd.f32 %v9634_v1, %v3544_v63 }
0x1784   : > { %v3539_v4 = vpop.f32.mrb[88].mxu1 }
0x1785   : > { %v3545_v5 = vmul.f32 0.35355338, %v3539_v4  ;;  %v7619_v7 = vpop.f32.mrb[89].mxu1  ;;  %v3552_v28 = vsel %vm825_vm7, %v3547_v2, -inf }
0x1786   : > { %3553 = vmax.xlane.f32.xlu1 %v3552_v28 }
0x1787   : > { %v3548_v61 = vadd.f32 %v9641_v8, %v3545_v5 }
0x1788   : > { %v9644_v26 = vpop.f32.mrb[90].mxu1 }
0x1789   : > { %v7645_v9 = vpop.f32.mrb[91].mxu1  ;;  %v3555_v11 = vsel %vm832_vm8, %v3548_v61, -inf }
0x178a   : > { %3556 = vmax.xlane.f32.xlu0 %v3555_v11 }
0x178c   : > { %v9647_v13 = vpop.f32.mrb[92].mxu1 }
0x178d   : > { %v7648_v10 = vpop.f32.mrb[93].mxu1 }
0x1790   : > { %v9649_v14 = vpop.f32.mrb[94].mxu1 }
0x1791   : > { %v7651_v47 = vpop.f32.mrb[95].mxu1 }
0x1794   : > { %v3932_v15 = vpop.f32.mrb[96].mxu1 }
0x1795   : > { %v7679_v18 = vpop.f32.mrb[97].mxu1  ;;  %v3933_v12 = vadd.f32 %v6560_v20, %v3932_v15  ;;  %v6552_v15 = vld [vmem:[%s10395_s4 + $0x29] ss:$0 sm:$0xff] }
0x1798   : > { %v3937_v22 = vpop.f32.mrb[98].mxu1 }
0x1799   : > { %v3938_v17 = vadd.f32 %v6560_v20, %v3937_v22  ;;  %v7682_v23 = vpop.f32.mrb[99].mxu1 }
0x179b   : > { %v8283_v25 = vpack.c.bf16 %v3938_v17, %v3933_v12 }
0x179c   : > { %v3942_v31 = vpop.f32.mrb[100].mxu1 }
0x179d   : > { %v7685_v27 = vpop.f32.mrb[101].mxu1  ;;  %8284 = vmatpush3.bf16.msra.mxu1 %v8283_v25  ;;  %v3943_v34 = vadd.f32 %v6560_v20, %v3942_v31  ;;  %v6544_v31 = vld [vmem:[%s10395_s4 + $0x25] ss:$0 sm:$0xff] }
0x179e   : > { %7705 = vmatprep.subr.mxu1 %v8588_v6 }
0x17a1   : > { %7706 = vmatpush3.msk.msra.mxu1 %vm869_vm4, %v3943_v34  ;;  %v3753_v34 = vadd.f32 %v6544_v31, %v9644_v26 }
0x17a2   : > { %7727 = vmatprep.subr.mxu1 %v8588_v6 }
0x180f   : > { %v3551_v19 = vpop.xlane.xlu0 %3550 }
0x1810   : > { %v3558_v38 = vsub.f32 %v3546_v60, %v3551_v19  ;;  %v6550_v60 = vld [vmem:[%s10396_s5 + $0x230] sm:$0xff]  ;;  %v3758_v19 = vadd.f32 %v6544_v31, %v9647_v13 }
0x1811   : > { %v8270_v16 = vpack.c.bf16 %v6551_v62, %v6550_v60 }
0x1812   : > { %v3561_v39 = vmul.f32 1.442695, %v3558_v38  ;;  %v3763_v38 = vadd.f32 %v6544_v31, %v9649_v14  ;;  %v6591_v31 = vld [vmem:[%s10396_s5 + $0x250] sm:$0xff] }
0x1813   : > { %v3554_v41 = vpop.xlane.xlu1 %3553 }
0x1814   : > { %8509 = vpow2.f32 %v3561_v39  ;;  %v3559_v42 = vsub.f32 %v3547_v2, %v3554_v41 }
0x1816   : > { %v3563_v24 = vmul.f32 1.442695, %v3559_v42 }
0x1817   : > { %v3557_v43 = vpop.xlane.xlu0 %3556 }
0x1818   : > { %8511 = vpow2.f32 %v3563_v24  ;;  %v3560_v45 = vsub.f32 %v3548_v61, %v3557_v43 }
0x181a   : > { %v3565_v46 = vmul.f32 1.442695, %v3560_v45 }
0x181c   : > { %8513 = vpow2.f32 %v3565_v46 }
0x181e   : > { %v8510_v48 = vpop.eup %8509 }
0x181f   : > { %v3567_v49 = vsel %vm825_vm7, %v8510_v48, 0.0 }
0x1820   : > { %3568 = vadd.xlane.f32.xlu1 %v3567_v49 }
0x1822   : > { %v8512_v30 = vpop.eup %8511 }
0x1823   : > { %v3570_v33 = vsel %vm825_vm7, %v8512_v30, 0.0 }
0x1824   : > { %3571 = vadd.xlane.f32.xlu0 %v3570_v33 }
0x1826   : > { %v8514_v51 = vpop.eup %8513 }
0x1827   : > { %v3573_v52 = vsel %vm832_vm8, %v8514_v51, 0.0 }
0x1828   : > { %3574 = vadd.xlane.f32.xlu1 %v3573_v52 }
0x18ad   : > { %v3569_v32 = vpop.xlane.xlu1 %3568 }
0x18ae   : > { %8515 = vrcp.f32 %v3569_v32 }
0x18b1   : > { %v3572_v29 = vpop.xlane.xlu0 %3571 }
0x18b2   : > { %8517 = vrcp.f32 %v3572_v29 }
0x18b5   : > { %v3575_v54 = vpop.xlane.xlu1 %3574 }
0x18b6   : > { %8519 = vrcp.f32 %v3575_v54 }
0x18b8   : > { %v8516_v36 = vpop.eup %8515 }
0x18b9   : > { %v3579_v57 = vmul.f32 %v8516_v36, %v8510_v48 }
0x18bb   : > { %7627 = vmatmul.mubr.msk.f32.vlgmr.msra.gmra.mrb[96].mxu0 %vm825_vm7, %v3579_v57 }
0x18bc   : > { %v8518_v63 = vpop.eup %8517  ;;  %7629 = vmatprep.mubr.msk.f32.mxu0 %vm8587_vm0, %v8588_v6  ;;  %8268 = vmatpush3.bf16.msra.mxu0 %v8267_v40 }
0x18bd   : > { %v3580_v21 = vmul.f32 %v8518_v63, %v8512_v30  ;;  %8269 = vmatprep.subr.bf16.mxu0 %v8586_v3 }
0x18bf   : > { %7630 = vmatmul.mubr.msk.f32.gmra.mrb[98].mxu0 %vm825_vm7, %v3580_v21 }
0x18c0   : > { %v8520_v2 = vpop.eup %8519  ;;  %7632 = vmatprep.mubr.msk.f32.mxu0 %vm8587_vm0, %v8588_v6  ;;  %8271 = vmatpush3.bf16.msra.mxu0 %v8270_v16 }
0x18c1   : > { %v3581_v4 = vmul.f32 %v8520_v2, %v8514_v51  ;;  %8278 = vmatprep.subr.bf16.mxu0 %v8586_v3 }
0x18c3   : > { %7633 = vmatmul.mubr.msk.f32.gmra.mrb[100].mxu0 %vm825_vm7, %v3581_v4  ;;  %v6574_v4 = vld [vmem:[%s10397_s6 + $0xc8] sm:$0xff] }
0x18c4   : > { %7660 = vmatprep.mubr.msk.f32.mxu0 %vm8587_vm0, %v8588_v6 }
0x18c7   : > { %7661 = vmatmul.mubr.msk.f32.vlgmr.msra.gmra.mrb[102].mxu0 %vm386_vm2, %v9482_v53 }
0x18c8   : > { %7663 = vmatprep.mubr.msk.f32.mxu0 %vm8587_vm0, %v8588_v6 }
0x18cb   : > { %7664 = vmatmul.mubr.msk.f32.gmra.mrb[104].mxu0 %vm386_vm2, %v9494_v58 }
0x18cc   : > { %7666 = vmatprep.mubr.msk.f32.mxu0 %vm8587_vm0, %v8588_v6 }
0x18cf   : > { %7667 = vmatmul.mubr.msk.f32.gmra.mrb[106].mxu0 %vm386_vm2, %v9501_v44 }
0x18d0   : > { %7692 = vmatprep.mubr.msk.f32.mxu0 %vm8587_vm0, %v8588_v6 }
0x198e   : > { %v9695_v5 = vpop.f32.mrb[96].mxu0 }
0x198f   : > { %v7628_v7 = vpop.f32.mrb[97].mxu0 }
0x1992   : > { %v9697_v28 = vpop.f32.mrb[98].mxu0 }
0x1993   : > { %v7631_v61 = vpop.f32.mrb[99].mxu0 }
0x1996   : > { %v9699_v9 = vpop.f32.mrb[100].mxu0 }
0x1997   : > { %v7634_v11 = vpop.f32.mrb[101].mxu0 }
0x199a   : > { %v3842_v10 = vpop.f32.mrb[102].mxu0 }
0x199b   : > { %v7662_v47 = vpop.f32.mrb[103].mxu0  ;;  %v3843_v20 = vadd.f32 %v6552_v15, %v3842_v10 }
0x199e   : > { %v3847_v18 = vpop.f32.mrb[104].mxu0 }
0x199f   : > { %v3848_v22 = vadd.f32 %v6552_v15, %v3847_v18  ;;  %v7665_v12 = vpop.f32.mrb[105].mxu0 }
0x19a1   : > { %v8279_v17 = vpack.c.bf16 %v3848_v22, %v3843_v20 }
0x19a2   : > { %v3852_v23 = vpop.f32.mrb[106].mxu0 }
0x19a3   : > { %v7668_v25 = vpop.f32.mrb[107].mxu0  ;;  %8281 = vmatpush3.bf16.xpose.msk.msra.mxu0 %vm8806_vm6, %v8279_v17  ;;  %v3853_v27 = vadd.f32 %v6552_v15, %v3852_v23  ;;  %v6539_v15 = vld [vmem:[%s10397_s6 + $0xc0] sm:$0xff]  ;;  %v6590_v23 = vld [vmem:[%s10396_s5 + $0x248] sm:$0xff] }
0x19a4   : > { %7690 = vmatprep.subr.mxu0 %v8588_v6  ;;  %v6589_v17 = vld [vmem:[%s10396_s5 + $0x240] sm:$0xff] }
0x19a5   : > { %v8292_v25 = vpack.c.bf16 %v6590_v23, %v6589_v17 }
0x19ab   : > { %7691 = vmatpush3.xpose.msk.msra.mxu0 %vm720_vm5, %v3853_v27  ;;  %v6592_v27 = vld [vmem:[%s10396_s5 + $0x258] sm:$0xff] }
0x19ac   : > { %7716 = vmatprep.subr.mxu0 %v8588_v6 }
0x19ae   : > { %7693 = vmatmul.mubr.msk.f32.vlgmr.msra.gmra.mrb[108].mxu0 %vm720_vm5, %v3753_v34  ;;  %v8295_v34 = vpack.c.bf16 %v6592_v27, %v6591_v31 }
0x19af   : > { %7695 = vmatprep.mubr.msk.f32.mxu0 %vm8587_vm0, %v8588_v6  ;;  %7717 = vmatpush3.msra.mxu0 %v6574_v4 }
0x19b0   : > { %8285 = vmatprep.subr.bf16.mxu0 %v8586_v3 }
0x19b2   : > { %7696 = vmatmul.mubr.msk.f32.gmra.mrb[110].mxu0 %vm720_vm5, %v3758_v19  ;;  %v6583_v19 = vld [vmem:[%s10396_s5 + $0x1d0] sm:$0xff] }
0x19b3   : > { %7698 = vmatprep.mubr.msk.f32.mxu0 %vm8587_vm0, %v8588_v6 }
0x19b6   : > { %7699 = vmatmul.mubr.msk.f32.gmra.mrb[112].mxu0 %vm720_vm5, %v3763_v38  ;;  %v6584_v38 = vld [vmem:[%s10396_s5 + $0x1d8] sm:$0xff] }
0x19b7   : > { %7718 = vmatprep.mubr.msk.f32.mxu0 %vm8587_vm0, %v8588_v6 }
0x1a81   : > { %v4030_v26 = vpop.f32.mrb[108].mxu0 }
0x1a82   : > { %v4044_v39 = vmul.f32 0.35355338, %v4030_v26  ;;  %v7694_v41 = vpop.f32.mrb[109].mxu0 }
0x1a83   : > { %v8289_v41 = vpack.c.bf16 %v6584_v38, %v6583_v19  ;;  %v6601_v38 = vld [vmem:[%s10395_s4 + $0x2e] ss:$0 sm:$0xff] }
0x1a84   : > { %v4047_v42 = vadd.f32 %v9627_v59, %v4044_v39 }
0x1a85   : > { %v4035_v24 = vpop.f32.mrb[110].mxu0 }
0x1a86   : > { %v4045_v43 = vmul.f32 0.35355338, %v4035_v24  ;;  %v7697_v13 = vpop.f32.mrb[111].mxu0  ;;  %v4050_v45 = vsel %vm825_vm7, %v4047_v42, -inf }
0x1a87   : > { %4051 = vmax.xlane.f32.xlu0 %v4050_v45  ;;  %v6598_v13 = vld [vmem:[%s10396_s5 + $0x2c8] sm:$0xff] }
0x1a88   : > { %v4048_v46 = vadd.f32 %v9634_v1, %v4045_v43  ;;  %v6597_v43 = vld [vmem:[%s10396_s5 + $0x2c0] sm:$0xff] }
0x1a89   : > { %v4040_v48 = vpop.f32.mrb[112].mxu0 }
0x1a8a   : > { %v4046_v14 = vmul.f32 0.35355338, %v4040_v48  ;;  %v7700_v49 = vpop.f32.mrb[113].mxu0  ;;  %v4053_v30 = vsel %vm825_vm7, %v4048_v46, -inf  ;;  %v8298_v48 = vpack.c.bf16 %v6598_v13, %v6597_v43 }
0x1a8b   : > { %4054 = vmax.xlane.f32.xlu1 %v4053_v30  ;;  %v6600_v49 = vld [vmem:[%s10396_s5 + $0x2d8] sm:$0xff] }
0x1a8c   : > { %v4049_v33 = vadd.f32 %v9641_v8, %v4046_v14  ;;  %v6599_v14 = vld [vmem:[%s10396_s5 + $0x2d0] sm:$0xff] }
0x1a8e   : > { %v4056_v51 = vsel %vm832_vm8, %v4049_v33, -inf }
0x1a8f   : > { %4057 = vmax.xlane.f32.xlu0 %v4056_v51  ;;  %v8301_v51 = vpack.c.bf16 %v6600_v49, %v6599_v14 }
0x1b14   : > { %v4052_v52 = vpop.xlane.xlu0 %4051 }
0x1b15   : > { %v4059_v32 = vsub.f32 %v4047_v42, %v4052_v52 }
0x1b17   : > { %v4062_v29 = vmul.f32 1.442695, %v4059_v32 }
0x1b18   : > { %v4055_v54 = vpop.xlane.xlu1 %4054 }
0x1b19   : > { %8521 = vpow2.f32 %v4062_v29  ;;  %v4060_v55 = vsub.f32 %v4048_v46, %v4055_v54 }
0x1b1b   : > { %v4064_v56 = vmul.f32 1.442695, %v4060_v55 }
0x1b1c   : > { %v4058_v36 = vpop.xlane.xlu0 %4057 }
0x1b1d   : > { %8523 = vpow2.f32 %v4064_v56  ;;  %v4061_v40 = vsub.f32 %v4049_v33, %v4058_v36  ;;  %v6593_v36 = vld [vmem:[%s10395_s4 + $0x2a] ss:$0 sm:$0xff] }
0x1b1f   : > { %v4066_v57 = vmul.f32 1.442695, %v4061_v40 }
0x1b21   : > { %8525 = vpow2.f32 %v4066_v57 }
0x1b23   : > { %v8522_v60 = vpop.eup %8521 }
0x1b24   : > { %v4068_v62 = vsel %vm825_vm7, %v8522_v60, 0.0 }
0x1b25   : > { %4069 = vadd.xlane.f32.xlu1 %v4068_v62 }
0x1b27   : > { %v8524_v63 = vpop.eup %8523 }
0x1b28   : > { %v4071_v16 = vsel %vm825_vm7, %v8524_v63, 0.0 }
0x1b29   : > { %4072 = vadd.xlane.f32.xlu0 %v4071_v16 }
0x1b2b   : > { %v8526_v21 = vpop.eup %8525 }
0x1b2c   : > { %v4074_v2 = vsel %vm832_vm8, %v8526_v21, 0.0 }
0x1b2d   : > { %4075 = vadd.xlane.f32.xlu1 %v4074_v2 }
0x1bb2   : > { %v4070_v7 = vpop.xlane.xlu1 %4069 }
0x1bb3   : > { %8527 = vrcp.f32 %v4070_v7 }
0x1bb6   : > { %v4073_v61 = vpop.xlane.xlu0 %4072 }
0x1bb7   : > { %8529 = vrcp.f32 %v4073_v61 }
0x1bba   : > { %v4076_v11 = vpop.xlane.xlu1 %4075 }
0x1bbb   : > { %8531 = vrcp.f32 %v4076_v11 }
0x1bbd   : > { %v8528_v10 = vpop.eup %8527 }
0x1bbe   : > { %v4080_v47 = vmul.f32 %v8528_v10, %v8522_v60 }
0x1bc0   : > { %7708 = vmatmul.mubr.msk.f32.vlgmr.msra.gmra.mrb[102].mxu1 %vm825_vm7, %v4080_v47 }
0x1bc1   : > { %v8530_v18 = vpop.eup %8529  ;;  %7710 = vmatprep.mubr.msk.f32.mxu1 %vm8587_vm0, %v8588_v6  ;;  %7728 = vmatpush3.msra.mxu1 %v6539_v15 }
0x1bc2   : > { %v4081_v20 = vmul.f32 %v8530_v18, %v8524_v63  ;;  %8291 = vmatprep.subr.bf16.mxu1 %v8586_v3 }
0x1bc4   : > { %7711 = vmatmul.mubr.msk.f32.gmra.mrb[104].mxu1 %vm825_vm7, %v4081_v20 }
0x1bc5   : > { %v8532_v22 = vpop.eup %8531  ;;  %7713 = vmatprep.mubr.msk.f32.mxu1 %vm8587_vm0, %v8588_v6 }
0x1bc6   : > { %v4082_v12 = vmul.f32 %v8532_v22, %v8526_v21  ;;  %v6585_v22 = vld [vmem:[%s10395_s4 + $0x26] ss:$0 sm:$0xff] }
0x1bc8   : > { %7714 = vmatmul.mubr.msk.f32.gmra.mrb[106].mxu1 %vm825_vm7, %v4082_v12 }
0x1bc9   : > { %7729 = vmatprep.mubr.msk.f32.mxu1 %vm8587_vm0, %v8588_v6 }
0x1bcc   : > { %7730 = vmatmul.mubr.msk.f32.vlgmr.msra.gmra.mrb[108].mxu1 %vm720_vm5, %v9695_v5  ;;  %v6581_v5 = vld [vmem:[%s10396_s5 + $0x1c0] sm:$0xff] }
0x1bcd   : > { %7732 = vmatprep.mubr.msk.f32.mxu1 %vm8587_vm0, %v8588_v6  ;;  %8293 = vmatpush3.bf16.msra.mxu1 %v8292_v25 }
0x1bce   : > { %8294 = vmatprep.subr.bf16.mxu1 %v8586_v3 }
0x1bd0   : > { %7733 = vmatmul.mubr.msk.f32.gmra.mrb[110].mxu1 %vm720_vm5, %v9697_v28  ;;  %v6582_v28 = vld [vmem:[%s10396_s5 + $0x1c8] sm:$0xff] }
0x1bd1   : > { %7735 = vmatprep.mubr.msk.f32.mxu1 %vm8587_vm0, %v8588_v6  ;;  %8296 = vmatpush3.bf16.msra.mxu1 %v8295_v34 }
0x1bd2   : > { %8303 = vmatprep.subr.bf16.mxu1 %v8586_v3 }
0x1bd4   : > { %7736 = vmatmul.mubr.msk.f32.gmra.mrb[112].mxu1 %vm720_vm5, %v9699_v9  ;;  %v8286_v9 = vpack.c.bf16 %v6582_v28, %v6581_v5 }
0x1bd5   : > { %7763 = vmatprep.mubr.msk.f32.mxu1 %vm8587_vm0, %v8588_v6 }
0x1bd8   : > { %7764 = vmatmul.mubr.msk.f32.vlgmr.msra.gmra.mrb[114].mxu1 %vm386_vm2, %v9482_v53 }
0x1bd9   : > { %7766 = vmatprep.mubr.msk.f32.mxu1 %vm8587_vm0, %v8588_v6 }
0x1bdc   : > { %7767 = vmatmul.mubr.msk.f32.gmra.mrb[116].mxu1 %vm386_vm2, %v9494_v58 }
0x1bdd   : > { %7769 = vmatprep.mubr.msk.f32.mxu1 %vm8587_vm0, %v8588_v6 }
0x1be0   : > { %7770 = vmatmul.mubr.msk.f32.gmra.mrb[118].mxu1 %vm386_vm2, %v9501_v44 }
0x1be1   : > { %7795 = vmatprep.mubr.msk.f32.mxu1 %vm8587_vm0, %v8588_v6 }
0x1c93   : > { %v4161_v26 = vpop.f32.mrb[102].mxu1 }
0x1c94   : > { %v7709_v39 = vpop.f32.mrb[103].mxu1  ;;  %7719 = vmatmul.mubr.msk.f32.vlgmr.msra.gmra.mrb[114].mxu0 %vm720_vm5, %v4161_v26 }
0x1c95   : > { %7721 = vmatprep.mubr.msk.f32.mxu0 %vm8587_vm0, %v8588_v6  ;;  %8287 = vmatpush3.bf16.msra.mxu0 %v8286_v9 }
0x1c96   : > { %8288 = vmatprep.subr.bf16.mxu0 %v8586_v3 }
0x1c97   : > { %v4166_v42 = vpop.f32.mrb[104].mxu1 }
0x1c98   : > { %v7712_v24 = vpop.f32.mrb[105].mxu1  ;;  %7722 = vmatmul.mubr.msk.f32.gmra.mrb[116].mxu0 %vm720_vm5, %v4166_v42 }
0x1c99   : > { %7724 = vmatprep.mubr.msk.f32.mxu0 %vm8587_vm0, %v8588_v6  ;;  %8290 = vmatpush3.bf16.msra.mxu0 %v8289_v41 }
0x1c9a   : > { %8297 = vmatprep.subr.bf16.mxu0 %v8586_v3 }
0x1c9b   : > { %v4171_v45 = vpop.f32.mrb[106].mxu1 }
0x1c9c   : > { %v7715_v46 = vpop.f32.mrb[107].mxu1  ;;  %7725 = vmatmul.mubr.msk.f32.gmra.mrb[118].mxu0 %vm720_vm5, %v4171_v45 }
0x1c9d   : > { %7746 = vmatprep.mubr.msk.f32.mxu0 %vm8587_vm0, %v8588_v6 }
0x1c9f   : > { %v4340_v30 = vpop.f32.mrb[108].mxu1 }
0x1ca0   : > { %v7731_v33 = vpop.f32.mrb[109].mxu1  ;;  %7747 = vmatmul.mubr.msk.f32.vlgmr.msra.gmra.mrb[120].mxu0 %vm386_vm2, %v9482_v53 }
0x1ca1   : > { %7749 = vmatprep.mubr.msk.f32.mxu0 %vm8587_vm0, %v8588_v6  ;;  %8299 = vmatpush3.bf16.msra.mxu0 %v8298_v48 }
0x1ca2   : > { %8300 = vmatprep.subr.bf16.mxu0 %v8586_v3 }
0x1ca3   : > { %v4345_v52 = vpop.f32.mrb[110].mxu1 }
0x1ca4   : > { %v7734_v32 = vpop.f32.mrb[111].mxu1  ;;  %7750 = vmatmul.mubr.msk.f32.gmra.mrb[122].mxu0 %vm386_vm2, %v9494_v58 }
0x1ca5   : > { %7752 = vmatprep.mubr.msk.f32.mxu0 %vm8587_vm0, %v8588_v6  ;;  %8302 = vmatpush3.bf16.msra.mxu0 %v8301_v51 }
0x1ca6   : > { %8307 = vmatprep.subr.bf16.mxu0 %v8586_v3 }
0x1ca7   : > { %v4350_v29 = vpop.f32.mrb[112].mxu1 }
0x1ca8   : > { %v7737_v54 = vpop.f32.mrb[113].mxu1  ;;  %7753 = vmatmul.mubr.msk.f32.gmra.mrb[124].mxu0 %vm386_vm2, %v9501_v44 }
0x1ca9   : > { %7780 = vmatprep.mubr.msk.f32.mxu0 %vm8587_vm0, %v8588_v6 }
0x1cab   : > { %v4520_v55 = vpop.f32.mrb[114].mxu1 }
0x1cac   : > { %v7765_v56 = vpop.f32.mrb[115].mxu1  ;;  %7781 = vmatmul.mubr.msk.f32.vlgmr.msra.gmra.mrb[126].mxu0 %vm386_vm2, %v9482_v53  ;;  %v4521_v57 = vadd.f32 %v6593_v36, %v4520_v55 }
0x1cad   : > { %7783 = vmatprep.mubr.msk.f32.mxu0 %vm8587_vm0, %v8588_v6 }
0x1caf   : > { %v4525_v40 = vpop.f32.mrb[116].mxu1 }
0x1cb0   : > { %v4526_v60 = vadd.f32 %v6593_v36, %v4525_v40  ;;  %v7768_v62 = vpop.f32.mrb[117].mxu1  ;;  %7784 = vmatmul.mubr.msk.f32.gmra.mrb[128].mxu0 %vm386_vm2, %v9494_v58 }
0x1cb1   : > { %7786 = vmatprep.mubr.msk.f32.mxu0 %vm8587_vm0, %v8588_v6 }
0x1cb2   : > { %v8304_v63 = vpack.c.bf16 %v4526_v60, %v4521_v57 }
0x1cb3   : > { %v4530_v16 = vpop.f32.mrb[118].mxu1 }
0x1cb4   : > { %v7771_v21 = vpop.f32.mrb[119].mxu1  ;;  %7787 = vmatmul.mubr.msk.f32.gmra.mrb[130].mxu0 %vm386_vm2, %v9501_v44  ;;  %8306 = vmatpush3.bf16.xpose.msk.msra.mxu1 %vm8806_vm6, %v8304_v63  ;;  %v4531_v2 = vadd.f32 %v6593_v36, %v4530_v16 }
0x1cb5   : > { %7793 = vmatprep.subr.mxu1 %v8588_v6  ;;  %7810 = vmatprep.mubr.msk.f32.mxu0 %vm8587_vm0, %v8588_v6 }
0x1cbc   : > { %7794 = vmatpush3.xpose.msk.msra.mxu1 %vm720_vm5, %v4531_v2 }
0x1cbd   : > { %7819 = vmatprep.subr.mxu1 %v8588_v6 }
0x1d67   : > { %v4251_v4 = vpop.f32.mrb[114].mxu0 }
0x1d68   : > { %v9857_v7 = vadd.f32 %v4340_v30, %v4251_v4  ;;  %v7720_v61 = vpop.f32.mrb[115].mxu0 }
0x1d6b   : > { %v4256_v11 = vpop.f32.mrb[116].mxu0 }
0x1d6c   : > { %v9859_v10 = vadd.f32 %v4345_v52, %v4256_v11  ;;  %v7723_v47 = vpop.f32.mrb[117].mxu0 }
0x1d6f   : > { %v4261_v15 = vpop.f32.mrb[118].mxu0 }
0x1d70   : > { %v9861_v18 = vadd.f32 %v4350_v29, %v4261_v15  ;;  %v7726_v20 = vpop.f32.mrb[119].mxu0 }
0x1d73   : > { %v4430_v12 = vpop.f32.mrb[120].mxu0 }
0x1d74   : > { %v4431_v17 = vadd.f32 %v6585_v22, %v4430_v12  ;;  %v7748_v23 = vpop.f32.mrb[121].mxu0 }
0x1d76   : > { %7796 = vmatmul.mubr.msk.f32.vlgmr.msra.gmra.mrb[120].mxu1 %vm720_vm5, %v4431_v17  ;;  %v6615_v17 = vld [vmem:[%s10397_s6 + $0xd0] sm:$0xff] }
0x1d77   : > { %v4435_v25 = vpop.f32.mrb[122].mxu0  ;;  %7798 = vmatprep.mubr.msk.f32.mxu1 %vm8587_vm0, %v8588_v6  ;;  %7820 = vmatpush3.msra.mxu1 %v6615_v17 }
0x1d78   : > { %v4436_v31 = vadd.f32 %v6585_v22, %v4435_v25  ;;  %v7751_v27 = vpop.f32.mrb[123].mxu0  ;;  %8316 = vmatprep.subr.bf16.mxu1 %v8586_v3 }
0x1d79   : > { %v6619_v27 = vld [vmem:[%s10396_s5 + $0x1e0] sm:$0xff] }
0x1d7a   : > { %7799 = vmatmul.mubr.msk.f32.gmra.mrb[122].mxu1 %vm720_vm5, %v4436_v31 }
0x1d7b   : > { %v4440_v34 = vpop.f32.mrb[124].mxu0  ;;  %7801 = vmatprep.mubr.msk.f32.mxu1 %vm8587_vm0, %v8588_v6 }
0x1d7c   : > { %v4441_v5 = vadd.f32 %v6585_v22, %v4440_v34  ;;  %v7754_v28 = vpop.f32.mrb[125].mxu0  ;;  %v6620_v34 = vld [vmem:[%s10396_s5 + $0x1e8] sm:$0xff] }
0x1d7d   : > { %v8311_v28 = vpack.c.bf16 %v6620_v34, %v6619_v27 }
0x1d7e   : > { %7802 = vmatmul.mubr.msk.f32.gmra.mrb[124].mxu1 %vm720_vm5, %v4441_v5 }
0x1d7f   : > { %v4610_v9 = vpop.f32.mrb[126].mxu0  ;;  %7821 = vmatprep.mubr.msk.f32.mxu1 %vm8587_vm0, %v8588_v6 }
0x1d80   : > { %v7782_v19 = vpop.f32.mrb[127].mxu0  ;;  %v4611_v39 = vadd.f32 %v6601_v38, %v4610_v9 }
0x1d81   : > { %v6621_v19 = vld [vmem:[%s10396_s5 + $0x1f0] sm:$0xff] }
0x1d83   : > { %v4615_v26 = vpop.f32.mrb[128].mxu0 }
0x1d84   : > { %v4616_v41 = vadd.f32 %v6601_v38, %v4615_v26  ;;  %v7785_v42 = vpop.f32.mrb[129].mxu0 }
0x1d86   : > { %v8308_v24 = vpack.c.bf16 %v4616_v41, %v4611_v39 }
0x1d87   : > { %v4620_v43 = vpop.f32.mrb[130].mxu0 }
0x1d88   : > { %v7788_v13 = vpop.f32.mrb[131].mxu0  ;;  %8309 = vmatpush3.bf16.msra.mxu0 %v8308_v24  ;;  %v4621_v45 = vadd.f32 %v6601_v38, %v4620_v43  ;;  %v6622_v38 = vld [vmem:[%s10396_s5 + $0x1f8] sm:$0xff]  ;;  %v6635_v43 = vld [vmem:[%s10396_s5 + $0x2e0] sm:$0xff] }
0x1d89   : > { %7808 = vmatprep.subr.mxu0 %v8588_v6  ;;  %v8314_v39 = vpack.c.bf16 %v6622_v38, %v6621_v19  ;;  %v6636_v13 = vld [vmem:[%s10396_s5 + $0x2e8] sm:$0xff] }
0x1d8a   : > { %v6631_v38 = vld [vmem:[%s10395_s4 + $0x2b] ss:$0 sm:$0xff] }
0x1d8c   : > { %7809 = vmatpush3.msk.msra.mxu0 %vm869_vm4, %v4621_v45  ;;  %v8323_v45 = vpack.c.bf16 %v6636_v13, %v6635_v43 }
0x1d8d   : > { %8310 = vmatprep.subr.bf16.mxu0 %v8586_v3 }
0x1e49   : > { %v4708_v46 = vpop.f32.mrb[120].mxu1 }
0x1e4a   : > { %v4722_v48 = vmul.f32 0.35355338, %v4708_v46  ;;  %v7797_v14 = vpop.f32.mrb[121].mxu1  ;;  %v6637_v46 = vld [vmem:[%s10396_s5 + $0x2f0] sm:$0xff] }
0x1e4c   : > { %v4725_v49 = vadd.f32 %v9627_v59, %v4722_v48  ;;  %v6638_v48 = vld [vmem:[%s10396_s5 + $0x2f8] sm:$0xff] }
0x1e4d   : > { %v4713_v30 = vpop.f32.mrb[122].mxu1  ;;  %v8326_v14 = vpack.c.bf16 %v6638_v48, %v6637_v46 }
0x1e4e   : > { %v4723_v33 = vmul.f32 0.35355338, %v4713_v30  ;;  %v7800_v51 = vpop.f32.mrb[123].mxu1  ;;  %v4728_v52 = vsel %vm825_vm7, %v4725_v49, -inf  ;;  %v6628_v30 = vld [vmem:[%s10396_s5 + $0x268] sm:$0xff] }
0x1e4f   : > { %4729 = vmax.xlane.f32.xlu0 %v4728_v52  ;;  %v6629_v51 = vld [vmem:[%s10396_s5 + $0x270] sm:$0xff]  ;;  %v6630_v52 = vld [vmem:[%s10396_s5 + $0x278] sm:$0xff] }
0x1e50   : > { %v4726_v32 = vadd.f32 %v9634_v1, %v4723_v33 }
0x1e51   : > { %v4718_v29 = vpop.f32.mrb[124].mxu1 }
0x1e52   : > { %v4724_v54 = vmul.f32 0.35355338, %v4718_v29  ;;  %v7803_v55 = vpop.f32.mrb[125].mxu1  ;;  %v4731_v56 = vsel %vm825_vm7, %v4726_v32, -inf }
0x1e53   : > { %4732 = vmax.xlane.f32.xlu1 %v4731_v56 }
0x1e54   : > { %v4727_v36 = vadd.f32 %v9641_v8, %v4724_v54  ;;  %v8320_v54 = vpack.c.bf16 %v6630_v52, %v6629_v51 }
0x1e56   : > { %v4734_v40 = vsel %vm832_vm8, %v4727_v36, -inf }
0x1e57   : > { %4735 = vmax.xlane.f32.xlu0 %v4734_v40 }
0x1edc   : > { %v4730_v57 = vpop.xlane.xlu0 %4729 }
0x1edd   : > { %v4737_v60 = vsub.f32 %v4725_v49, %v4730_v57  ;;  %v6627_v49 = vld [vmem:[%s10396_s5 + $0x260] sm:$0xff] }
0x1ede   : > { %v8317_v33 = vpack.c.bf16 %v6628_v30, %v6627_v49 }
0x1edf   : > { %v4740_v62 = vmul.f32 1.442695, %v4737_v60 }
0x1ee0   : > { %v4733_v63 = vpop.xlane.xlu1 %4732 }
0x1ee1   : > { %8533 = vpow2.f32 %v4740_v62  ;;  %v4738_v16 = vsub.f32 %v4726_v32, %v4733_v63 }
0x1ee3   : > { %v4742_v21 = vmul.f32 1.442695, %v4738_v16 }
0x1ee4   : > { %v4736_v2 = vpop.xlane.xlu0 %4735 }
0x1ee5   : > { %8535 = vpow2.f32 %v4742_v21  ;;  %v4739_v4 = vsub.f32 %v4727_v36, %v4736_v2 }
0x1ee7   : > { %v4744_v61 = vmul.f32 1.442695, %v4739_v4  ;;  %v6639_v4 = vld [vmem:[%s10395_s4 + $0x2f] ss:$0 sm:$0xff] }
0x1ee9   : > { %8537 = vpow2.f32 %v4744_v61 }
0x1eeb   : > { %v8534_v11 = vpop.eup %8533 }
0x1eec   : > { %v4746_v47 = vsel %vm825_vm7, %v8534_v11, 0.0 }
0x1eed   : > { %4747 = vadd.xlane.f32.xlu1 %v4746_v47 }
0x1eef   : > { %v8536_v15 = vpop.eup %8535 }
0x1ef0   : > { %v4749_v20 = vsel %vm825_vm7, %v8536_v15, 0.0 }
0x1ef1   : > { %4750 = vadd.xlane.f32.xlu0 %v4749_v20 }
0x1ef3   : > { %v8538_v22 = vpop.eup %8537 }
0x1ef4   : > { %v4752_v12 = vsel %vm832_vm8, %v8538_v22, 0.0 }
0x1ef5   : > { %4753 = vadd.xlane.f32.xlu1 %v4752_v12 }
0x1f7a   : > { %v4748_v23 = vpop.xlane.xlu1 %4747 }
0x1f7b   : > { %8539 = vrcp.f32 %v4748_v23 }
0x1f7e   : > { %v4751_v25 = vpop.xlane.xlu0 %4750 }
0x1f7f   : > { %8541 = vrcp.f32 %v4751_v25 }
0x1f82   : > { %v4754_v31 = vpop.xlane.xlu1 %4753 }
0x1f83   : > { %8543 = vrcp.f32 %v4754_v31 }
0x1f85   : > { %v8540_v5 = vpop.eup %8539 }
0x1f86   : > { %v4758_v9 = vmul.f32 %v8540_v5, %v8534_v11 }
0x1f88   : > { %7811 = vmatmul.mubr.msk.f32.vlgmr.msra.gmra.mrb[132].mxu0 %vm825_vm7, %v4758_v9 }
0x1f89   : > { %v8542_v26 = vpop.eup %8541  ;;  %7813 = vmatprep.mubr.msk.f32.mxu0 %vm8587_vm0, %v8588_v6  ;;  %8312 = vmatpush3.bf16.msra.mxu0 %v8311_v28 }
0x1f8a   : > { %v4759_v41 = vmul.f32 %v8542_v26, %v8536_v15  ;;  %8313 = vmatprep.subr.bf16.mxu0 %v8586_v3 }
0x1f8c   : > { %7814 = vmatmul.mubr.msk.f32.gmra.mrb[134].mxu0 %vm825_vm7, %v4759_v41 }
0x1f8d   : > { %v8544_v42 = vpop.eup %8543  ;;  %7816 = vmatprep.mubr.msk.f32.mxu0 %vm8587_vm0, %v8588_v6  ;;  %8315 = vmatpush3.bf16.msra.mxu0 %v8314_v39 }
0x1f8e   : > { %v4760_v24 = vmul.f32 %v8544_v42, %v8538_v22  ;;  %8322 = vmatprep.subr.bf16.mxu0 %v8586_v3 }
0x1f90   : > { %7817 = vmatmul.mubr.msk.f32.gmra.mrb[136].mxu0 %vm825_vm7, %v4760_v24 }
0x1f91   : > { %7838 = vmatprep.mubr.msk.f32.mxu0 %vm8587_vm0, %v8588_v6 }
0x1f94   : > { %7839 = vmatmul.mubr.msk.f32.vlgmr.msra.gmra.mrb[138].mxu0 %vm386_vm2, %v9482_v53 }
0x1f95   : > { %7841 = vmatprep.mubr.msk.f32.mxu0 %vm8587_vm0, %v8588_v6  ;;  %8324 = vmatpush3.bf16.msra.mxu0 %v8323_v45 }
0x1f96   : > { %8325 = vmatprep.subr.bf16.mxu0 %v8586_v3 }
0x1f98   : > { %7842 = vmatmul.mubr.msk.f32.gmra.mrb[140].mxu0 %vm386_vm2, %v9494_v58 }
0x1f99   : > { %7844 = vmatprep.mubr.msk.f32.mxu0 %vm8587_vm0, %v8588_v6  ;;  %8327 = vmatpush3.bf16.msra.mxu0 %v8326_v14 }
0x1f9a   : > { %8332 = vmatprep.subr.bf16.mxu0 %v8586_v3 }
0x1f9c   : > { %7845 = vmatmul.mubr.msk.f32.gmra.mrb[142].mxu0 %vm386_vm2, %v9501_v44 }
0x1f9d   : > { %7872 = vmatprep.mubr.msk.f32.mxu0 %vm8587_vm0, %v8588_v6 }
0x1fa0   : > { %7873 = vmatmul.mubr.msk.f32.vlgmr.msra.gmra.mrb[144].mxu0 %vm386_vm2, %v9482_v53 }
0x1fa1   : > { %7875 = vmatprep.mubr.msk.f32.mxu0 %vm8587_vm0, %v8588_v6 }
0x1fa4   : > { %7876 = vmatmul.mubr.msk.f32.gmra.mrb[146].mxu0 %vm386_vm2, %v9494_v58 }
0x1fa5   : > { %7878 = vmatprep.mubr.msk.f32.mxu0 %vm8587_vm0, %v8588_v6 }
0x1fa8   : > { %7879 = vmatmul.mubr.msk.f32.gmra.mrb[148].mxu0 %vm386_vm2, %v9501_v44 }
0x1fa9   : > { %7902 = vmatprep.mubr.msk.f32.mxu0 %vm8587_vm0, %v8588_v6 }
0x205b   : > { %v4839_v32 = vpop.f32.mrb[132].mxu0 }
0x205c   : > { %v7812_v29 = vpop.f32.mrb[133].mxu0  ;;  %7822 = vmatmul.mubr.msk.f32.vlgmr.msra.gmra.mrb[126].mxu1 %vm720_vm5, %v4839_v32 }
0x205d   : > { %7824 = vmatprep.mubr.msk.f32.mxu1 %vm8587_vm0, %v8588_v6  ;;  %8318 = vmatpush3.bf16.msra.mxu1 %v8317_v33 }
0x205e   : > { %8319 = vmatprep.subr.bf16.mxu1 %v8586_v3 }
0x205f   : > { %v4844_v55 = vpop.f32.mrb[134].mxu0 }
0x2060   : > { %v7815_v56 = vpop.f32.mrb[135].mxu0  ;;  %7825 = vmatmul.mubr.msk.f32.gmra.mrb[128].mxu1 %vm720_vm5, %v4844_v55 }
0x2061   : > { %7827 = vmatprep.mubr.msk.f32.mxu1 %vm8587_vm0, %v8588_v6  ;;  %8321 = vmatpush3.bf16.msra.mxu1 %v8320_v54 }
0x2062   : > { %8328 = vmatprep.subr.bf16.mxu1 %v8586_v3 }
0x2063   : > { %v4849_v36 = vpop.f32.mrb[136].mxu0 }
0x2064   : > { %v7818_v40 = vpop.f32.mrb[137].mxu0  ;;  %7828 = vmatmul.mubr.msk.f32.gmra.mrb[130].mxu1 %vm720_vm5, %v4849_v36 }
0x2065   : > { %7855 = vmatprep.mubr.msk.f32.mxu1 %vm8587_vm0, %v8588_v6 }
0x2067   : > { %v5022_v57 = vpop.f32.mrb[138].mxu0 }
0x2068   : > { %v7840_v60 = vpop.f32.mrb[139].mxu0  ;;  %7856 = vmatmul.mubr.msk.f32.vlgmr.msra.gmra.mrb[132].mxu1 %vm386_vm2, %v9482_v53 }
0x2069   : > { %7858 = vmatprep.mubr.msk.f32.mxu1 %vm8587_vm0, %v8588_v6 }
0x206b   : > { %v5027_v62 = vpop.f32.mrb[140].mxu0 }
0x206c   : > { %v7843_v63 = vpop.f32.mrb[141].mxu0  ;;  %7859 = vmatmul.mubr.msk.f32.gmra.mrb[134].mxu1 %vm386_vm2, %v9494_v58 }
0x206d   : > { %7861 = vmatprep.mubr.msk.f32.mxu1 %vm8587_vm0, %v8588_v6 }
0x206f   : > { %v5032_v16 = vpop.f32.mrb[142].mxu0 }
0x2070   : > { %v7846_v21 = vpop.f32.mrb[143].mxu0  ;;  %7862 = vmatmul.mubr.msk.f32.gmra.mrb[136].mxu1 %vm386_vm2, %v9501_v44 }
0x2071   : > { %7887 = vmatprep.mubr.msk.f32.mxu1 %vm8587_vm0, %v8588_v6 }
0x2073   : > { %v5202_v53 = vpop.f32.mrb[144].mxu0 }
0x2074   : > { %v7874_v2 = vpop.f32.mrb[145].mxu0  ;;  %v5203_v11 = vadd.f32 %v6639_v4, %v5202_v53 }
0x2077   : > { %v5207_v61 = vpop.f32.mrb[146].mxu0 }
0x2078   : > { %v5208_v58 = vadd.f32 %v6639_v4, %v5207_v61  ;;  %v7877_v47 = vpop.f32.mrb[147].mxu0 }
0x2079   : > { %v6653_v47 = vld [vmem:[%s10397_s6 + $0xd8] sm:$0xff] }
0x207a   : > { %v8333_v15 = vpack.c.bf16 %v5208_v58, %v5203_v11 }
0x207b   : > { %v5212_v20 = vpop.f32.mrb[148].mxu0 }
0x207c   : > { %v7880_v22 = vpop.f32.mrb[149].mxu0  ;;  %8334 = vmatpush3.bf16.msra.mxu0 %v8333_v15  ;;  %v5213_v44 = vadd.f32 %v6639_v4, %v5212_v20 }
0x207d   : > { %7900 = vmatprep.subr.mxu0 %v8588_v6 }
0x2080   : > { %7901 = vmatpush3.msk.msra.mxu0 %vm869_vm4, %v5213_v44 }
0x2081   : > { %8335 = vmatprep.subr.bf16.mxu0 %v8586_v3 }
0x212f   : > { %v4929_v12 = vpop.f32.mrb[126].mxu1 }
0x2130   : > { %v9997_v17 = vadd.f32 %v4929_v12, %v9857_v7  ;;  %v7823_v23 = vpop.f32.mrb[127].mxu1 }
0x2133   : > { %v4934_v25 = vpop.f32.mrb[128].mxu1 }
0x2134   : > { %v10000_v31 = vadd.f32 %v4934_v25, %v9859_v10  ;;  %v7826_v27 = vpop.f32.mrb[129].mxu1 }
0x2137   : > { %v4939_v34 = vpop.f32.mrb[130].mxu1 }
0x2138   : > { %v10003_v5 = vadd.f32 %v4939_v34, %v9861_v18  ;;  %v7829_v28 = vpop.f32.mrb[131].mxu1  ;;  %v6623_v18 = vld [vmem:[%s10395_s4 + $0x27] ss:$0 sm:$0xff] }
0x2139   : > { %v5023_v13 = vadd.f32 %v6623_v18, %v5022_v57  ;;  %v5028_v45 = vadd.f32 %v6623_v18, %v5027_v62  ;;  %v5033_v50 = vadd.f32 %v6623_v18, %v5032_v16 }
0x213b   : > { %v5112_v9 = vpop.f32.mrb[132].mxu1 }
0x213c   : > { %v7857_v19 = vpop.f32.mrb[133].mxu1  ;;  %v5113_v7 = vadd.f32 %v6631_v38, %v5112_v9 }
0x213f   : > { %v5117_v26 = vpop.f32.mrb[134].mxu1 }
0x2140   : > { %v5118_v39 = vadd.f32 %v6631_v38, %v5117_v26  ;;  %v7860_v41 = vpop.f32.mrb[135].mxu1 }
0x2142   : > { %v8329_v42 = vpack.c.bf16 %v5118_v39, %v5113_v7 }
0x2143   : > { %v5122_v24 = vpop.f32.mrb[136].mxu1 }
0x2144   : > { %v7863_v10 = vpop.f32.mrb[137].mxu1  ;;  %8331 = vmatpush3.bf16.xpose.msk.msra.mxu1 %vm8806_vm6, %v8329_v42  ;;  %v5123_v43 = vadd.f32 %v6631_v38, %v5122_v24  ;;  %v6657_v24 = vld [vmem:[%s10395_s4 + $0xc] ss:$0 sm:$0xff] }
0x2145   : > { %7885 = vmatprep.subr.mxu1 %v8588_v6 }
0x214c   : > { %7886 = vmatpush3.xpose.msk.msra.mxu1 %vm720_vm5, %v5123_v43 }
0x214d   : > { %7911 = vmatprep.subr.mxu1 %v8588_v6 }
0x214f   : > { %7888 = vmatmul.mubr.msk.f32.vlgmr.msra.gmra.mrb[138].mxu1 %vm720_vm5, %v5023_v13 }
0x2150   : > { %7890 = vmatprep.mubr.msk.f32.mxu1 %vm8587_vm0, %v8588_v6  ;;  %7912 = vmatpush3.msra.mxu1 %v6653_v47 }
0x2151   : > { %8341 = vmatprep.subr.bf16.mxu1 %v8586_v3 }
0x2153   : > { %7891 = vmatmul.mubr.msk.f32.gmra.mrb[140].mxu1 %vm720_vm5, %v5028_v45 }
0x2154   : > { %7893 = vmatprep.mubr.msk.f32.mxu1 %vm8587_vm0, %v8588_v6 }
0x2157   : > { %7894 = vmatmul.mubr.msk.f32.gmra.mrb[142].mxu1 %vm720_vm5, %v5033_v50 }
0x2158   : > { %7913 = vmatprep.mubr.msk.f32.mxu1 %vm8587_vm0, %v8588_v6 }
0x2222   : > { %v5300_v46 = vpop.f32.mrb[138].mxu1 }
0x2223   : > { %v5314_v48 = vmul.f32 0.35355338, %v5300_v46  ;;  %v7889_v14 = vpop.f32.mrb[139].mxu1 }
0x2225   : > { %v5317_v49 = vadd.f32 %v9627_v59, %v5314_v48 }
0x2226   : > { %v5305_v30 = vpop.f32.mrb[140].mxu1 }
0x2227   : > { %v5315_v33 = vmul.f32 0.35355338, %v5305_v30  ;;  %v7892_v51 = vpop.f32.mrb[141].mxu1  ;;  %v5320_v52 = vsel %vm825_vm7, %v5317_v49, -inf }
0x2228   : > { %5321 = vmax.xlane.f32.xlu0 %v5320_v52 }
0x2229   : > { %v5318_v32 = vadd.f32 %v9634_v1, %v5315_v33 }
0x222a   : > { %v5310_v29 = vpop.f32.mrb[142].mxu1 }
0x222b   : > { %v5316_v54 = vmul.f32 0.35355338, %v5310_v29  ;;  %v7895_v55 = vpop.f32.mrb[143].mxu1  ;;  %v5323_v56 = vsel %vm825_vm7, %v5318_v32, -inf }
0x222c   : > { %5324 = vmax.xlane.f32.xlu1 %v5323_v56 }
0x222d   : > { %v5319_v36 = vadd.f32 %v9641_v8, %v5316_v54 }
0x222f   : > { %v5326_v40 = vsel %vm832_vm8, %v5319_v36, -inf }
0x2230   : > { %5327 = vmax.xlane.f32.xlu0 %v5326_v40 }
0x22b5   : > { %v5322_v59 = vpop.xlane.xlu0 %5321 }
0x22b6   : > { %v5329_v57 = vsub.f32 %v5317_v49, %v5322_v59 }
0x22b8   : > { %v5332_v60 = vmul.f32 1.442695, %v5329_v57 }
0x22b9   : > { %v5325_v62 = vpop.xlane.xlu1 %5324 }
0x22ba   : > { %8545 = vpow2.f32 %v5332_v60  ;;  %v5330_v63 = vsub.f32 %v5318_v32, %v5325_v62  ;;  %v6660_v62 = vld [vmem:[%s10397_s6 + $0xe0] sm:$0xff] }
0x22bc   : > { %v5334_v16 = vmul.f32 1.442695, %v5330_v63  ;;  %v6661_v63 = vld [vmem:[%s10397_s6 + $0xe8] sm:$0xff] }
0x22bd   : > { %v5328_v21 = vpop.xlane.xlu0 %5327 }
0x22be   : > { %8547 = vpow2.f32 %v5334_v16  ;;  %v5331_v1 = vsub.f32 %v5319_v36, %v5328_v21  ;;  %v8336_v16 = vpack.c.bf16 %v6661_v63, %v6660_v62  ;;  %v6662_v21 = vld [vmem:[%s10397_s6 + $0xf0] sm:$0xff] }
0x22c0   : > { %v5336_v53 = vmul.f32 1.442695, %v5331_v1  ;;  %v6663_v1 = vld [vmem:[%s10397_s6 + $0xf8] sm:$0xff] }
0x22c2   : > { %8549 = vpow2.f32 %v5336_v53  ;;  %v8339_v53 = vpack.c.bf16 %v6663_v1, %v6662_v21 }
0x22c4   : > { %v8546_v2 = vpop.eup %8545 }
0x22c5   : > { %v5338_v4 = vsel %vm825_vm7, %v8546_v2, 0.0 }
0x22c6   : > { %5339 = vadd.xlane.f32.xlu1 %v5338_v4  ;;  %v6669_v4 = vld [vmem:[%s10397_s6 + $0x108] sm:$0xff] }
0x22c8   : > { %v8548_v8 = vpop.eup %8547 }
0x22c9   : > { %v5341_v61 = vsel %vm825_vm7, %v8548_v8, 0.0 }
0x22ca   : > { %5342 = vadd.xlane.f32.xlu0 %v5341_v61 }
0x22cc   : > { %v8550_v11 = vpop.eup %8549 }
0x22cd   : > { %v5344_v58 = vsel %vm832_vm8, %v8550_v11, 0.0 }
0x22ce   : > { %5345 = vadd.xlane.f32.xlu1 %v5344_v58 }
0x2353   : > { %v5340_v15 = vpop.xlane.xlu1 %5339 }
0x2354   : > { %8551 = vrcp.f32 %v5340_v15 }
0x2357   : > { %v5343_v20 = vpop.xlane.xlu0 %5342 }
0x2358   : > { %8553 = vrcp.f32 %v5343_v20 }
0x235b   : > { %v5346_v22 = vpop.xlane.xlu1 %5345 }
0x235c   : > { %8555 = vrcp.f32 %v5346_v22 }
0x235e   : > { %v8552_v44 = vpop.eup %8551 }
0x235f   : > { %v5350_v12 = vmul.f32 %v8552_v44, %v8546_v2  ;;  %v6668_v2 = vld [vmem:[%s10397_s6 + $0x100] sm:$0xff] }
0x2361   : > { %7903 = vmatmul.mubr.msk.f32.vlgmr.msra.gmra.mrb[150].mxu0 %vm825_vm7, %v5350_v12 }
0x2362   : > { %v8554_v23 = vpop.eup %8553  ;;  %7905 = vmatprep.mubr.msk.f32.mxu0 %vm8587_vm0, %v8588_v6  ;;  %8337 = vmatpush3.bf16.msra.mxu0 %v8336_v16 }
0x2363   : > { %v5351_v25 = vmul.f32 %v8554_v23, %v8548_v8  ;;  %8338 = vmatprep.subr.bf16.mxu0 %v8586_v3  ;;  %v8342_v8 = vpack.c.bf16 %v6669_v4, %v6668_v2 }
0x2365   : > { %7906 = vmatmul.mubr.msk.f32.gmra.mrb[152].mxu0 %vm825_vm7, %v5351_v25  ;;  %v6658_v25 = vld [vmem:[%s10395_s4 + $0xa] ss:$0 sm:$0xff] }
0x2366   : > { %v8556_v27 = vpop.eup %8555  ;;  %7908 = vmatprep.mubr.msk.f32.mxu0 %vm8587_vm0, %v8588_v6  ;;  %8340 = vmatpush3.bf16.msra.mxu0 %v8339_v53 }
0x2367   : > { %v5352_v34 = vmul.f32 %v8556_v27, %v8550_v11  ;;  %8365 = vmatprep.subr.bf16.mxu0 %v8586_v3 }
0x2369   : > { %7909 = vmatmul.mubr.msk.f32.gmra.mrb[154].mxu0 %vm825_vm7, %v5352_v34  ;;  %v6659_v34 = vld [vmem:[%s10395_s4 + $0xb] ss:$0 sm:$0xff] }
0x236a   : > { %7930 = vmatprep.mubr.msk.f32.mxu0 %vm8587_vm0, %v8588_v6 }
0x2434   : > { %v5431_v28 = vpop.f32.mrb[150].mxu0 }
0x2435   : > { %v7904_v9 = vpop.f32.mrb[151].mxu0  ;;  %7914 = vmatmul.mubr.msk.f32.vlgmr.msra.gmra.mrb[144].mxu1 %vm720_vm5, %v5431_v28 }
0x2436   : > { %7916 = vmatprep.mubr.msk.f32.mxu1 %vm8587_vm0, %v8588_v6  ;;  %8343 = vmatpush3.bf16.msra.mxu1 %v8342_v8 }
0x2437   : > { %8344 = vmatprep.subr.bf16.mxu1 %v8586_v3 }
0x2438   : > { %v5436_v19 = vpop.f32.mrb[152].mxu0 }
0x2439   : > { %v7907_v38 = vpop.f32.mrb[153].mxu0  ;;  %7917 = vmatmul.mubr.msk.f32.gmra.mrb[146].mxu1 %vm720_vm5, %v5436_v19 }
0x243a   : > { %7919 = vmatprep.mubr.msk.f32.mxu1 %vm8587_vm0, %v8588_v6 }
0x243c   : > { %v5441_v26 = vpop.f32.mrb[154].mxu0 }
0x243d   : > { %v7910_v7 = vpop.f32.mrb[155].mxu0  ;;  %7920 = vmatmul.mubr.msk.f32.gmra.mrb[148].mxu1 %vm720_vm5, %v5441_v26 }
0x243e   : > { %7971 = vmatprep.mubr.msk.f32.mxu1 %vm8587_vm0, %v8588_v6 }
0x2508   : > { %v5521_v39 = vpop.f32.mrb[144].mxu1 }
0x2509   : > { %v5535_v41 = vadd.f32 %v5521_v39, %v9997_v17  ;;  %v7915_v42 = vpop.f32.mrb[145].mxu1 }
0x250b   : > { %v5538_v10 = vadd.f32 %v5535_v41, %v9436_v37 }
0x250c   : > { %v5526_v18 = vpop.f32.mrb[146].mxu1 }
0x250d   : > { %v10061_v43 = vadd.f32 %v6657_v24, %v5538_v10  ;;  %v5536_v13 = vadd.f32 %v5526_v18, %v10000_v31  ;;  %v7918_v45 = vpop.f32.mrb[147].mxu1  ;;  %v6670_v10 = vld [vmem:[%s10397_s6 + $0x110] sm:$0xff]  ;;  %v6671_v18 = vld [vmem:[%s10397_s6 + $0x118] sm:$0xff] }
0x250e   : > { %v6672_v45 = vld [vmem:[%s10397_s6 + $0x120] sm:$0xff] }
0x250f   : > { %v5539_v50 = vadd.f32 %v5536_v13, %v9441_v0  ;;  %v5551_v46 = vsel %vm386_vm2, %v10061_v43, 0.0  ;;  %v8345_v13 = vpack.c.bf16 %v6671_v18, %v6670_v10 }
0x2510   : > { %5552 = vadd.xlane.f32.xlu0 %v5551_v46  ;;  %v5531_v17 = vpop.f32.mrb[148].mxu1 }
0x2511   : > { %v10067_v48 = vadd.f32 %v6657_v24, %v5539_v50  ;;  %v5537_v14 = vadd.f32 %v5531_v17, %v10003_v5  ;;  %v7921_v49 = vpop.f32.mrb[149].mxu1  ;;  %8346 = vmatpush3.bf16.msra.mxu1 %v8345_v13  ;;  %v6673_v50 = vld [vmem:[%s10397_s6 + $0x128] sm:$0xff]  ;;  %v6674_v17 = vld [vmem:[%s10397_s6 + $0x130] sm:$0xff] }
0x2512   : > { %8347 = vmatprep.subr.bf16.mxu1 %v8586_v3  ;;  %v8348_v46 = vpack.c.bf16 %v6673_v50, %v6672_v45 }
0x2513   : > { %v5540_v37 = vadd.f32 %v5537_v14, %v9446_v35  ;;  %v5554_v30 = vsel %vm386_vm2, %v10067_v48, 0.0  ;;  %v6675_v14 = vld [vmem:[%s10397_s6 + $0x138] sm:$0xff] }
0x2514   : > { %5555 = vadd.xlane.f32.xlu1 %v5554_v30  ;;  %v8351_v49 = vpack.c.bf16 %v6675_v14, %v6674_v17  ;;  %v6677_v30 = vld [vmem:[%s10397_s6 + $0x148] sm:$0xff] }
0x2515   : > { %v10073_v31 = vadd.f32 %v6657_v24, %v5540_v37  ;;  %8349 = vmatpush3.bf16.msra.mxu1 %v8348_v46  ;;  %v6676_v37 = vld [vmem:[%s10397_s6 + $0x140] sm:$0xff] }
0x2516   : > { %8350 = vmatprep.subr.bf16.mxu1 %v8586_v3 }
0x2517   : > { %v5557_v0 = vsel %vm393_vm3, %v10073_v31, 0.0 }
0x2518   : > { %5558 = vadd.xlane.f32.xlu0 %v5557_v0  ;;  %v8354_v0 = vpack.c.bf16 %v6677_v30, %v6676_v37 }
0x2519   : > { %8352 = vmatpush3.bf16.msra.mxu1 %v8351_v49 }
0x251a   : > { %8353 = vmatprep.subr.bf16.mxu1 %v8586_v3 }
0x251d   : > { %8355 = vmatpush3.bf16.msra.mxu1 %v8354_v0 }
0x251e   : > { %8356 = vmatprep.subr.bf16.mxu1 %v8586_v3 }
0x259d   : > { %v5553_v33 = vpop.xlane.xlu0 %5552 }
0x259e   : > { %v5560_v51 = vmul.f32 0.03125, %v5553_v33  ;;  %v6678_v33 = vld [vmem:[%s10397_s6 + $0x150] sm:$0xff] }
0x25a0   : > { %v5563_v52 = vsub.f32 %v10061_v43, %v5560_v51  ;;  %v6679_v51 = vld [vmem:[%s10397_s6 + $0x158] sm:$0xff] }
0x25a1   : > { %v5556_v32 = vpop.xlane.xlu1 %5555 }
0x25a2   : > { %v5561_v29 = vmul.f32 0.03125, %v5556_v32  ;;  %v5566_v5 = vmul.f32 %v5563_v52, %v5563_v52  ;;  %v6680_v32 = vld [vmem:[%s10397_s6 + $0x160] sm:$0xff] }
0x25a4   : > { %v5564_v54 = vsub.f32 %v10067_v48, %v5561_v29  ;;  %v5569_v35 = vsel %vm386_vm2, %v5566_v5, 0.0  ;;  %v6681_v29 = vld [vmem:[%s10397_s6 + $0x168] sm:$0xff] }
0x25a5   : > { %5570 = vadd.xlane.f32.xlu1 %v5569_v35  ;;  %v5559_v55 = vpop.xlane.xlu0 %5558  ;;  %v8360_v5 = vpack.c.bf16 %v6681_v29, %v6680_v32  ;;  %v6683_v35 = vld [vmem:[%s10397_s6 + $0x178] sm:$0xff] }
0x25a6   : > { %v5562_v56 = vmul.f32 0.03125, %v5559_v55  ;;  %v5567_v36 = vmul.f32 %v5564_v54, %v5564_v54 }
0x25a8   : > { %v5565_v40 = vsub.f32 %v10073_v31, %v5562_v56  ;;  %v5572_v59 = vsel %vm386_vm2, %v5567_v36, 0.0  ;;  %v6664_v56 = vld [vmem:[%s10395_s4 + $0xe] ss:$0 sm:$0xff] }
0x25a9   : > { %5573 = vadd.xlane.f32.xlu0 %v5572_v59 }
0x25aa   : > { %v5568_v57 = vmul.f32 %v5565_v40, %v5565_v40 }
0x25ac   : > { %v5575_v60 = vsel %vm393_vm3, %v5568_v57, 0.0 }
0x25ad   : > { %5576 = vadd.xlane.f32.xlu1 %v5575_v60 }
0x2632   : > { %v5571_v61 = vpop.xlane.xlu1 %5570 }
0x2633   : > { %v5578_v11 = vmul.f32 0.03125, %v5571_v61 }
0x2635   : > { %v5581_v58 = vadd.f32 1e-06, %v5578_v11 }
0x2636   : > { %v5574_v47 = vpop.xlane.xlu0 %5573 }
0x2637   : > { %8557 = vrsqrt.f32 %v5581_v58  ;;  %v5579_v15 = vmul.f32 0.03125, %v5574_v47 }
0x2639   : > { %v5582_v20 = vadd.f32 1e-06, %v5579_v15 }
0x263a   : > { %v5577_v22 = vpop.xlane.xlu1 %5576 }
0x263b   : > { %8559 = vrsqrt.f32 %v5582_v20  ;;  %v5580_v44 = vmul.f32 0.03125, %v5577_v22 }
0x263d   : > { %v5583_v12 = vadd.f32 1e-06, %v5580_v44 }
0x263f   : > { %8561 = vrsqrt.f32 %v5583_v12 }
0x2641   : > { %v8558_v23 = vpop.eup %8557 }
0x2642   : > { %v5587_v27 = vmul.f32 %v8558_v23, %v5563_v52  ;;  %v8357_v52 = vpack.c.bf16 %v6679_v51, %v6678_v33 }
0x2644   : > { %v5594_v28 = vmul.f32 %v6658_v25, %v5587_v27  ;;  %8358 = vmatpush3.bf16.msra.mxu1 %v8357_v52 }
0x2645   : > { %v8560_v9 = vpop.eup %8559  ;;  %8359 = vmatprep.subr.bf16.mxu1 %v8586_v3 }
0x2646   : > { %v5601_v19 = vadd.f32 %v6659_v34, %v5594_v28  ;;  %v5588_v38 = vmul.f32 %v8560_v9, %v5564_v54  ;;  %v6682_v54 = vld [vmem:[%s10397_s6 + $0x170] sm:$0xff] }
0x2647   : > { %v8363_v55 = vpack.c.bf16 %v6683_v35, %v6682_v54 }
0x2648   : > { %7931 = vmatmul.mubr.msk.f32.vlgmr.msra.gmra.mrb[156].mxu0 %vm386_vm2, %v5601_v19  ;;  %v5595_v26 = vmul.f32 %v6658_v25, %v5588_v38  ;;  %8361 = vmatpush3.bf16.msra.mxu1 %v8360_v5 }
0x2649   : > { %v8562_v7 = vpop.eup %8561  ;;  %7933 = vmatprep.mubr.msk.f32.mxu0 %vm8587_vm0, %v8588_v6  ;;  %8362 = vmatprep.subr.bf16.mxu1 %v8586_v3 }
0x264a   : > { %v5602_v39 = vadd.f32 %v6659_v34, %v5595_v26  ;;  %v5589_v41 = vmul.f32 %v8562_v7, %v5565_v40 }
0x264c   : > { %7934 = vmatmul.mubr.msk.f32.gmra.mrb[158].mxu0 %vm386_vm2, %v5602_v39  ;;  %v5596_v42 = vmul.f32 %v6658_v25, %v5589_v41  ;;  %8364 = vmatpush3.bf16.msra.mxu1 %v8363_v55 }
0x264d   : > { %7936 = vmatprep.mubr.msk.f32.mxu0 %vm8587_vm0, %v8588_v6  ;;  %8401 = vmatprep.subr.bf16.mxu1 %v8586_v3 }
0x264e   : > { %v5603_v24 = vadd.f32 %v6659_v34, %v5596_v42 }
0x2650   : > { %7937 = vmatmul.mubr.msk.f32.gmra.mrb[160].mxu0 %vm386_vm2, %v5603_v24  ;;  %v6684_v24 = vld [vmem:[%s10395_s4 + $0xd] ss:$0 sm:$0xff] }
0x2651   : > { %7988 = vmatprep.mubr.msk.f32.mxu0 %vm8587_vm0, %v8588_v6 }
0x271b   : > { %v5688_v36 = vpop.f32.mrb[156].mxu0 }
0x271c   : > { %v5689_v40 = vadd.f32 %v6664_v56, %v5688_v36  ;;  %v7932_v59 = vpop.f32.mrb[157].mxu0 }
0x271e   : > { %v5702_v57 = vmul.f32 %v5689_v40, %v5689_v40 }
0x271f   : > { %v5693_v60 = vpop.f32.mrb[158].mxu0 }
0x2720   : > { %v5705_v62 = vmul.f32 %v5702_v57, %v5689_v40  ;;  %v5694_v63 = vadd.f32 %v6664_v56, %v5693_v60  ;;  %v7935_v16 = vpop.f32.mrb[159].mxu0 }
0x2722   : > { %v5708_v21 = vmul.f32 0.044715, %v5705_v62  ;;  %v5703_v1 = vmul.f32 %v5694_v63, %v5694_v63  ;;  %v5888_v62 = vld [vmem:[%s10394_s3 + $0x30] sm:$0xff] }
0x2723   : > { %v5698_v53 = vpop.f32.mrb[160].mxu0 }
0x2724   : > { %v5711_v2 = vadd.f32 %v5708_v21, %v5689_v40  ;;  %v5706_v4 = vmul.f32 %v5703_v1, %v5694_v63  ;;  %v5699_v8 = vadd.f32 %v6664_v56, %v5698_v53  ;;  %v7938_v61 = vpop.f32.mrb[161].mxu0  ;;  %v5890_v21 = vld [vmem:[%s10394_s3 + $0x40] sm:$0xff]  ;;  %v5891_v1 = vld [vmem:[%s10394_s3 + $0x48] sm:$0xff] }
0x2725   : > { %v8369_v53 = vpack.c.bf16 %v5891_v1, %v5890_v21  ;;  %v6103_v21 = vld [vmem:[%s10394_s3 + $0x120] sm:$0xff]  ;;  %v6104_v1 = vld [vmem:[%s10394_s3 + $0x128] sm:$0xff] }
0x2726   : > { %v5714_v11 = vmul.f32 0.7978846, %v5711_v2  ;;  %v5709_v58 = vmul.f32 0.044715, %v5706_v4  ;;  %v5704_v47 = vmul.f32 %v5699_v8, %v5699_v8  ;;  %v6081_v2 = vld [vmem:[%s10394_s3 + $0x70] sm:$0xff]  ;;  %v6082_v4 = vld [vmem:[%s10394_s3 + $0x78] sm:$0xff] }
0x2727   : > { %v8402_v61 = vpack.c.bf16 %v6082_v4, %v6081_v2  ;;  %v6105_v2 = vld [vmem:[%s10394_s3 + $0x130] sm:$0xff]  ;;  %v6106_v4 = vld [vmem:[%s10394_s3 + $0x138] sm:$0xff] }
0x2728   : > { %8563 = vtanh.f32 %v5714_v11  ;;  %v5712_v15 = vadd.f32 %v5709_v58, %v5694_v63  ;;  %v5707_v20 = vmul.f32 %v5704_v47, %v5699_v8  ;;  %v6084_v11 = vld [vmem:[%s10394_s3 + $0x88] sm:$0xff]  ;;  %v6085_v47 = vld [vmem:[%s10394_s3 + $0x90] sm:$0xff] }
0x272a   : > { %v5715_v22 = vmul.f32 0.7978846, %v5712_v15  ;;  %v5710_v44 = vmul.f32 0.044715, %v5707_v20  ;;  %v6086_v15 = vld [vmem:[%s10394_s3 + $0x98] sm:$0xff] }
0x272b   : > { %v8408_v20 = vpack.c.bf16 %v6086_v15, %v6085_v47  ;;  %v6107_v47 = vld [vmem:[%s10394_s3 + $0x140] sm:$0xff]  ;;  %v6108_v15 = vld [vmem:[%s10394_s3 + $0x148] sm:$0xff] }
0x272c   : > { %v5713_v12 = vadd.f32 %v5710_v44, %v5699_v8  ;;  %8565 = vtanh.f32 %v5715_v22  ;;  %v6087_v22 = vld [vmem:[%s10394_s3 + $0xa0] sm:$0xff]  ;;  %v6088_v44 = vld [vmem:[%s10394_s3 + $0xa8] sm:$0xff] }
0x272e   : > { %v5716_v23 = vmul.f32 0.7978846, %v5713_v12  ;;  %v8411_v12 = vpack.c.bf16 %v6088_v44, %v6087_v22  ;;  %v6109_v22 = vld [vmem:[%s10394_s3 + $0x150] sm:$0xff]  ;;  %v6110_v44 = vld [vmem:[%s10394_s3 + $0x158] sm:$0xff] }
0x2730   : > { %8567 = vtanh.f32 %v5716_v23  ;;  %v6089_v23 = vld [vmem:[%s10394_s3 + $0xb0] sm:$0xff] }
0x2732   : > { %v8564_v25 = vpop.eup %8563 }
0x2733   : > { %v5720_v27 = vadd.f32 1.0, %v8564_v25  ;;  %v6090_v25 = vld [vmem:[%s10394_s3 + $0xb8] sm:$0xff] }
0x2735   : > { %v5723_v34 = vmul.f32 0.5, %v5720_v27  ;;  %v8414_v27 = vpack.c.bf16 %v6090_v25, %v6089_v23  ;;  %v6111_v23 = vld [vmem:[%s10394_s3 + $0x160] sm:$0xff]  ;;  %v6112_v25 = vld [vmem:[%s10394_s3 + $0x168] sm:$0xff] }
0x2736   : > { %v8566_v28 = vpop.eup %8565 }
0x2737   : > { %v5726_v9 = vmul.f32 %v5723_v34, %v5689_v40  ;;  %v5721_v19 = vadd.f32 1.0, %v8566_v28  ;;  %v6091_v34 = vld [vmem:[%s10394_s3 + $0xc0] sm:$0xff]  ;;  %v6092_v28 = vld [vmem:[%s10394_s3 + $0xc8] sm:$0xff] }
0x2739   : > { %7972 = vmatmul.mubr.f32.vlgmr.msra.gmra.mrb[150].mxu1 %v5726_v9  ;;  %v5724_v38 = vmul.f32 0.5, %v5721_v19  ;;  %v8417_v9 = vpack.c.bf16 %v6092_v28, %v6091_v34  ;;  %v6093_v19 = vld [vmem:[%s10394_s3 + $0xd0] sm:$0xff] }
0x273a   : > { %v8568_v26 = vpop.eup %8567  ;;  %7974 = vmatprep.mubr.msk.f32.mxu1 %vm8587_vm0, %v8588_v6  ;;  %8403 = vmatpush3.bf16.msra.mxu1 %v8402_v61  ;;  %v8390_v61 = vpack.c.bf16 %v6106_v4, %v6105_v2  ;;  %v6687_v34 = vld [vmem:[%s10395_s4 + $0x12] ss:$0 sm:$0xff] }
0x273b   : > { %v5727_v7 = vmul.f32 %v5724_v38, %v5694_v63  ;;  %v5722_v39 = vadd.f32 1.0, %v8568_v26  ;;  %v5889_v63 = vld [vmem:[%s10394_s3 + $0x38] sm:$0xff]  ;;  %8404 = vmatprep.subr.bf16.mxu1 %v8586_v3 }
0x273c   : > { %v8366_v16 = vpack.c.bf16 %v5889_v63, %v5888_v62  ;;  %v6094_v38 = vld [vmem:[%s10394_s3 + $0xd8] sm:$0xff]  ;;  %v6101_v62 = vld [vmem:[%s10394_s3 + $0x110] sm:$0xff] }
0x273d   : > { %7975 = vmatmul.mubr.f32.gmra.mrb[152].mxu1 %v5727_v7  ;;  %v5725_v41 = vmul.f32 0.5, %v5722_v39  ;;  %v8420_v26 = vpack.c.bf16 %v6094_v38, %v6093_v19  ;;  %v6102_v63 = vld [vmem:[%s10394_s3 + $0x118] sm:$0xff] }
0x273e   : > { %7977 = vmatprep.mubr.msk.f32.mxu1 %vm8587_vm0, %v8588_v6  ;;  %8367 = vmatpush3.bf16.msra.mxu0 %v8366_v16  ;;  %v8384_v16 = vpack.c.bf16 %v6102_v63, %v6101_v62 }
0x273f   : > { %v5728_v42 = vmul.f32 %v5725_v41, %v5699_v8  ;;  %8368 = vmatprep.subr.bf16.mxu0 %v8586_v3  ;;  %v6083_v8 = vld [vmem:[%s10394_s3 + $0x80] sm:$0xff] }
0x2740   : > { %v8405_v58 = vpack.c.bf16 %v6084_v11, %v6083_v8  ;;  %v6095_v8 = vld [vmem:[%s10394_s3 + $0xe0] sm:$0xff]  ;;  %v6096_v11 = vld [vmem:[%s10394_s3 + $0xe8] sm:$0xff] }
0x2741   : > { %7978 = vmatmul.mubr.f32.gmra.mrb[154].mxu1 %v5728_v42 }
0x2742   : > { %8087 = vmatprep.mubr.msk.f32.mxu1 %vm8587_vm0, %v8588_v6  ;;  %8370 = vmatpush3.bf16.msra.mxu0 %v8369_v53  ;;  %v8387_v53 = vpack.c.bf16 %v6104_v1, %v6103_v21 }
0x2743   : > { %8371 = vmatprep.subr.bf16.mxu0 %v8586_v3  ;;  %8406 = vmatpush3.bf16.msra.mxu1 %v8405_v58  ;;  %v8423_v58 = vpack.c.bf16 %v6096_v11, %v6095_v8 }
0x2744   : > { %8407 = vmatprep.subr.bf16.mxu1 %v8586_v3 }
0x2747   : > { %8409 = vmatpush3.bf16.msra.mxu1 %v8408_v20  ;;  %v8393_v20 = vpack.c.bf16 %v6108_v15, %v6107_v47 }
0x2748   : > { %8410 = vmatprep.subr.bf16.mxu1 %v8586_v3 }
0x274b   : > { %8412 = vmatpush3.bf16.msra.mxu1 %v8411_v12  ;;  %v8396_v12 = vpack.c.bf16 %v6110_v44, %v6109_v22 }
0x274c   : > { %8413 = vmatprep.subr.bf16.mxu1 %v8586_v3 }
0x274f   : > { %8415 = vmatpush3.bf16.msra.mxu1 %v8414_v27  ;;  %v8399_v27 = vpack.c.bf16 %v6112_v25, %v6111_v23 }
0x2750   : > { %8416 = vmatprep.subr.bf16.mxu1 %v8586_v3 }
0x2753   : > { %8418 = vmatpush3.bf16.msra.mxu1 %v8417_v9 }
0x2754   : > { %8419 = vmatprep.subr.bf16.mxu1 %v8586_v3 }
0x2757   : > { %8421 = vmatpush3.bf16.msra.mxu1 %v8420_v26 }
0x2758   : > { %8422 = vmatprep.subr.bf16.mxu1 %v8586_v3 }
0x275b   : > { %8424 = vmatpush3.bf16.msra.mxu1 %v8423_v58 }
0x280c   : > { %v5816_v10 = vpop.f32.mrb[150].mxu1 }
0x280d   : > { %v5817_v18 = vadd.f32 %v6684_v24, %v5816_v10  ;;  %v7973_v13 = vpop.f32.mrb[151].mxu1 }
0x280f   : > { %v5830_v45 = vadd.f32 %v5817_v18, %v10061_v43 }
0x2810   : > { %v5821_v50 = vpop.f32.mrb[152].mxu1 }
0x2811   : > { %v5822_v46 = vadd.f32 %v6684_v24, %v5821_v50  ;;  %v7976_v17 = vpop.f32.mrb[153].mxu1  ;;  %v5835_v14 = vsel %vm386_vm2, %v5830_v45, 0.0 }
0x2812   : > { %5836 = vadd.xlane.f32.xlu0 %v5835_v14  ;;  %v5986_v14 = vld [vmem:[%s10394_s3 + $0x50] sm:$0xff] }
0x2813   : > { %v5831_v49 = vadd.f32 %v5822_v46, %v10067_v48  ;;  %v6685_v46 = vld [vmem:[%s10395_s4 + $0x10] ss:$0 sm:$0xff] }
0x2814   : > { %v5826_v37 = vpop.f32.mrb[154].mxu1 }
0x2815   : > { %v5827_v30 = vadd.f32 %v6684_v24, %v5826_v37  ;;  %v7979_v0 = vpop.f32.mrb[155].mxu1  ;;  %v5838_v33 = vsel %vm386_vm2, %v5831_v49, 0.0  ;;  %v6686_v37 = vld [vmem:[%s10395_s4 + $0x11] ss:$0 sm:$0xff] }
0x2816   : > { %5839 = vadd.xlane.f32.xlu1 %v5838_v33 }
0x2817   : > { %v5832_v51 = vadd.f32 %v5827_v30, %v10073_v31 }
0x2819   : > { %v5841_v52 = vsel %vm393_vm3, %v5832_v51, 0.0 }
0x281a   : > { %5842 = vadd.xlane.f32.xlu0 %v5841_v52 }
0x289f   : > { %v5837_v43 = vpop.xlane.xlu0 %5836 }
0x28a0   : > { %v5844_v32 = vmul.f32 0.03125, %v5837_v43  ;;  %v5988_v43 = vld [vmem:[%s10394_s3 + $0x60] sm:$0xff] }
0x28a2   : > { %v10186_v29 = vsub.f32 %v5830_v45, %v5844_v32  ;;  %v5989_v32 = vld [vmem:[%s10394_s3 + $0x68] sm:$0xff] }
0x28a3   : > { %v5840_v5 = vpop.xlane.xlu1 %5839 }
0x28a4   : > { %v5845_v54 = vmul.f32 0.03125, %v5840_v5  ;;  %v5850_v48 = vmul.f32 %v10186_v29, %v10186_v29 }
0x28a6   : > { %v10190_v35 = vsub.f32 %v5831_v49, %v5845_v54  ;;  %v5853_v55 = vsel %vm386_vm2, %v5850_v48, 0.0  ;;  %v5987_v49 = vld [vmem:[%s10394_s3 + $0x58] sm:$0xff]  ;;  %v8375_v54 = vpack.c.bf16 %v5989_v32, %v5988_v43 }
0x28a7   : > { %5854 = vadd.xlane.f32.xlu1 %v5853_v55  ;;  %v5843_v56 = vpop.xlane.xlu0 %5842  ;;  %v8372_v33 = vpack.c.bf16 %v5987_v49, %v5986_v14 }
0x28a8   : > { %v5846_v36 = vmul.f32 0.03125, %v5843_v56  ;;  %v5851_v31 = vmul.f32 %v10190_v35, %v10190_v35 }
0x28aa   : > { %v10195_v40 = vsub.f32 %v5832_v51, %v5846_v36  ;;  %v5856_v59 = vsel %vm386_vm2, %v5851_v31, 0.0  ;;  %v6097_v36 = vld [vmem:[%s10394_s3 + $0xf0] sm:$0xff]  ;;  %v6098_v31 = vld [vmem:[%s10394_s3 + $0xf8] sm:$0xff] }
0x28ab   : > { %5857 = vadd.xlane.f32.xlu0 %v5856_v59  ;;  %v6099_v59 = vld [vmem:[%s10394_s3 + $0x100] sm:$0xff] }
0x28ac   : > { %v5852_v57 = vmul.f32 %v10195_v40, %v10195_v40 }
0x28ae   : > { %v5859_v60 = vsel %vm393_vm3, %v5852_v57, 0.0  ;;  %v6100_v57 = vld [vmem:[%s10394_s3 + $0x108] sm:$0xff] }
0x28af   : > { %5860 = vadd.xlane.f32.xlu1 %v5859_v60  ;;  %v8381_v60 = vpack.c.bf16 %v6100_v57, %v6099_v59 }
0x2934   : > { %v5855_v7 = vpop.xlane.xlu1 %5854 }
0x2935   : > { %v5862_v39 = vmul.f32 0.03125, %v5855_v7 }
0x2937   : > { %v5865_v41 = vadd.f32 1e-06, %v5862_v39 }
0x2938   : > { %v5858_v42 = vpop.xlane.xlu0 %5857 }
0x2939   : > { %8569 = vrsqrt.f32 %v5865_v41  ;;  %v5863_v24 = vmul.f32 0.03125, %v5858_v42 }
0x293b   : > { %v5866_v10 = vadd.f32 1e-06, %v5863_v24 }
0x293c   : > { %v5861_v18 = vpop.xlane.xlu1 %5860 }
0x293d   : > { %8571 = vrsqrt.f32 %v5866_v10  ;;  %v5864_v13 = vmul.f32 0.03125, %v5861_v18  ;;  %v6691_v10 = vld [vmem:[%s10395_s4 + $0x13] ss:$0 sm:$0xff] }
0x293f   : > { %v5867_v45 = vadd.f32 1e-06, %v5864_v13 }
0x2941   : > { %8573 = vrsqrt.f32 %v5867_v45 }
0x2943   : > { %v8570_v50 = vpop.eup %8569 }
0x2944   : > { %v5871_v17 = vmul.f32 %v8570_v50, %v10186_v29 }
0x2946   : > { %v5878_v30 = vmul.f32 %v6685_v46, %v5871_v17 }
0x2947   : > { %v8572_v0 = vpop.eup %8571 }
0x2948   : > { %v5885_v51 = vadd.f32 %v6686_v37, %v5878_v30  ;;  %v5872_v52 = vmul.f32 %v8572_v0, %v10190_v35 }
0x294a   : > { %7989 = vmatmul.mubr.msk.f32.vlgmr.msra.gmra.mrb[162].mxu0 %vm386_vm2, %v5885_v51  ;;  %v5879_v29 = vmul.f32 %v6685_v46, %v5872_v52 }
0x294b   : > { %v8574_v5 = vpop.eup %8573  ;;  %7991 = vmatprep.mubr.msk.f32.mxu0 %vm8587_vm0, %v8588_v6  ;;  %8373 = vmatpush3.bf16.msra.mxu0 %v8372_v33 }
0x294c   : > { %v5886_v48 = vadd.f32 %v6686_v37, %v5879_v29  ;;  %v5873_v35 = vmul.f32 %v8574_v5, %v10195_v40  ;;  %8374 = vmatprep.subr.bf16.mxu0 %v8586_v3  ;;  %v8378_v40 = vpack.c.bf16 %v6098_v31, %v6097_v36 }
0x294e   : > { %7992 = vmatmul.mubr.msk.f32.gmra.mrb[164].mxu0 %vm386_vm2, %v5886_v48  ;;  %v5880_v55 = vmul.f32 %v6685_v46, %v5873_v35  ;;  %v6695_v35 = vld [vmem:[%s10395_s4 + $0x14] ss:$0 sm:$0xff] }
0x294f   : > { %7994 = vmatprep.mubr.msk.f32.mxu0 %vm8587_vm0, %v8588_v6  ;;  %8376 = vmatpush3.bf16.msra.mxu0 %v8375_v54 }
0x2950   : > { %v5887_v56 = vadd.f32 %v6686_v37, %v5880_v55  ;;  %8377 = vmatprep.subr.bf16.mxu0 %v8586_v3 }
0x2952   : > { %7995 = vmatmul.mubr.msk.f32.gmra.mrb[166].mxu0 %vm386_vm2, %v5887_v56 }
0x2953   : > { %8005 = vmatprep.mubr.msk.f32.mxu0 %vm8587_vm0, %v8588_v6 }
0x2956   : > { %8006 = vmatmul.mubr.msk.f32.vlgmr.msra.gmra.mrb[168].mxu0 %vm386_vm2, %v5885_v51 }
0x2957   : > { %8008 = vmatprep.mubr.msk.f32.mxu0 %vm8587_vm0, %v8588_v6  ;;  %8379 = vmatpush3.bf16.msra.mxu0 %v8378_v40 }
0x2958   : > { %8380 = vmatprep.subr.bf16.mxu0 %v8586_v3 }
0x295a   : > { %8009 = vmatmul.mubr.msk.f32.gmra.mrb[170].mxu0 %vm386_vm2, %v5886_v48 }
0x295b   : > { %8011 = vmatprep.mubr.msk.f32.mxu0 %vm8587_vm0, %v8588_v6  ;;  %8382 = vmatpush3.bf16.msra.mxu0 %v8381_v60 }
0x295c   : > { %8383 = vmatprep.subr.bf16.mxu0 %v8586_v3 }
0x295e   : > { %8012 = vmatmul.mubr.msk.f32.gmra.mrb[172].mxu0 %vm386_vm2, %v5887_v56 }
0x295f   : > { %8385 = vmatpush3.bf16.msra.mxu0 %v8384_v16  ;;  %8046 = vmatprep.mubr.msk.f32.mxu0 %vm8587_vm0, %v8588_v6 }
0x2960   : > { %8386 = vmatprep.subr.bf16.mxu0 %v8586_v3 }
0x2963   : > { %8388 = vmatpush3.bf16.msra.mxu0 %v8387_v53 }
0x2964   : > { %8389 = vmatprep.subr.bf16.mxu0 %v8586_v3 }
0x2967   : > { %8391 = vmatpush3.bf16.msra.mxu0 %v8390_v61 }
0x2968   : > { %8392 = vmatprep.subr.bf16.mxu0 %v8586_v3 }
0x296b   : > { %8394 = vmatpush3.bf16.msra.mxu0 %v8393_v20 }
0x296c   : > { %8395 = vmatprep.subr.bf16.mxu0 %v8586_v3 }
0x296f   : > { %8397 = vmatpush3.bf16.msra.mxu0 %v8396_v12 }
0x2970   : > { %8398 = vmatprep.subr.bf16.mxu0 %v8586_v3 }
0x2973   : > { %8400 = vmatpush3.bf16.msra.mxu0 %v8399_v27 }
0x2a1d   : > { %v5972_v28 = vpop.f32.mrb[162].mxu0 }
0x2a1e   : > { %v5973_v9 = vadd.f32 %v6687_v34, %v5972_v28  ;;  %v7990_v19 = vpop.f32.mrb[163].mxu0 }
0x2a20   : > { %v6075_v38 = vmax.f32 %v5973_v9, 0.0 }
0x2a21   : > { %v5977_v26 = vpop.f32.mrb[164].mxu0 }
0x2a22   : > { %v5978_v3 = vadd.f32 %v6687_v34, %v5977_v26  ;;  %v7993_v7 = vpop.f32.mrb[165].mxu0  ;;  %8088 = vmatmul.mubr.f32.vlgmr.msra.gmra.mrb[156].mxu1 %v6075_v38 }
0x2a23   : > { %8090 = vmatprep.mubr.msk.f32.mxu1 %vm8587_vm0, %v8588_v6 }
0x2a24   : > { %v6076_v39 = vmax.f32 %v5978_v3, 0.0 }
0x2a25   : > { %v5982_v41 = vpop.f32.mrb[166].mxu0 }
0x2a26   : > { %v5983_v42 = vadd.f32 %v6687_v34, %v5982_v41  ;;  %v7996_v24 = vpop.f32.mrb[167].mxu0  ;;  %8091 = vmatmul.mubr.f32.gmra.mrb[158].mxu1 %v6076_v39 }
0x2a27   : > { %8093 = vmatprep.mubr.msk.f32.mxu1 %vm8587_vm0, %v8588_v6 }
0x2a28   : > { %v6077_v18 = vmax.f32 %v5983_v42, 0.0 }
0x2a29   : > { %v6061_v13 = vpop.f32.mrb[168].mxu0 }
0x2a2a   : > { %v6062_v45 = vadd.f32 %v6691_v10, %v6061_v13  ;;  %v8007_v50 = vpop.f32.mrb[169].mxu0  ;;  %8094 = vmatmul.mubr.f32.gmra.mrb[160].mxu1 %v6077_v18 }
0x2a2c   : > { %v6078_v46 = vmax.f32 %v6062_v45, 0.0 }
0x2a2d   : > { %v6066_v17 = vpop.f32.mrb[170].mxu0 }
0x2a2e   : > { %v6067_v14 = vadd.f32 %v6691_v10, %v6066_v17  ;;  %v8010_v49 = vpop.f32.mrb[171].mxu0  ;;  %8047 = vmatmul.mubr.f32.vlgmr.msra.gmra.mrb[174].mxu0 %v6078_v46 }
0x2a2f   : > { %8049 = vmatprep.mubr.msk.f32.mxu0 %vm8587_vm0, %v8588_v6 }
0x2a30   : > { %v6079_v37 = vmax.f32 %v6067_v14, 0.0 }
0x2a31   : > { %v6071_v30 = vpop.f32.mrb[172].mxu0 }
0x2a32   : > { %v6072_v0 = vadd.f32 %v6691_v10, %v6071_v30  ;;  %v8013_v33 = vpop.f32.mrb[173].mxu0  ;;  %8050 = vmatmul.mubr.f32.gmra.mrb[176].mxu0 %v6079_v37 }
0x2a33   : > { %8052 = vmatprep.mubr.msk.f32.mxu0 %vm8587_vm0, %v8588_v6 }
0x2a34   : > { %v6080_v51 = vmax.f32 %v6072_v0, 0.0 }
0x2a36   : > { %8053 = vmatmul.mubr.f32.gmra.mrb[178].mxu0 %v6080_v51 }
0x2af5   : > { %v6259_v52 = vpop.f32.mrb[156].mxu1 }
0x2af6   : > { %v8089_v43 = vpop.f32.mrb[157].mxu1 }
0x2af9   : > { %v6264_v32 = vpop.f32.mrb[158].mxu1 }
0x2afa   : > { %v8092_v29 = vpop.f32.mrb[159].mxu1 }
0x2afd   : > { %v6269_v5 = vpop.f32.mrb[160].mxu1 }
0x2afe   : > { %v8095_v54 = vpop.f32.mrb[161].mxu1 }
0x2b01   : > { %v6179_v48 = vpop.f32.mrb[174].mxu0 }
0x2b02   : > { %v6260_v55 = vadd.f32 %v6259_v52, %v6179_v48  ;;  %v8048_v56 = vpop.f32.mrb[175].mxu0 }
0x2b04   : > { %v6278_v6 = vadd.f32 %v6695_v35, %v6260_v55 }
0x2b05   : > { %v6184_v36 = vpop.f32.mrb[176].mxu0 }
0x2b06   : > { %6281 = vst [vmem:[%s278_s12] sm:$0xff] %v6278_v6  ;;  %v6265_v31 = vadd.f32 %v6264_v32, %v6184_v36  ;;  %v8051_v40 = vpop.f32.mrb[177].mxu0 }
0x2b08   : > { %v6279_v59 = vadd.f32 %v6695_v35, %v6265_v31 }
0x2b09   : > { %v6189_v57 = vpop.f32.mrb[178].mxu0 }
0x2b0a   : > { %6282 = vst [vmem:[%s278_s12 + $0x8] sm:$0xff] %v6279_v59  ;;  %v6270_v60 = vadd.f32 %v6269_v5, %v6189_v57  ;;  %v8054_v62 = vpop.f32.mrb[179].mxu0 }
0x2b0c   : > { %v6280_v63 = vadd.f32 %v6695_v35, %v6270_v60 }
0x2b0e   : > { %6283 = vst [vmem:[%s278_s12 + $0x10] sm:$0x1] %v6280_v63 }
0x2b0f PF: > { %s17_s24 = sadd.s32 1, %s8584_s24  }
0x2b10   : > { %p14_p4 = scmp.ge.s32.totalorder %s17_s24, 4  }
0x2b12   :  { %16 = sbr.rel (!%p14_p4) target bundleno = 1 (0x1), region = 102 }

</bundles_post_ra>
